<compile_context>
chip_gen: v5e
topology: v5e:2x2
jax: 0.10.0
libtpu: 0.0.40
codegen_flags: <defaults>
</compile_context>

<pallas_src>
import functools

import jax
import jax.numpy as jnp
from jax.experimental import pallas as pl
from jax.experimental.pallas import tpu as pltpu


# ---------------------------------------------------------------------------
# Fused whole-network kernel.
# ---------------------------------------------------------------------------
def _dncnn_fused_kernel(x_ref, mask_ref, w0_ref, b0_ref, wmid_ref, gammas_ref,
                        betas_ref, wlast_ref, out_ref, act_ref,
                        *, n_pix, Wp, n_mid, eps):
    """Shapes (L = N*(H+2)*(W+2), flattened padded pixels on the lane axis):
      x_ref    : (c_img, L) f32   zero-padded input
      mask_ref : (1, L)     f32   1.0 at interior pixels, 0.0 on the pad border
      w0_ref   : (c_hid, 9*c_img) f32
      b0_ref   : (c_hid, 1) f32
      wmid_ref : (n_mid, c_hid, 9*c_hid) bf16
      gammas_ref, betas_ref : (n_mid, c_hid, 1) f32
      wlast_ref: (c_img, 9*c_hid) bf16
      out_ref  : (c_img, L) f32   x - dncnn(x)  (valid at interior pixels)
      act_ref  : (c_hid, L) bf16  resident activations (zero border maintained)
    """
    L = x_ref.shape[1]
    c_img = x_ref.shape[0]
    c_hid = w0_ref.shape[0]
    inv_count = 1.0 / float(n_pix)
    mask = mask_ref[...]                                  # (1, L) f32

    def shift_cols(v, s):
        """out[:, q] = v[:, q + s] with zero fill.  For interior pixels q the
        source index q+s always stays inside the same padded image block, so
        the zero fill only ever feeds (discarded) border outputs."""
        r = v.shape[0]
        if s > 0:
            return jnp.concatenate(
                [v[:, s:], jnp.zeros((r, s), v.dtype)], axis=1)
        if s < 0:
            return jnp.concatenate(
                [jnp.zeros((r, -s), v.dtype), v[:, :L + s]], axis=1)
        return v

    def shifted_taps(win):
        """win (cin, L) -> (9*cin, L); row tap*cin+c holds win[c] shifted by
        (dy-1)*Wp + (dx-1), tap = dy*3+dx (matches the weight flattening)."""
        parts = []
        for dy in range(3):
            for dx in range(3):
                parts.append(shift_cols(win, (dy - 1) * Wp + (dx - 1)))
        return jnp.concatenate(parts, axis=0)

    def conv_mxu(win, w_flat):
        # (cout, 9*cin) @ (9*cin, L): pixels on the MXU output/lane axis,
        # 9*cin on the contraction axis, f32 accumulation.
        return jnp.dot(w_flat, shifted_taps(win),
                       preferred_element_type=jnp.float32)

    # ---- layer 0: conv(c_img -> c_hid) + bias + ReLU  (VPU broadcast FMAs) --
    x = x_ref[...]                                        # (c_img, L) f32
    w0 = w0_ref[...]                                      # (c_hid, 9*c_img)
    h = jnp.zeros((c_hid, L), jnp.float32)
    tap = 0
    for dy in range(3):
        for dx in range(3):
            xs = shift_cols(x, (dy - 1) * Wp + (dx - 1))  # (c_img, L)
            for ci in range(c_img):
                col = tap * c_img + ci
                h = h + w0[:, col:col + 1] * xs[ci:ci + 1, :]
            tap += 1
    h = jnp.maximum(h + b0_ref[...], 0.0)
    act_ref[...] = (h * mask).astype(act_ref.dtype)       # zero border kept

    # ---- middle layers: conv -> BatchNorm(batch stats) -> ReLU --------------
    def mid_layer(l, carry):
        hl = conv_mxu(act_ref[...], wmid_ref[l])          # (c_hid, L) f32
        hm = hl * mask                                    # exclude pad border
        mean = jnp.sum(hm, axis=1, keepdims=True) * inv_count
        ex2 = jnp.sum(hm * hl, axis=1, keepdims=True) * inv_count
        var = jnp.maximum(ex2 - mean * mean, 0.0)         # cancellation guard
        inv_std = jax.lax.rsqrt(var + eps)
        scale = gammas_ref[l] * inv_std                   # (c_hid, 1)
        shift = betas_ref[l] - mean * scale
        y = jnp.maximum(hl * scale + shift, 0.0) * mask
        act_ref[...] = y.astype(act_ref.dtype)
        return carry

    jax.lax.fori_loop(0, n_mid, mid_layer, 0)

    # ---- last conv (no bias / BN / ReLU) + residual x - out -----------------
    last = conv_mxu(act_ref[...], wlast_ref[...])         # (c_img, L) f32
    out_ref[...] = x - last          # border columns are garbage; wrapper slices


# ---------------------------------------------------------------------------
# Wrapper: NCHW in/out, layout plumbing + weight pre-flattening, one pallas_call.
# ---------------------------------------------------------------------------
def dncnn_forward(x_nchw, params, eps=1e-4, compute_dtype=jnp.bfloat16):
    """x_nchw: (N, C_img, H, W) f32 -> (N, C_img, H, W) f32 (= y - dncnn(y))."""
    N, c_img, H, W = x_nchw.shape
    Hp, Wp = H + 2, W + 2
    L = N * Hp * Wp
    c_hid = params["w0"].shape[-1]
    n_mid = len(params["w_mid"])
    assert n_mid >= 1, "depth must be >= 3"

    def to_flat(a):   # (N, C, Hp, Wp) -> (C, N*Hp*Wp)  channels-first, lane-dense
        return jnp.transpose(a, (1, 0, 2, 3)).reshape(a.shape[1], L)

    pad = ((0, 0), (0, 0), (1, 1), (1, 1))
    x_flat = to_flat(jnp.pad(x_nchw.astype(jnp.float32), pad))
    mask = to_flat(jnp.pad(jnp.ones((N, 1, H, W), jnp.float32), pad))

    def flat_w(w):    # (3,3,cin,cout) HWIO -> (cout, 9*cin), tap-major rows
        return jnp.transpose(w, (3, 0, 1, 2)).reshape(w.shape[-1], -1)

    w0 = flat_w(params["w0"]).astype(jnp.float32)           # layer 0 on the VPU
    wmid = jnp.stack([flat_w(w) for w in params["w_mid"]]).astype(compute_dtype)
    wlast = flat_w(params["w_last"]).astype(compute_dtype)
    b0 = params["b0"].reshape(c_hid, 1).astype(jnp.float32)
    gammas = params["gammas"].reshape(n_mid, c_hid, 1).astype(jnp.float32)
    betas = params["betas"].reshape(n_mid, c_hid, 1).astype(jnp.float32)

    kernel = functools.partial(
        _dncnn_fused_kernel, n_pix=N * H * W, Wp=Wp, n_mid=n_mid, eps=eps)

    out_flat = pl.pallas_call(
        kernel,
        out_shape=jax.ShapeDtypeStruct((c_img, L), jnp.float32),
        grid_spec=pltpu.PrefetchScalarGridSpec(
            num_scalar_prefetch=0,
            grid=(1,),                      # whole net fused: one grid step
            in_specs=[
                pl.BlockSpec((c_img, L), lambda i: (0, 0)),
                pl.BlockSpec((1, L), lambda i: (0, 0)),
                pl.BlockSpec((c_hid, 9 * c_img), lambda i: (0, 0)),
                pl.BlockSpec((c_hid, 1), lambda i: (0, 0)),
                pl.BlockSpec((n_mid, c_hid, 9 * c_hid), lambda i: (0, 0, 0)),
                pl.BlockSpec((n_mid, c_hid, 1), lambda i: (0, 0, 0)),
                pl.BlockSpec((n_mid, c_hid, 1), lambda i: (0, 0, 0)),
                pl.BlockSpec((c_img, 9 * c_hid), lambda i: (0, 0)),
            ],
            out_specs=pl.BlockSpec((c_img, L), lambda i: (0, 0)),
            scratch_shapes=[
                pltpu.VMEM((c_hid, L), compute_dtype),   # resident activations
            ],
        ),
        compiler_params=pltpu.CompilerParams(
            dimension_semantics=("arbitrary",),
            # sized to fit every generation (v7x physical VMEM is 64 MiB)
            vmem_limit_bytes=48 * 1024 * 1024),
    )(x_flat, mask, w0, b0, wmid, gammas, betas, wlast)

    # lane-dense kernel output is padded-flat; interior slice + NCHW here.
    out = out_flat.reshape(c_img, N, Hp, Wp)[:, :, 1:H + 1, 1:W + 1]
    return jnp.transpose(out, (1, 0, 2, 3))


# ---------------------------------------------------------------------------
# Parameters (deterministic synthetic init; same shapes as the torch module).
# ---------------------------------------------------------------------------
def init_dncnn_params(key, depth, n_channels, image_channels):
    keys = jax.random.split(key, depth)

    def conv_w(k, cin, cout):
        # TODO(synk): torch uses init.orthogonal_; a scaled normal stand-in is
        # used here since weights are synthetic (shapes match: HWIO).
        std = (2.0 / (9.0 * cin)) ** 0.5
        return std * jax.random.normal(k, (3, 3, cin, cout), jnp.float32)

    n_mid = depth - 2
    return {
        "w0": conv_w(keys[0], image_channels, n_channels),
        "b0": jnp.zeros((n_channels,), jnp.float32),          # init.constant_(bias, 0)
        "w_mid": [conv_w(keys[i], n_channels, n_channels)
                  for i in range(1, depth - 1)],
        "gammas": jnp.ones((n_mid, n_channels), jnp.float32),  # BN weight = 1
        "betas": jnp.zeros((n_mid, n_channels), jnp.float32),  # BN bias = 0
        "w_last": conv_w(keys[depth - 1], n_channels, image_channels),
    }


# ---------------------------------------------------------------------------
# Pure-JAX reference (correctness sanity check).
# TODO(synk): BatchNorm running_mean/var momentum updates (eval-mode stats) are
# not tracked; training-mode batch statistics are reproduced, as in the spec.
# ---------------------------------------------------------------------------
def _dncnn_reference(x_nchw, params, eps=1e-4):
    x = jnp.transpose(x_nchw, (0, 2, 3, 1))

    def conv(h, w):
        return jax.lax.conv_general_dilated(
            h, w, window_strides=(1, 1), padding="SAME",
            dimension_numbers=("NHWC", "HWIO", "NHWC"))

    h = jax.nn.relu(conv(x, params["w0"]) + params["b0"])
    for l, w in enumerate(params["w_mid"]):
        h = conv(h, w)
        mean = jnp.mean(h, axis=(0, 1, 2))
        var = jnp.mean((h - mean) ** 2, axis=(0, 1, 2))      # biased (torch BN)
        h = (h - mean) * jax.lax.rsqrt(var + eps)
        h = jax.nn.relu(h * params["gammas"][l] + params["betas"][l])
    out = conv(h, params["w_last"])
    return jnp.transpose(x - out, (0, 3, 1, 2))


if __name__ == "__main__":
    depth, n_channels, image_channels = 5, 32, 1           # small DnCNN config
    N, H, W = 2, 16, 16

    key = jax.random.PRNGKey(0)
    kx, kp = jax.random.split(key)
    x = jax.random.normal(kx, (N, image_channels, H, W), jnp.float32)
    params = init_dncnn_params(kp, depth, n_channels, image_channels)

    fwd = jax.jit(dncnn_forward)
    out = jax.block_until_ready(fwd(x, params))

    assert out.shape == (N, image_channels, H, W)
    assert out.dtype == jnp.float32
    assert bool(jnp.all(jnp.isfinite(out)))

    # Loose tolerance: bf16 matmul operands / resident activations (f32 accum).
    ref = jax.block_until_ready(_dncnn_reference(x, params))
    assert float(jnp.max(jnp.abs(out - ref))) < 0.25

    print("KERNEL_OK")
</pallas_src>

<mosaic_0001>
module attributes {stable_mosaic.version = 11 : i64} {
  func.func @_dncnn_fused_kernel(%arg0: i32, %arg1: memref<1x648xf32, #tpu.memory_space<vmem>>, %arg2: memref<1x648xf32, #tpu.memory_space<vmem>>, %arg3: memref<32x9xf32, #tpu.memory_space<vmem>>, %arg4: memref<32x1xf32, #tpu.memory_space<vmem>>, %arg5: memref<3x32x288xbf16, #tpu.memory_space<vmem>>, %arg6: memref<3x32x1xf32, #tpu.memory_space<vmem>>, %arg7: memref<3x32x1xf32, #tpu.memory_space<vmem>>, %arg8: memref<1x288xbf16, #tpu.memory_space<vmem>>, %arg9: memref<1x648xf32, #tpu.memory_space<vmem>>, %arg10: memref<32x648xbf16, #tpu.memory_space<vmem>>) attributes {dimension_semantics = [#tpu.dimension_semantics<arbitrary>], iteration_bounds = array<i64: 1>, scalar_prefetch = 0 : i64, scratch_operands = 1 : i64, tpu.core_type = #tpu.core_type<tc>, window_params = [{pipeline_mode = #tpu.pipeline_mode<synchronous>, transform_indices = @transform_0, window_bounds = array<i64: 1, 648>}, {pipeline_mode = #tpu.pipeline_mode<synchronous>, transform_indices = @transform_1, window_bounds = array<i64: 1, 648>}, {pipeline_mode = #tpu.pipeline_mode<synchronous>, transform_indices = @transform_2, window_bounds = array<i64: 32, 9>}, {pipeline_mode = #tpu.pipeline_mode<synchronous>, transform_indices = @transform_3, window_bounds = array<i64: 32, 1>}, {pipeline_mode = #tpu.pipeline_mode<synchronous>, transform_indices = @transform_4, window_bounds = array<i64: 3, 32, 288>}, {pipeline_mode = #tpu.pipeline_mode<synchronous>, transform_indices = @transform_5, window_bounds = array<i64: 3, 32, 1>}, {pipeline_mode = #tpu.pipeline_mode<synchronous>, transform_indices = @transform_6, window_bounds = array<i64: 3, 32, 1>}, {pipeline_mode = #tpu.pipeline_mode<synchronous>, transform_indices = @transform_7, window_bounds = array<i64: 1, 288>}, {pipeline_mode = #tpu.pipeline_mode<synchronous>, transform_indices = @transform_8, window_bounds = array<i64: 1, 648>}]} {
    %c0 = arith.constant 0 : index
    %c0_0 = arith.constant 0 : index
    %0 = vector.load %arg2[%c0, %c0_0] : memref<1x648xf32, #tpu.memory_space<vmem>>, vector<1x648xf32>
    %c0_1 = arith.constant 0 : index
    %c0_2 = arith.constant 0 : index
    %1 = vector.load %arg1[%c0_1, %c0_2] : memref<1x648xf32, #tpu.memory_space<vmem>>, vector<1x648xf32>
    %c0_3 = arith.constant 0 : index
    %c0_4 = arith.constant 0 : index
    %2 = vector.load %arg3[%c0_3, %c0_4] : memref<32x9xf32, #tpu.memory_space<vmem>>, vector<32x9xf32>
    %cst = arith.constant 0.000000e+00 : f32
    %3 = vector.broadcast %cst : f32 to vector<32x648xf32>
    %cst_5 = arith.constant 0.000000e+00 : f32
    %4 = vector.broadcast %cst_5 : f32 to vector<1x19xf32>
    %5 = vector.extract_strided_slice %1 {offsets = [0, 0], sizes = [1, 629], strides = [1, 1]} : vector<1x648xf32> to vector<1x629xf32>
    %6 = tpu.concatenate %4, %5 in 1 : vector<1x19xf32>, vector<1x629xf32> -> vector<1x648xf32>
    %7 = vector.extract_strided_slice %2 {offsets = [0, 0], sizes = [32, 1], strides = [1, 1]} : vector<32x9xf32> to vector<32x1xf32>
    %8 = vector.broadcast %7 : vector<32x1xf32> to vector<32x648xf32>
    %9 = vector.broadcast %6 : vector<1x648xf32> to vector<32x648xf32>
    %10 = arith.mulf %8, %9 : vector<32x648xf32>
    %11 = arith.addf %3, %10 : vector<32x648xf32>
    %cst_6 = arith.constant 0.000000e+00 : f32
    %12 = vector.broadcast %cst_6 : f32 to vector<1x18xf32>
    %13 = vector.extract_strided_slice %1 {offsets = [0, 0], sizes = [1, 630], strides = [1, 1]} : vector<1x648xf32> to vector<1x630xf32>
    %14 = tpu.concatenate %12, %13 in 1 : vector<1x18xf32>, vector<1x630xf32> -> vector<1x648xf32>
    %15 = vector.extract_strided_slice %2 {offsets = [0, 1], sizes = [32, 1], strides = [1, 1]} : vector<32x9xf32> to vector<32x1xf32>
    %16 = vector.broadcast %15 : vector<32x1xf32> to vector<32x648xf32>
    %17 = vector.broadcast %14 : vector<1x648xf32> to vector<32x648xf32>
    %18 = arith.mulf %16, %17 : vector<32x648xf32>
    %19 = arith.addf %11, %18 : vector<32x648xf32>
    %cst_7 = arith.constant 0.000000e+00 : f32
    %20 = vector.broadcast %cst_7 : f32 to vector<1x17xf32>
    %21 = vector.extract_strided_slice %1 {offsets = [0, 0], sizes = [1, 631], strides = [1, 1]} : vector<1x648xf32> to vector<1x631xf32>
    %22 = tpu.concatenate %20, %21 in 1 : vector<1x17xf32>, vector<1x631xf32> -> vector<1x648xf32>
    %23 = vector.extract_strided_slice %2 {offsets = [0, 2], sizes = [32, 1], strides = [1, 1]} : vector<32x9xf32> to vector<32x1xf32>
    %24 = vector.broadcast %23 : vector<32x1xf32> to vector<32x648xf32>
    %25 = vector.broadcast %22 : vector<1x648xf32> to vector<32x648xf32>
    %26 = arith.mulf %24, %25 : vector<32x648xf32>
    %27 = arith.addf %19, %26 : vector<32x648xf32>
    %cst_8 = arith.constant 0.000000e+00 : f32
    %28 = vector.broadcast %cst_8 : f32 to vector<1x1xf32>
    %29 = vector.extract_strided_slice %1 {offsets = [0, 0], sizes = [1, 647], strides = [1, 1]} : vector<1x648xf32> to vector<1x647xf32>
    %30 = tpu.concatenate %28, %29 in 1 : vector<1x1xf32>, vector<1x647xf32> -> vector<1x648xf32>
    %31 = vector.extract_strided_slice %2 {offsets = [0, 3], sizes = [32, 1], strides = [1, 1]} : vector<32x9xf32> to vector<32x1xf32>
    %32 = vector.broadcast %31 : vector<32x1xf32> to vector<32x648xf32>
    %33 = vector.broadcast %30 : vector<1x648xf32> to vector<32x648xf32>
    %34 = arith.mulf %32, %33 : vector<32x648xf32>
    %35 = arith.addf %27, %34 : vector<32x648xf32>
    %36 = vector.extract_strided_slice %2 {offsets = [0, 4], sizes = [32, 1], strides = [1, 1]} : vector<32x9xf32> to vector<32x1xf32>
    %37 = vector.broadcast %36 : vector<32x1xf32> to vector<32x648xf32>
    %38 = vector.broadcast %1 : vector<1x648xf32> to vector<32x648xf32>
    %39 = arith.mulf %37, %38 : vector<32x648xf32>
    %40 = arith.addf %35, %39 : vector<32x648xf32>
    %41 = vector.extract_strided_slice %1 {offsets = [0, 1], sizes = [1, 647], strides = [1, 1]} : vector<1x648xf32> to vector<1x647xf32>
    %cst_9 = arith.constant 0.000000e+00 : f32
    %42 = vector.broadcast %cst_9 : f32 to vector<1x1xf32>
    %43 = tpu.concatenate %41, %42 in 1 : vector<1x647xf32>, vector<1x1xf32> -> vector<1x648xf32>
    %44 = vector.extract_strided_slice %2 {offsets = [0, 5], sizes = [32, 1], strides = [1, 1]} : vector<32x9xf32> to vector<32x1xf32>
    %45 = vector.broadcast %44 : vector<32x1xf32> to vector<32x648xf32>
    %46 = vector.broadcast %43 : vector<1x648xf32> to vector<32x648xf32>
    %47 = arith.mulf %45, %46 : vector<32x648xf32>
    %48 = arith.addf %40, %47 : vector<32x648xf32>
    %49 = vector.extract_strided_slice %1 {offsets = [0, 17], sizes = [1, 631], strides = [1, 1]} : vector<1x648xf32> to vector<1x631xf32>
    %cst_10 = arith.constant 0.000000e+00 : f32
    %50 = vector.broadcast %cst_10 : f32 to vector<1x17xf32>
    %51 = tpu.concatenate %49, %50 in 1 : vector<1x631xf32>, vector<1x17xf32> -> vector<1x648xf32>
    %52 = vector.extract_strided_slice %2 {offsets = [0, 6], sizes = [32, 1], strides = [1, 1]} : vector<32x9xf32> to vector<32x1xf32>
    %53 = vector.broadcast %52 : vector<32x1xf32> to vector<32x648xf32>
    %54 = vector.broadcast %51 : vector<1x648xf32> to vector<32x648xf32>
    %55 = arith.mulf %53, %54 : vector<32x648xf32>
    %56 = arith.addf %48, %55 : vector<32x648xf32>
    %57 = vector.extract_strided_slice %1 {offsets = [0, 18], sizes = [1, 630], strides = [1, 1]} : vector<1x648xf32> to vector<1x630xf32>
    %cst_11 = arith.constant 0.000000e+00 : f32
    %58 = vector.broadcast %cst_11 : f32 to vector<1x18xf32>
    %59 = tpu.concatenate %57, %58 in 1 : vector<1x630xf32>, vector<1x18xf32> -> vector<1x648xf32>
    %60 = vector.extract_strided_slice %2 {offsets = [0, 7], sizes = [32, 1], strides = [1, 1]} : vector<32x9xf32> to vector<32x1xf32>
    %61 = vector.broadcast %60 : vector<32x1xf32> to vector<32x648xf32>
    %62 = vector.broadcast %59 : vector<1x648xf32> to vector<32x648xf32>
    %63 = arith.mulf %61, %62 : vector<32x648xf32>
    %64 = arith.addf %56, %63 : vector<32x648xf32>
    %65 = vector.extract_strided_slice %1 {offsets = [0, 19], sizes = [1, 629], strides = [1, 1]} : vector<1x648xf32> to vector<1x629xf32>
    %cst_12 = arith.constant 0.000000e+00 : f32
    %66 = vector.broadcast %cst_12 : f32 to vector<1x19xf32>
    %67 = tpu.concatenate %65, %66 in 1 : vector<1x629xf32>, vector<1x19xf32> -> vector<1x648xf32>
    %68 = vector.extract_strided_slice %2 {offsets = [0, 8], sizes = [32, 1], strides = [1, 1]} : vector<32x9xf32> to vector<32x1xf32>
    %69 = vector.broadcast %68 : vector<32x1xf32> to vector<32x648xf32>
    %70 = vector.broadcast %67 : vector<1x648xf32> to vector<32x648xf32>
    %71 = arith.mulf %69, %70 : vector<32x648xf32>
    %72 = arith.addf %64, %71 : vector<32x648xf32>
    %c0_13 = arith.constant 0 : index
    %c0_14 = arith.constant 0 : index
    %73 = vector.load %arg4[%c0_13, %c0_14] : memref<32x1xf32, #tpu.memory_space<vmem>>, vector<32x1xf32>
    %74 = vector.broadcast %73 : vector<32x1xf32> to vector<32x648xf32>
    %75 = arith.addf %72, %74 : vector<32x648xf32>
    %cst_15 = arith.constant 0.000000e+00 : f32
    %76 = vector.broadcast %cst_15 : f32 to vector<32x648xf32>
    %77 = arith.maximumf %75, %76 : vector<32x648xf32>
    %78 = vector.broadcast %0 : vector<1x648xf32> to vector<32x648xf32>
    %79 = arith.mulf %77, %78 : vector<32x648xf32>
    %80 = arith.truncf %79 : vector<32x648xf32> to vector<32x648xbf16>
    %c0_16 = arith.constant 0 : index
    %c0_17 = arith.constant 0 : index
    %81 = vector.load %arg10[%c0_16, %c0_17] : memref<32x648xbf16, #tpu.memory_space<vmem>>, vector<32x648xbf16>
    tpu.vector_store %arg10[%c0_16, %c0_17], %80 {strides = array<i32>} : memref<32x648xbf16, #tpu.memory_space<vmem>>, vector<32x648xbf16>,
    %c0_i32 = arith.constant 0 : i32
    %c3_i32 = arith.constant 3 : i32
    %82 = arith.addi %c0_i32, %c3_i32 : i32
    %c1_i32 = arith.constant 1 : i32
    scf.for %arg11 = %c0_i32 to %82 step %c1_i32  : i32 {
      %c0_34 = arith.constant 0 : index
      %c0_35 = arith.constant 0 : index
      %113 = vector.load %arg10[%c0_34, %c0_35] : memref<32x648xbf16, #tpu.memory_space<vmem>>, vector<32x648xbf16>
      %114 = arith.index_cast %arg11 : i32 to index
      %c0_36 = arith.constant 0 : index
      %c0_37 = arith.constant 0 : index
      %115 = vector.load %arg5[%114, %c0_36, %c0_37] : memref<3x32x288xbf16, #tpu.memory_space<vmem>>, vector<1x32x288xbf16>
      %116 = vector.shape_cast %115 : vector<1x32x288xbf16> to vector<32x288xbf16>
      %cst_38 = arith.constant 0.000000e+00 : bf16
      %117 = vector.broadcast %cst_38 : bf16 to vector<32x19xbf16>
      %118 = vector.extract_strided_slice %113 {offsets = [0, 0], sizes = [32, 629], strides = [1, 1]} : vector<32x648xbf16> to vector<32x629xbf16>
      %119 = tpu.concatenate %117, %118 in 1 : vector<32x19xbf16>, vector<32x629xbf16> -> vector<32x648xbf16>
      %cst_39 = arith.constant 0.000000e+00 : bf16
      %120 = vector.broadcast %cst_39 : bf16 to vector<32x18xbf16>
      %121 = vector.extract_strided_slice %113 {offsets = [0, 0], sizes = [32, 630], strides = [1, 1]} : vector<32x648xbf16> to vector<32x630xbf16>
      %122 = tpu.concatenate %120, %121 in 1 : vector<32x18xbf16>, vector<32x630xbf16> -> vector<32x648xbf16>
      %cst_40 = arith.constant 0.000000e+00 : bf16
      %123 = vector.broadcast %cst_40 : bf16 to vector<32x17xbf16>
      %124 = vector.extract_strided_slice %113 {offsets = [0, 0], sizes = [32, 631], strides = [1, 1]} : vector<32x648xbf16> to vector<32x631xbf16>
      %125 = tpu.concatenate %123, %124 in 1 : vector<32x17xbf16>, vector<32x631xbf16> -> vector<32x648xbf16>
      %cst_41 = arith.constant 0.000000e+00 : bf16
      %126 = vector.broadcast %cst_41 : bf16 to vector<32x1xbf16>
      %127 = vector.extract_strided_slice %113 {offsets = [0, 0], sizes = [32, 647], strides = [1, 1]} : vector<32x648xbf16> to vector<32x647xbf16>
      %128 = tpu.concatenate %126, %127 in 1 : vector<32x1xbf16>, vector<32x647xbf16> -> vector<32x648xbf16>
      %129 = vector.extract_strided_slice %113 {offsets = [0, 1], sizes = [32, 647], strides = [1, 1]} : vector<32x648xbf16> to vector<32x647xbf16>
      %cst_42 = arith.constant 0.000000e+00 : bf16
      %130 = vector.broadcast %cst_42 : bf16 to vector<32x1xbf16>
      %131 = tpu.concatenate %129, %130 in 1 : vector<32x647xbf16>, vector<32x1xbf16> -> vector<32x648xbf16>
      %132 = vector.extract_strided_slice %113 {offsets = [0, 17], sizes = [32, 631], strides = [1, 1]} : vector<32x648xbf16> to vector<32x631xbf16>
      %cst_43 = arith.constant 0.000000e+00 : bf16
      %133 = vector.broadcast %cst_43 : bf16 to vector<32x17xbf16>
      %134 = tpu.concatenate %132, %133 in 1 : vector<32x631xbf16>, vector<32x17xbf16> -> vector<32x648xbf16>
      %135 = vector.extract_strided_slice %113 {offsets = [0, 18], sizes = [32, 630], strides = [1, 1]} : vector<32x648xbf16> to vector<32x630xbf16>
      %cst_44 = arith.constant 0.000000e+00 : bf16
      %136 = vector.broadcast %cst_44 : bf16 to vector<32x18xbf16>
      %137 = tpu.concatenate %135, %136 in 1 : vector<32x630xbf16>, vector<32x18xbf16> -> vector<32x648xbf16>
      %138 = vector.extract_strided_slice %113 {offsets = [0, 19], sizes = [32, 629], strides = [1, 1]} : vector<32x648xbf16> to vector<32x629xbf16>
      %cst_45 = arith.constant 0.000000e+00 : bf16
      %139 = vector.broadcast %cst_45 : bf16 to vector<32x19xbf16>
      %140 = tpu.concatenate %138, %139 in 1 : vector<32x629xbf16>, vector<32x19xbf16> -> vector<32x648xbf16>
      %141 = tpu.concatenate %119, %122, %125, %128, %113, %131, %134, %137, %140 in 0 : vector<32x648xbf16>, vector<32x648xbf16>, vector<32x648xbf16>, vector<32x648xbf16>, vector<32x648xbf16>, vector<32x648xbf16>, vector<32x648xbf16>, vector<32x648xbf16>, vector<32x648xbf16> -> vector<288x648xbf16>
      %cst_46 = arith.constant dense<0.000000e+00> : vector<32x648xf32>
      %142 = tpu.matmul %116, %141, %cst_46 {dimension_numbers = #tpu.dot_dimension_numbers<[1], [0], [0], [1], [0, 0, 1, 1], [], []>} : vector<32x288xbf16>, vector<288x648xbf16>, vector<32x648xf32> -> vector<32x648xf32>
      %143 = vector.broadcast %0 : vector<1x648xf32> to vector<32x648xf32>
      %144 = arith.mulf %142, %143 : vector<32x648xf32>
      %cst_47 = arith.constant dense<0.000000e+00> : vector<32xf32>
      %145 = vector.multi_reduction <add>, %144, %cst_47 [1] : vector<32x648xf32> to vector<32xf32>
      %146 = vector.shape_cast %145 : vector<32xf32> to vector<32x1xf32>
      %cst_48 = arith.constant 0.001953125 : f32
      %147 = vector.broadcast %cst_48 : f32 to vector<32x1xf32>
      %148 = arith.mulf %146, %147 : vector<32x1xf32>
      %149 = arith.mulf %144, %142 : vector<32x648xf32>
      %cst_49 = arith.constant dense<0.000000e+00> : vector<32xf32>
      %150 = vector.multi_reduction <add>, %149, %cst_49 [1] : vector<32x648xf32> to vector<32xf32>
      %151 = vector.shape_cast %150 : vector<32xf32> to vector<32x1xf32>
      %cst_50 = arith.constant 0.001953125 : f32
      %152 = vector.broadcast %cst_50 : f32 to vector<32x1xf32>
      %153 = arith.mulf %151, %152 : vector<32x1xf32>
      %154 = arith.mulf %148, %148 : vector<32x1xf32>
      %155 = arith.subf %153, %154 : vector<32x1xf32>
      %cst_51 = arith.constant 0.000000e+00 : f32
      %156 = vector.broadcast %cst_51 : f32 to vector<32x1xf32>
      %157 = arith.maximumf %155, %156 : vector<32x1xf32>
      %cst_52 = arith.constant 9.99999974E-5 : f32
      %158 = vector.broadcast %cst_52 : f32 to vector<32x1xf32>
      %159 = arith.addf %157, %158 : vector<32x1xf32>
      %160 = math.rsqrt %159 : vector<32x1xf32>
      %161 = arith.index_cast %arg11 : i32 to index
      %c0_53 = arith.constant 0 : index
      %c0_54 = arith.constant 0 : index
      %162 = vector.load %arg6[%161, %c0_53, %c0_54] : memref<3x32x1xf32, #tpu.memory_space<vmem>>, vector<1x32x1xf32>
      %163 = vector.shape_cast %162 : vector<1x32x1xf32> to vector<32x1xf32>
      %164 = arith.mulf %163, %160 : vector<32x1xf32>
      %165 = arith.index_cast %arg11 : i32 to index
      %c0_55 = arith.constant 0 : index
      %c0_56 = arith.constant 0 : index
      %166 = vector.load %arg7[%165, %c0_55, %c0_56] : memref<3x32x1xf32, #tpu.memory_space<vmem>>, vector<1x32x1xf32>
      %167 = vector.shape_cast %166 : vector<1x32x1xf32> to vector<32x1xf32>
      %168 = arith.mulf %148, %164 : vector<32x1xf32>
      %169 = arith.subf %167, %168 : vector<32x1xf32>
      %170 = vector.broadcast %164 : vector<32x1xf32> to vector<32x648xf32>
      %171 = arith.mulf %142, %170 : vector<32x648xf32>
      %172 = vector.broadcast %169 : vector<32x1xf32> to vector<32x648xf32>
      %173 = arith.addf %171, %172 : vector<32x648xf32>
      %cst_57 = arith.constant 0.000000e+00 : f32
      %174 = vector.broadcast %cst_57 : f32 to vector<32x648xf32>
      %175 = arith.maximumf %173, %174 : vector<32x648xf32>
      %176 = vector.broadcast %0 : vector<1x648xf32> to vector<32x648xf32>
      %177 = arith.mulf %175, %176 : vector<32x648xf32>
      %178 = arith.truncf %177 : vector<32x648xf32> to vector<32x648xbf16>
      %c0_58 = arith.constant 0 : index
      %c0_59 = arith.constant 0 : index
      %179 = vector.load %arg10[%c0_58, %c0_59] : memref<32x648xbf16, #tpu.memory_space<vmem>>, vector<32x648xbf16>
      tpu.vector_store %arg10[%c0_58, %c0_59], %178 {strides = array<i32>} : memref<32x648xbf16, #tpu.memory_space<vmem>>, vector<32x648xbf16>,
    }
    %c3_i32_18 = arith.constant 3 : i32
    %c0_19 = arith.constant 0 : index
    %c0_20 = arith.constant 0 : index
    %83 = vector.load %arg10[%c0_19, %c0_20] : memref<32x648xbf16, #tpu.memory_space<vmem>>, vector<32x648xbf16>
    %c0_21 = arith.constant 0 : index
    %c0_22 = arith.constant 0 : index
    %84 = vector.load %arg8[%c0_21, %c0_22] : memref<1x288xbf16, #tpu.memory_space<vmem>>, vector<1x288xbf16>
    %cst_23 = arith.constant 0.000000e+00 : bf16
    %85 = vector.broadcast %cst_23 : bf16 to vector<32x19xbf16>
    %86 = vector.extract_strided_slice %83 {offsets = [0, 0], sizes = [32, 629], strides = [1, 1]} : vector<32x648xbf16> to vector<32x629xbf16>
    %87 = tpu.concatenate %85, %86 in 1 : vector<32x19xbf16>, vector<32x629xbf16> -> vector<32x648xbf16>
    %cst_24 = arith.constant 0.000000e+00 : bf16
    %88 = vector.broadcast %cst_24 : bf16 to vector<32x18xbf16>
    %89 = vector.extract_strided_slice %83 {offsets = [0, 0], sizes = [32, 630], strides = [1, 1]} : vector<32x648xbf16> to vector<32x630xbf16>
    %90 = tpu.concatenate %88, %89 in 1 : vector<32x18xbf16>, vector<32x630xbf16> -> vector<32x648xbf16>
    %cst_25 = arith.constant 0.000000e+00 : bf16
    %91 = vector.broadcast %cst_25 : bf16 to vector<32x17xbf16>
    %92 = vector.extract_strided_slice %83 {offsets = [0, 0], sizes = [32, 631], strides = [1, 1]} : vector<32x648xbf16> to vector<32x631xbf16>
    %93 = tpu.concatenate %91, %92 in 1 : vector<32x17xbf16>, vector<32x631xbf16> -> vector<32x648xbf16>
    %cst_26 = arith.constant 0.000000e+00 : bf16
    %94 = vector.broadcast %cst_26 : bf16 to vector<32x1xbf16>
    %95 = vector.extract_strided_slice %83 {offsets = [0, 0], sizes = [32, 647], strides = [1, 1]} : vector<32x648xbf16> to vector<32x647xbf16>
    %96 = tpu.concatenate %94, %95 in 1 : vector<32x1xbf16>, vector<32x647xbf16> -> vector<32x648xbf16>
    %97 = vector.extract_strided_slice %83 {offsets = [0, 1], sizes = [32, 647], strides = [1, 1]} : vector<32x648xbf16> to vector<32x647xbf16>
    %cst_27 = arith.constant 0.000000e+00 : bf16
    %98 = vector.broadcast %cst_27 : bf16 to vector<32x1xbf16>
    %99 = tpu.concatenate %97, %98 in 1 : vector<32x647xbf16>, vector<32x1xbf16> -> vector<32x648xbf16>
    %100 = vector.extract_strided_slice %83 {offsets = [0, 17], sizes = [32, 631], strides = [1, 1]} : vector<32x648xbf16> to vector<32x631xbf16>
    %cst_28 = arith.constant 0.000000e+00 : bf16
    %101 = vector.broadcast %cst_28 : bf16 to vector<32x17xbf16>
    %102 = tpu.concatenate %100, %101 in 1 : vector<32x631xbf16>, vector<32x17xbf16> -> vector<32x648xbf16>
    %103 = vector.extract_strided_slice %83 {offsets = [0, 18], sizes = [32, 630], strides = [1, 1]} : vector<32x648xbf16> to vector<32x630xbf16>
    %cst_29 = arith.constant 0.000000e+00 : bf16
    %104 = vector.broadcast %cst_29 : bf16 to vector<32x18xbf16>
    %105 = tpu.concatenate %103, %104 in 1 : vector<32x630xbf16>, vector<32x18xbf16> -> vector<32x648xbf16>
    %106 = vector.extract_strided_slice %83 {offsets = [0, 19], sizes = [32, 629], strides = [1, 1]} : vector<32x648xbf16> to vector<32x629xbf16>
    %cst_30 = arith.constant 0.000000e+00 : bf16
    %107 = vector.broadcast %cst_30 : bf16 to vector<32x19xbf16>
    %108 = tpu.concatenate %106, %107 in 1 : vector<32x629xbf16>, vector<32x19xbf16> -> vector<32x648xbf16>
    %109 = tpu.concatenate %87, %90, %93, %96, %83, %99, %102, %105, %108 in 0 : vector<32x648xbf16>, vector<32x648xbf16>, vector<32x648xbf16>, vector<32x648xbf16>, vector<32x648xbf16>, vector<32x648xbf16>, vector<32x648xbf16>, vector<32x648xbf16>, vector<32x648xbf16> -> vector<288x648xbf16>
    %cst_31 = arith.constant dense<0.000000e+00> : vector<1x648xf32>
    %110 = tpu.matmul %84, %109, %cst_31 {dimension_numbers = #tpu.dot_dimension_numbers<[1], [0], [0], [1], [0, 0, 1, 1], [], []>} : vector<1x288xbf16>, vector<288x648xbf16>, vector<1x648xf32> -> vector<1x648xf32>
    %111 = arith.subf %1, %110 : vector<1x648xf32>
    %c0_32 = arith.constant 0 : index
    %c0_33 = arith.constant 0 : index
    %112 = vector.load %arg9[%c0_32, %c0_33] : memref<1x648xf32, #tpu.memory_space<vmem>>, vector<1x648xf32>
    tpu.vector_store %arg9[%c0_32, %c0_33], %111 {strides = array<i32>} : memref<1x648xf32, #tpu.memory_space<vmem>>, vector<1x648xf32>,
    return
  }
  func.func @transform_0(%arg0: i32) -> (i32, i32) {
    %c0_i32 = arith.constant 0 : i32
    %c0_i32_0 = arith.constant 0 : i32
    %c0_i32_1 = arith.constant 0 : i32
    return %c0_i32, %c0_i32_0 : i32, i32
  }
  func.func @transform_1(%arg0: i32) -> (i32, i32) {
    %c0_i32 = arith.constant 0 : i32
    %c0_i32_0 = arith.constant 0 : i32
    %c0_i32_1 = arith.constant 0 : i32
    return %c0_i32, %c0_i32_0 : i32, i32
  }
  func.func @transform_2(%arg0: i32) -> (i32, i32) {
    %c0_i32 = arith.constant 0 : i32
    %c0_i32_0 = arith.constant 0 : i32
    %c0_i32_1 = arith.constant 0 : i32
    return %c0_i32, %c0_i32_0 : i32, i32
  }
  func.func @transform_3(%arg0: i32) -> (i32, i32) {
    %c0_i32 = arith.constant 0 : i32
    %c0_i32_0 = arith.constant 0 : i32
    %c0_i32_1 = arith.constant 0 : i32
    return %c0_i32, %c0_i32_0 : i32, i32
  }
  func.func @transform_4(%arg0: i32) -> (i32, i32, i32) {
    %c0_i32 = arith.constant 0 : i32
    %c0_i32_0 = arith.constant 0 : i32
    %c0_i32_1 = arith.constant 0 : i32
    %c0_i32_2 = arith.constant 0 : i32
    return %c0_i32, %c0_i32_0, %c0_i32_1 : i32, i32, i32
  }
  func.func @transform_5(%arg0: i32) -> (i32, i32, i32) {
    %c0_i32 = arith.constant 0 : i32
    %c0_i32_0 = arith.constant 0 : i32
    %c0_i32_1 = arith.constant 0 : i32
    %c0_i32_2 = arith.constant 0 : i32
    return %c0_i32, %c0_i32_0, %c0_i32_1 : i32, i32, i32
  }
  func.func @transform_6(%arg0: i32) -> (i32, i32, i32) {
    %c0_i32 = arith.constant 0 : i32
    %c0_i32_0 = arith.constant 0 : i32
    %c0_i32_1 = arith.constant 0 : i32
    %c0_i32_2 = arith.constant 0 : i32
    return %c0_i32, %c0_i32_0, %c0_i32_1 : i32, i32, i32
  }
  func.func @transform_7(%arg0: i32) -> (i32, i32) {
    %c0_i32 = arith.constant 0 : i32
    %c0_i32_0 = arith.constant 0 : i32
    %c0_i32_1 = arith.constant 0 : i32
    return %c0_i32, %c0_i32_0 : i32, i32
  }
  func.func @transform_8(%arg0: i32) -> (i32, i32) {
    %c0_i32 = arith.constant 0 : i32
    %c0_i32_0 = arith.constant 0 : i32
    %c0_i32_1 = arith.constant 0 : i32
    return %c0_i32, %c0_i32_0 : i32, i32
  }
}

</mosaic_0001>

<bundles_post_ra>
// kernel: dncnn_forward.1
= control target key start
LH: loop header
LB: loop body
LE: loop exit
PB: predicated region body
PF: predicated region fallthrough
CT: control target
= control target key end

     0   :  { %v5792_v1 = vmov 0   ;;  %s3257_s29 = smov 19   ;;  %s3258_s15 = smov 18   ;;  %v3259_v11 = vmov 1   ;;  %v3261_v12 = vmov 2   ;;  %v3263_v13 = vmov 3   ;;  %s5783_s0 = inlined_call_operand.vmem [shape: f32[1,648], index: 0, kind: input, shape index: {}]   ;;  %s5784_s2 = inlined_call_operand.vmem [shape: f32[32,9], index: 2, kind: input, shape index: {}]   ;;  %s5785_s3 = inlined_call_operand.vmem [shape: f32[32,1], index: 3, kind: input, shape index: {}]   ;;  %s5786_s4 = inlined_call_operand.vmem [shape: bf16[3,32,288], index: 4, kind: input, shape index: {}]   ;;  %s5787_s5 = inlined_call_operand.vmem [shape: f32[3,32,1], index: 5, kind: input, shape index: {}]   ;;  %s5788_s6 = inlined_call_operand.vmem [shape: f32[3,32,1], index: 6, kind: input, shape index: {}]   ;;  %s5789_s7 = inlined_call_operand.vmem [shape: bf16[1,288], index: 7, kind: input, shape index: {}]   ;;  %s5790_s8 = inlined_call_operand.vmem [shape: f32[1,648], index: 8, kind: output, shape index: {}]   ;;  %s5791_s1 = inlined_call_operand.vmem [shape: f32[1,648], index: 1, kind: input, shape index: {}]  }
   0x1   :  { %v3331_v0 = vld [vmem:[%s5783_s0] sm:$0x3f]  ;;  %3207 = vset.pattern.permute.xlu2 %v5792_v1  ;;  %3209 = vset.pattern.permute.xlu1 %v5792_v1  ;;  %v3370_v8 = vld [vmem:[%s5784_s2 + $0x18] sm:$0xff]  ;;  %v3375_v9 = vld [vmem:[%s5784_s2 + $0x10] sm:$0xff]  ;;  %s3262_s16 = smov 1   ;;  %v3264_v14 = vmov 4  }
   0x2   :  { %5811 = vst [vmem:[#allocation3_spill] sm:$0xff] %v3331_v0  ;;  %v3336_v2 = vperm.slane %v3331_v0, 4  ;;  %v3339_v3 = vperm.slane %v3331_v0, 2  ;;  %v3342_v4 = vperm.slane %v3331_v0, 0  ;;  %3208 = vset.pattern.permute.xlu0 %v5792_v1  ;;  %v3352_v5 = vperm.slane %v3331_v0, 3  ;;  %v3357_v6 = vld [vmem:[%s5784_s2] sm:$0xff] }
   0x3   :  { %v3360_v7 = vperm.slane %v3331_v0, 1  ;;  %v3380_v10 = vld [vmem:[%s5784_s2 + $0x8] sm:$0xff]  ;;  %s3260_s2 = smov 17   ;;  %v3424_v15 = vperm.slane %v3331_v0, 5  ;;  %s3265_s17 = smov 127   ;;  %v3266_v17 = vmov 5  }
   0x4   :  { %50 = vrot.lane.b32.xlu2 %v3336_v2, %s3257_s29  ;;  %46 = vrot.lane.b32.xlu1 %v3339_v3, %s3257_s29  ;;  %vm5808_vm0 = vcmask 154624   ;;  %s3267_s18 = smov 111   ;;  %v3268_v26 = vmov 6   ;;  %s3269_s19 = smov 110   ;;  %vm5809_vm1 = vcmask 146432   ;;  %vm5810_vm2 = vcmask 138240  }
   0x5   :  { %42 = vrot.lane.b32.xlu0 %v3342_v4, %s3257_s29  ;;  %s3271_s20 = smov 109   ;;  %vm335_vm3 = vcmask 7168   ;;  %vm500_vm4 = vcmask 1039360   ;;  %vm5798_vm5 = vcmask 56320   ;;  %vm596_vm6 = vcmask 908288  }
   0x6   :  { %vm5796_vm7 = vcmask 973824   ;;  %vm691_vm8 = vcmask 900096   ;;  %vm785_vm9 = vcmask 891904   ;;  %vm5797_vm10 = vcmask 965632  }
   0x7   :  { %vm5795_vm11 = vcmask 957440   ;;  %vm990_vm12 = vcmask 1043456   ;;  %vm991_vm13 = vcmask 64516  }
   0x8   :  { %vm4284_vm14 = vmor %vm991_vm13, %vm990_vm12 }
   0xc   :  { %66 = vperm.xlu2 %3207, %v3357_v6   ;;  %48 = vrot.lane.b32.xlu1 %v3352_v5, %s3257_s29 }
   0xd   :  { %44 = vrot.lane.b32.xlu0 %v3360_v7, %s3257_s29 }
  0x14   :  { %81 = vperm.xlu2 %3207, %v3370_v8   ;;  %76 = vperm.xlu1 %3209, %v3375_v9  }
  0x15   :  { %71 = vperm.xlu0 %3208, %v3380_v10  }
  0x1c   :  { %140 = vrot.lane.b32.xlu2 %v3360_v7, %s3258_s15  ;;  %138 = vrot.lane.b32.xlu1 %v3342_v4, %s3258_s15 }
  0x1d   :  { %142 = vrot.lane.b32.xlu0 %v3339_v3, %s3258_s15  ;;  %3212 = vset.pattern.permute.xlu2 %v3259_v11 }
  0x1e   :  { %3210 = vset.pattern.permute.xlu0 %v3259_v11  ;;  %3211 = vset.pattern.permute.xlu1 %v3259_v11 }
  0x24   :  { %146 = vrot.lane.b32.xlu2 %v3336_v2, %s3258_s15  ;;  %144 = vrot.lane.b32.xlu1 %v3352_v5, %s3258_s15 }
  0x25   :  { %161 = vperm.xlu0 %3210, %v3357_v6  }
  0x2c   :  { %169 = vperm.xlu2 %3212, %v3375_v9   ;;  %165 = vperm.xlu1 %3211, %v3380_v10  }
  0x2d   :  { %232 = vrot.lane.b32.xlu0 %v3360_v7, %s3260_s2 }
  0x2e   :  { %3215 = vset.pattern.permute.xlu0 %v3261_v12 }
  0x34   :  { %230 = vrot.lane.b32.xlu2 %v3342_v4, %s3260_s2  ;;  %173 = vperm.xlu1 %3211, %v3370_v8  }
  0x35   :  { %238 = vrot.lane.b32.xlu0 %v3336_v2, %s3260_s2  ;;  %3214 = vset.pattern.permute.xlu2 %v3261_v12 }
  0x3c   :  { %236 = vrot.lane.b32.xlu2 %v3352_v5, %s3260_s2  ;;  %234 = vrot.lane.b32.xlu1 %v3339_v3, %s3260_s2 }
  0x3d   :  { %261 = vperm.xlu0 %3215, %v3375_v9   ;;  %3213 = vset.pattern.permute.xlu1 %v3261_v12 }
  0x44   :  { %257 = vperm.xlu2 %3214, %v3380_v10   ;;  %253 = vperm.xlu1 %3213, %v3357_v6  }
  0x45   :  { %329 = vrot.lane.b32.xlu0 %v3352_v5, %s3262_s16 }
  0x46   :  { %3216 = vset.pattern.permute.xlu0 %v3263_v13 }
  0x4c   :  { %323 = vrot.lane.b32.xlu2 %v3342_v4, %s3262_s16  ;;  %265 = vperm.xlu1 %3213, %v3370_v8  }
  0x4d   :  { %349 = vperm.xlu0 %3216, %v3357_v6   ;;  %3218 = vset.pattern.permute.xlu2 %v3263_v13 }
  0x54   :  { %327 = vrot.lane.b32.xlu2 %v3339_v3, %s3262_s16  ;;  %325 = vrot.lane.b32.xlu1 %v3360_v7, %s3262_s16 }
  0x55   :  { %3220 = vset.pattern.permute.xlu0 %v3264_v14  ;;  %3217 = vset.pattern.permute.xlu1 %v3263_v13 }
  0x56   :  { %423 = vperm.xlu0 %3220, %v3380_v10  }
  0x5c   :  { %333 = vrot.lane.b32.xlu2 %v3424_v15, %s3262_s16  ;;  %331 = vrot.lane.b32.xlu1 %v3336_v2, %s3262_s16 }
  0x5e   :  { %v51_v16 = vpop.permute.xlu2 %50  ;;  %492 = vrot.lane.b32.xlu0 %v3339_v3, %s3265_s17 }
  0x5f   :  { %3224 = vset.pattern.permute.xlu0 %v3266_v17  ;;  %v3432_v18 = vperm.slane %v51_v16, 0 }
  0x64   :  { %357 = vperm.xlu2 %3218, %v3375_v9   ;;  %353 = vperm.xlu1 %3217, %v3380_v10  }
  0x66   :  { %v67_v19 = vpop.permute.xlu2 %66  ;;  %498 = vrot.lane.b32.xlu0 %v3424_v15, %s3265_s17 }
  0x67   :  { %v3439_v20 = vmul.f32 %v3432_v18, %v67_v19 }
  0x6c   :  { %3219 = vset.pattern.permute.xlu2 %v3264_v14  ;;  %361 = vperm.xlu1 %3217, %v3370_v8  }
  0x6d   :  { %419 = vperm.xlu2 %3219, %v3357_v6  }
  0x6e   :  { %v82_v21 = vpop.permute.xlu2 %81  ;;  %523 = vperm.xlu0 %3224, %v3375_v9  }
  0x6f   :  { %v3445_v22 = vmul.f32 %v3432_v18, %v82_v21 }
  0x74   :  { %3221 = vset.pattern.permute.xlu1 %v3264_v14 }
  0x75   :  { %431 = vperm.xlu2 %3219, %v3370_v8   ;;  %427 = vperm.xlu1 %3221, %v3375_v9  }
  0x76   :  { %v47_v23 = vpop.permute.xlu1 %46  ;;  %v3449_v24 = vpop.permute.xlu2 %140  ;;  %590 = vrot.lane.b32.xlu0 %v3352_v5, %s3267_s18 }
  0x77   :  { %v43_v25 = vpop.permute.xlu0 %42  ;;  %3225 = vset.pattern.permute.xlu0 %v3268_v26 }
  0x78   :  { %v63_v27 = vsel %vm5808_vm0, 0.0, %v43_v25 }
  0x79   :  { %v84_v28 = vperm.slane %v63_v27, 0 }
  0x7b   :  { %v3455_v29 = vmul.f32 %v84_v28, %v67_v19  ;;  %v3457_v30 = vmul.f32 %v84_v28, %v82_v21 }
  0x7d   :  { %490 = vrot.lane.b32.xlu2 %v3360_v7, %s3265_s17  ;;  %488 = vrot.lane.b32.xlu1 %v3342_v4, %s3265_s17 }
  0x7e   :  { %v49_v31 = vpop.permute.xlu1 %48  ;;  %v3463_v32 = vpop.permute.xlu2 %146  ;;  %3223 = vset.pattern.permute.xlu2 %v3266_v17  ;;  %3222 = vset.pattern.permute.xlu1 %v3266_v17 }
  0x7f   :  { %v55_v33 = vsel %vm5808_vm0, %v47_v23, %v49_v31  ;;  %v56_v34 = vsel %vm5808_vm0, %v49_v31, %v51_v16  ;;  %v45_v35 = vpop.permute.xlu0 %44  ;;  %610 = vperm.xlu0 %3225, %v3357_v6   ;;  %v3487_v50 = vperm.slane %v3463_v32, 0 }
  0x80   :  { %v87_v36 = vperm.slane %v55_v33, 0  ;;  %v88_v37 = vperm.slane %v56_v34, 0  ;;  %v53_v38 = vsel %vm5808_vm0, %v43_v25, %v45_v35  ;;  %v54_v39 = vsel %vm5808_vm0, %v45_v35, %v47_v23 }
  0x81   :  { %v85_v40 = vperm.slane %v53_v38, 0  ;;  %v86_v41 = vperm.slane %v54_v39, 0  ;;  %v3270_v34 = vmov 7  }
  0x82   :  { %v3470_v42 = vmul.f32 %v87_v36, %v67_v19  ;;  %v3472_v43 = vmul.f32 %v88_v37, %v67_v19  ;;  %v3474_v44 = vmul.f32 %v87_v36, %v82_v21  ;;  %v3476_v45 = vmul.f32 %v88_v37, %v82_v21 }
  0x83   :  { %v3478_v46 = vmul.f32 %v85_v40, %v67_v19  ;;  %v3480_v47 = vmul.f32 %v86_v41, %v67_v19  ;;  %v3482_v48 = vmul.f32 %v85_v40, %v82_v21  ;;  %v3484_v49 = vmul.f32 %v86_v41, %v82_v21 }
  0x85   :  { %496 = vrot.lane.b32.xlu2 %v3336_v2, %s3265_s17  ;;  %494 = vrot.lane.b32.xlu1 %v3352_v5, %s3265_s17 }
  0x86   :  { %v77_v51 = vpop.permute.xlu1 %76  ;;  %v170_v52 = vpop.permute.xlu2 %169 }
  0x87   :  { %v102_v53 = vmul.f32 %v84_v28, %v77_v51  ;;  %v103_v54 = vmul.f32 %v85_v40, %v77_v51  ;;  %v104_v55 = vmul.f32 %v86_v41, %v77_v51  ;;  %v105_v56 = vmul.f32 %v87_v36, %v77_v51  ;;  %v72_v57 = vpop.permute.xlu0 %71  ;;  %681 = vrot.lane.b32.xlu0 %v3360_v7, %s3269_s19 }
  0x88   :  { %v106_v58 = vmul.f32 %v88_v37, %v77_v51  ;;  %v107_v59 = vmul.f32 %v3432_v18, %v77_v51  ;;  %v199_v60 = vmul.f32 %v3487_v50, %v170_v52  ;;  %v3497_v61 = vmul.f32 %v84_v28, %v72_v57  ;;  %3229 = vset.pattern.permute.xlu0 %v3270_v34 }
  0x89   :  { %v3499_v62 = vmul.f32 %v85_v40, %v72_v57  ;;  %v3501_v63 = vmul.f32 %v86_v41, %v72_v57  ;;  %v3503_v11 = vmul.f32 %v87_v36, %v72_v57  ;;  %v3505_v12 = vmul.f32 %v88_v37, %v72_v57 }
  0x8a   :  { %v3507_v13 = vadd.f32 %v199_v60, %v107_v59  ;;  %v3510_v14 = vmul.f32 %v3432_v18, %v72_v57 }
  0x8d   :  { %519 = vperm.xlu2 %3223, %v3380_v10   ;;  %515 = vperm.xlu1 %3222, %v3357_v6  }
  0x8e   :  { %v3514_v16 = vpop.permute.xlu2 %230  ;;  %v139_v17 = vpop.permute.xlu1 %138 }
  0x8f   :  { %v149_v19 = vsel %vm5809_vm1, %v139_v17, %v3449_v24  ;;  %v159_v21 = vsel %vm5809_vm1, 0.0, %v139_v17  ;;  %v143_v23 = vpop.permute.xlu0 %142  ;;  %687 = vrot.lane.b32.xlu0 %v3336_v2, %s3269_s19 }
  0x90   :  { %v3521_v25 = vperm.slane %v159_v21, 0  ;;  %v3523_v18 = vperm.slane %v149_v19, 0  ;;  %v150_v27 = vsel %vm5809_vm1, %v3449_v24, %v143_v23  ;;  %v251_v24 = vsel %vm5810_vm2, 0.0, %v3514_v16 }
  0x91   :  { %v3527_v28 = vperm.slane %v150_v27, 0  ;;  %v3553_v60 = vperm.slane %v251_v24, 0 }
  0x92   :  { %v194_v31 = vmul.f32 %v3521_v25, %v170_v52  ;;  %v195_v33 = vmul.f32 %v3523_v18, %v170_v52 }
  0x93   :  { %v196_v35 = vmul.f32 %v3527_v28, %v170_v52 }
  0x94   :  { %v3533_v36 = vadd.f32 %v194_v31, %v102_v53  ;;  %v3535_v37 = vadd.f32 %v195_v33, %v103_v54 }
  0x95   :  { %v3537_v38 = vadd.f32 %v196_v35, %v104_v55  ;;  %584 = vrot.lane.b32.xlu2 %v3342_v4, %s3267_s18  ;;  %527 = vperm.xlu1 %3222, %v3370_v8  }
  0x96   :  { %v3544_v39 = vpop.permute.xlu2 %236  ;;  %v145_v40 = vpop.permute.xlu1 %144  ;;  %3227 = vset.pattern.permute.xlu2 %v3268_v26 }
  0x97   :  { %v151_v41 = vsel %vm5809_vm1, %v143_v23, %v145_v40  ;;  %v152_v51 = vsel %vm5809_vm1, %v145_v40, %v3463_v32  ;;  %v162_v53 = vpop.permute.xlu0 %161  ;;  %709 = vperm.xlu0 %3229, %v3380_v10  }
  0x98   :  { %v179_v54 = vperm.slane %v151_v41, 0  ;;  %v180_v55 = vperm.slane %v152_v51, 0  ;;  %v182_v57 = vmul.f32 %v3521_v25, %v162_v53  ;;  %v183_v59 = vmul.f32 %v3523_v18, %v162_v53 }
  0x99   :  { %v184_v17 = vmul.f32 %v3527_v28, %v162_v53  ;;  %v187_v19 = vmul.f32 %v3487_v50, %v162_v53 }
  0x9a   :  { %v197_v21 = vmul.f32 %v179_v54, %v170_v52  ;;  %v198_v23 = vmul.f32 %v180_v55, %v170_v52  ;;  %v185_v27 = vmul.f32 %v179_v54, %v162_v53  ;;  %v186_v31 = vmul.f32 %v180_v55, %v162_v53 }
  0x9b   :  { %v3558_v32 = vadd.f32 %v182_v57, %v3455_v29  ;;  %v3561_v33 = vadd.f32 %v183_v59, %v3478_v46  ;;  %v3564_v35 = vadd.f32 %v184_v17, %v3480_v47  ;;  %v3567_v24 = vadd.f32 %v187_v19, %v3439_v20 }
  0x9c   :  { %v3569_v40 = vadd.f32 %v197_v21, %v105_v56  ;;  %v3571_v41 = vadd.f32 %v198_v23, %v106_v58  ;;  %v3574_v52 = vadd.f32 %v185_v27, %v3470_v42  ;;  %v3577_v51 = vadd.f32 %v186_v31, %v3472_v43 }
  0x9d   :  { %588 = vrot.lane.b32.xlu2 %v3339_v3, %s3267_s18  ;;  %586 = vrot.lane.b32.xlu1 %v3360_v7, %s3267_s18 }
  0x9e   :  { %v3583_v29 = vpop.permute.xlu2 %257  ;;  %v166_v20 = vpop.permute.xlu1 %165  ;;  %3226 = vset.pattern.permute.xlu1 %v3268_v26 }
  0x9f   :  { %v280_v46 = vmul.f32 %v3553_v60, %v3583_v29  ;;  %v188_v42 = vmul.f32 %v3521_v25, %v166_v20  ;;  %v189_v47 = vmul.f32 %v3523_v18, %v166_v20  ;;  %v190_v43 = vmul.f32 %v3527_v28, %v166_v20  ;;  %v233_v56 = vpop.permute.xlu0 %232  ;;  %777 = vrot.lane.b32.xlu0 %v3339_v3, %s3271_s20 }
  0xa0   :  { %v191_v58 = vmul.f32 %v179_v54, %v166_v20  ;;  %v192_v53 = vmul.f32 %v180_v55, %v166_v20  ;;  %v193_v57 = vmul.f32 %v3487_v50, %v166_v20  ;;  %v241_v26 = vsel %vm5810_vm2, %v3514_v16, %v233_v56 }
  0xa1   :  { %v212_v59 = vadd.f32 %v188_v42, %v3497_v61  ;;  %v213_v17 = vadd.f32 %v189_v47, %v3499_v62  ;;  %v214_v19 = vadd.f32 %v190_v43, %v3501_v63  ;;  %v3599_v21 = vperm.slane %v241_v26, 0 }
  0xa2   :  { %v215_v23 = vadd.f32 %v191_v58, %v3503_v11  ;;  %v216_v27 = vadd.f32 %v192_v53, %v3505_v12  ;;  %v217_v31 = vadd.f32 %v193_v57, %v3510_v14 }
  0xa3   :  { %v281_v20 = vmul.f32 %v3599_v21, %v3583_v29  ;;  %v3606_v1 = vadd.f32 %v280_v46, %v212_v59 }
  0xa5   :  { %v3608_v16 = vadd.f32 %v281_v20, %v213_v17  ;;  %594 = vrot.lane.b32.xlu2 %v3424_v15, %s3267_s18  ;;  %592 = vrot.lane.b32.xlu1 %v3336_v2, %s3267_s18 }
  0xa6   :  { %v3614_v61 = vpop.permute.xlu2 %323  ;;  %v174_v62 = vpop.permute.xlu1 %173 }
  0xa7   :  { %v200_v63 = vmul.f32 %v3521_v25, %v174_v62  ;;  %v201_v11 = vmul.f32 %v3523_v18, %v174_v62  ;;  %v202_v12 = vmul.f32 %v3527_v28, %v174_v62  ;;  %v239_v14 = vpop.permute.xlu0 %238  ;;  %783 = vrot.lane.b32.xlu0 %v3424_v15, %s3271_s20  ;;  %v203_v46 = vmul.f32 %v179_v54, %v174_v62 }
  0xa8   :  { %v204_v42 = vmul.f32 %v180_v55, %v174_v62  ;;  %v205_v47 = vmul.f32 %v3487_v50, %v174_v62  ;;  %v244_v18 = vsel %vm5810_vm2, %v3544_v39, %v239_v14  ;;  %v3644_v55 = vperm.slane %v239_v14, 0 }
  0xa9   :  { %v3623_v43 = vadd.f32 %v200_v63, %v3457_v30  ;;  %v3626_v58 = vadd.f32 %v201_v11, %v3482_v48  ;;  %v3629_v25 = vadd.f32 %v202_v12, %v3484_v49  ;;  %v3634_v28 = vadd.f32 %v203_v46, %v3474_v44 }
  0xaa   :  { %v3637_v54 = vadd.f32 %v204_v42, %v3476_v45  ;;  %v3640_v50 = vadd.f32 %v205_v47, %v3445_v22  ;;  %v3642_v30 = vperm.slane %v244_v18, 0  ;;  %v285_v49 = vmul.f32 %v3644_v55, %v3583_v29 }
  0xab   :  { %v3272_v46 = vmov 8  }
  0xac   :  { %v284_v48 = vmul.f32 %v3642_v30, %v3583_v29  ;;  %v3656_v53 = vadd.f32 %v285_v49, %v217_v31  ;;  %3233 = vset.pattern.permute.xlu0 %v3272_v46 }
  0xad   :  { %618 = vperm.xlu2 %3227, %v3375_v9   ;;  %614 = vperm.xlu1 %3226, %v3380_v10  }
  0xae   :  { %v3652_v44 = vadd.f32 %v284_v48, %v216_v27  ;;  %v3654_v45 = vpop.permute.xlu2 %327  ;;  %v235_v22 = vpop.permute.xlu1 %234 }
  0xaf   :  { %v242_v57 = vsel %vm5810_vm2, %v233_v56, %v235_v22  ;;  %v243_v26 = vsel %vm5810_vm2, %v235_v22, %v3544_v39  ;;  %v262_v59 = vpop.permute.xlu0 %261  ;;  %807 = vperm.xlu0 %3233, %v3375_v9  }
  0xb0   :  { %v270_v17 = vperm.slane %v242_v57, 0  ;;  %v271_v20 = vperm.slane %v243_v26, 0  ;;  %v286_v62 = vmul.f32 %v3553_v60, %v262_v59  ;;  %v287_v63 = vmul.f32 %v3599_v21, %v262_v59 }
  0xb1   :  { %v290_v27 = vmul.f32 %v3642_v30, %v262_v59  ;;  %v291_v11 = vmul.f32 %v3644_v55, %v262_v59 }
  0xb2   :  { %v282_v12 = vmul.f32 %v270_v17, %v3583_v29  ;;  %v283_v31 = vmul.f32 %v271_v20, %v3583_v29  ;;  %v288_v14 = vmul.f32 %v270_v17, %v262_v59  ;;  %v289_v56 = vmul.f32 %v271_v20, %v262_v59 }
  0xb3   :  { %v310_v39 = vadd.f32 %v286_v62, %v3533_v36  ;;  %v3670_v42 = vadd.f32 %v287_v63, %v3535_v37  ;;  %v3673_v47 = vadd.f32 %v290_v27, %v3571_v41  ;;  %v3676_v18 = vadd.f32 %v291_v11, %v3507_v13 }
  0xb4   :  { %v3679_v48 = vadd.f32 %v282_v12, %v214_v19  ;;  %v3681_v29 = vadd.f32 %v283_v31, %v215_v23  ;;  %v3684_v49 = vadd.f32 %v288_v14, %v3537_v38  ;;  %v313_v36 = vadd.f32 %v289_v56, %v3569_v40 }
  0xb5   :  { %679 = vrot.lane.b32.xlu2 %v3342_v4, %s3269_s19  ;;  %622 = vperm.xlu1 %3226, %v3370_v8   ;;  %v347_v40 = vsel %vm335_vm3, 0.0, %v3614_v61 }
  0xb6   :  { %v3690_v37 = vpop.permute.xlu2 %333  ;;  %v254_v13 = vpop.permute.xlu1 %253  ;;  %3228 = vset.pattern.permute.xlu2 %v3270_v34  ;;  %v3714_v14 = vperm.slane %v347_v40, 0 }
  0xb7   :  { %v274_v41 = vmul.f32 %v3553_v60, %v254_v13  ;;  %v275_v19 = vmul.f32 %v3599_v21, %v254_v13  ;;  %v276_v23 = vmul.f32 %v270_v17, %v254_v13  ;;  %v277_v38 = vmul.f32 %v271_v20, %v254_v13  ;;  %v3695_v22 = vpop.permute.xlu0 %329 }
  0xb8   :  { %v278_v57 = vmul.f32 %v3642_v30, %v254_v13  ;;  %v279_v26 = vmul.f32 %v3644_v55, %v254_v13  ;;  %v338_v59 = vsel %vm335_vm3, %v3654_v45, %v3695_v22  ;;  %v5812_v13 = vmov 0  }
  0xb9   :  { %v298_v62 = vadd.f32 %v274_v41, %v3558_v32  ;;  %v299_v63 = vadd.f32 %v275_v19, %v3561_v33  ;;  %v300_v27 = vadd.f32 %v276_v23, %v3564_v35  ;;  %v301_v11 = vadd.f32 %v277_v38, %v3574_v52  ;;  %3236 = vset.pattern.permute.xlu0 %v5812_v13 }
  0xba   :  { %v3709_v12 = vadd.f32 %v278_v57, %v3577_v51  ;;  %v3712_v31 = vadd.f32 %v279_v26, %v3567_v24  ;;  %v3716_v56 = vperm.slane %v338_v59, 0 }
  0xbd   :  { %685 = vrot.lane.b32.xlu2 %v3352_v5, %s3269_s19  ;;  %683 = vrot.lane.b32.xlu1 %v3339_v3, %s3269_s19 }
  0xbe   :  { %v3723_v32 = vpop.permute.xlu2 %357  ;;  %v266_v33 = vpop.permute.xlu1 %265  ;;  %3230 = vset.pattern.permute.xlu1 %v3270_v34 }
  0xbf   :  { %v382_v35 = vmul.f32 %v3714_v14, %v3723_v32  ;;  %v385_v24 = vmul.f32 %v3716_v56, %v3723_v32  ;;  %v292_v52 = vmul.f32 %v3553_v60, %v266_v33  ;;  %v293_v51 = vmul.f32 %v3599_v21, %v266_v33  ;;  %v350_v40 = vpop.permute.xlu0 %349 }
  0xc0   :  { %v294_v41 = vmul.f32 %v270_v17, %v266_v33  ;;  %v295_v19 = vmul.f32 %v271_v20, %v266_v33  ;;  %v296_v23 = vmul.f32 %v3642_v30, %v266_v33  ;;  %v297_v38 = vmul.f32 %v3644_v55, %v266_v33 }
  0xc1   :  { %v3734_v57 = vadd.f32 %v382_v35, %v310_v39  ;;  %v3736_v34 = vadd.f32 %v385_v24, %v313_v36  ;;  %v3739_v26 = vadd.f32 %v292_v52, %v3623_v43  ;;  %v3742_v59 = vadd.f32 %v293_v51, %v3626_v58 }
  0xc2   :  { %v3745_v60 = vadd.f32 %v294_v41, %v3629_v25  ;;  %v3748_v21 = vadd.f32 %v295_v19, %v3634_v28  ;;  %v3751_v30 = vadd.f32 %v296_v23, %v3637_v54  ;;  %v3754_v55 = vadd.f32 %v297_v38, %v3640_v50 }
  0xc3   :  { %v370_v17 = vmul.f32 %v3714_v14, %v350_v40  ;;  %v373_v43 = vmul.f32 %v3716_v56, %v350_v40 }
  0xc5   :  { %v394_v20 = vadd.f32 %v370_v17, %v298_v62  ;;  %v397_v39 = vadd.f32 %v373_v43, %v301_v11  ;;  %705 = vperm.xlu2 %3228, %v3357_v6   ;;  %689 = vrot.lane.b32.xlu1 %v3424_v15, %s3269_s19 }
  0xc6   :  { %v326_v58 = vpop.permute.xlu1 %325 }
  0xc7   :  { %v336_v25 = vsel %vm335_vm3, %v3614_v61, %v326_v58  ;;  %v337_v28 = vsel %vm335_vm3, %v326_v58, %v3654_v45  ;;  %v420_v54 = vpop.permute.xlu2 %419 }
  0xc8   :  { %v3765_v50 = vperm.slane %v336_v25, 0  ;;  %v3767_v36 = vperm.slane %v337_v28, 0  ;;  %v440_v62 = vmul.f32 %v420_v54, %v3342_v4  ;;  %v424_v11 = vpop.permute.xlu0 %423  ;;  %v441_v33 = vmul.f32 %v420_v54, %v3360_v7 }
  0xc9   :  { %v442_v35 = vmul.f32 %v420_v54, %v3339_v3  ;;  %v443_v24 = vmul.f32 %v420_v54, %v3352_v5 }
  0xca   :  { %v371_v52 = vmul.f32 %v3765_v50, %v350_v40  ;;  %v372_v61 = vmul.f32 %v3767_v36, %v350_v40  ;;  %v383_v45 = vmul.f32 %v3765_v50, %v3723_v32  ;;  %v384_v51 = vmul.f32 %v3767_v36, %v3723_v32 }
  0xcb   :  { %v3779_v41 = vadd.f32 %v440_v62, %v394_v20  ;;  %v3781_v19 = vadd.f32 %v443_v24, %v397_v39  ;;  %v445_v62 = vmul.f32 %v420_v54, %v3424_v15  ;;  %v446_v24 = vmul.f32 %v424_v11, %v3342_v4 }
  0xcc   :  { %v395_v23 = vadd.f32 %v371_v52, %v299_v63  ;;  %v396_v38 = vadd.f32 %v372_v61, %v300_v27  ;;  %v3784_v17 = vadd.f32 %v383_v45, %v3670_v42  ;;  %v3787_v43 = vadd.f32 %v384_v51, %v3684_v49 }
  0xcd   :  { %5813 = vst [vmem:[#allocation4_spill] sm:$0xff] %v3781_v19  ;;  %717 = vperm.xlu2 %3228, %v3370_v8   ;;  %713 = vperm.xlu1 %3230, %v3375_v9   ;;  %v444_v9 = vmul.f32 %v420_v54, %v3336_v2  ;;  %v447_v51 = vmul.f32 %v424_v11, %v3360_v7 }
  0xce   :  { %v3791_v58 = vadd.f32 %v441_v33, %v395_v23  ;;  %v3793_v25 = vadd.f32 %v442_v35, %v396_v38  ;;  %v332_v20 = vpop.permute.xlu1 %331  ;;  %v449_v23 = vmul.f32 %v424_v11, %v3352_v5 }
  0xcf   :  { %v339_v39 = vsel %vm335_vm3, %v3695_v22, %v332_v20  ;;  %v340_v63 = vsel %vm335_vm3, %v332_v20, %v3690_v37  ;;  %v432_v42 = vpop.permute.xlu2 %431 }
  0xd0   :  { %5814 = vst [vmem:[#allocation5_spill] sm:$0xff] %v3791_v58  ;;  %v3799_v27 = vperm.slane %v339_v39, 0  ;;  %v3801_v49 = vperm.slane %v340_v63, 0  ;;  %v3803_v28 = vpop.permute.xlu0 %492 }
  0xd1   :  { %5815 = vst [vmem:[#allocation6_spill] sm:$0xff] %v3793_v25 }
  0xd2   :  { %v374_v33 = vmul.f32 %v3799_v27, %v350_v40  ;;  %v375_v35 = vmul.f32 %v3801_v49, %v350_v40  ;;  %v386_v22 = vmul.f32 %v3799_v27, %v3723_v32  ;;  %v387_v37 = vmul.f32 %v3801_v49, %v3723_v32  ;;  %v870_v40 = vld [vmem:[%s5785_s3 + $0x18] sm:$0xff] }
  0xd3   :  { %v448_v32 = vmul.f32 %v424_v11, %v3339_v3  ;;  %888 = vperm.xlu0 %3236, %v870_v40  }
  0xd4   :  { %v398_v52 = vadd.f32 %v374_v33, %v3709_v12  ;;  %v399_v61 = vadd.f32 %v375_v35, %v3712_v31  ;;  %v3817_v45 = vadd.f32 %v386_v22, %v3673_v47  ;;  %v3820_v54 = vadd.f32 %v387_v37, %v3676_v18 }
  0xd5   :  { %775 = vrot.lane.b32.xlu2 %v3360_v7, %s3271_s20  ;;  %773 = vrot.lane.b32.xlu1 %v3342_v4, %s3271_s20  ;;  %v450_v12 = vmul.f32 %v424_v11, %v3336_v2 }
  0xd6   :  { %v3832_v47 = vadd.f32 %v444_v9, %v398_v52  ;;  %v3834_v18 = vadd.f32 %v445_v62, %v399_v61  ;;  %v354_v31 = vpop.permute.xlu1 %353  ;;  %3232 = vset.pattern.permute.xlu2 %v3272_v46  ;;  %3231 = vset.pattern.permute.xlu1 %v3272_v46  ;;  %v451_v9 = vmul.f32 %v424_v11, %v3424_v15 }
  0xd7   :  { %v376_v38 = vmul.f32 %v3714_v14, %v354_v31  ;;  %v377_v20 = vmul.f32 %v3765_v50, %v354_v31  ;;  %v378_v39 = vmul.f32 %v3767_v36, %v354_v31  ;;  %v379_v63 = vmul.f32 %v3716_v56, %v354_v31  ;;  %v3843_v33 = vpop.permute.xlu2 %490 }
  0xd8   :  { %5816 = vst [vmem:[#allocation7_spill] sm:$0xff] %v3832_v47  ;;  %v380_v62 = vmul.f32 %v3799_v27, %v354_v31  ;;  %v381_v35 = vmul.f32 %v3801_v49, %v354_v31  ;;  %v502_v46 = vsel %vm500_vm4, %v3843_v33, %v3803_v28  ;;  %v499_v0 = vpop.permute.xlu0 %498 }
  0xd9   :  { %5817 = vst [vmem:[#allocation8_spill] sm:$0xff] %v3834_v18  ;;  %v400_v22 = vadd.f32 %v376_v38, %v3606_v1  ;;  %v401_v37 = vadd.f32 %v377_v20, %v3608_v16  ;;  %v402_v52 = vadd.f32 %v378_v39, %v3679_v48  ;;  %v403_v61 = vadd.f32 %v379_v63, %v3681_v29 }
  0xda   :  { %v404_v40 = vadd.f32 %v380_v62, %v3652_v44  ;;  %v405_v11 = vadd.f32 %v381_v35, %v3656_v53  ;;  %v458_v1 = vmul.f32 %v432_v42, %v3342_v4  ;;  %v459_v16 = vmul.f32 %v432_v42, %v3360_v7 }
  0xdb   :  { %v471_v18 = vadd.f32 %v447_v51, %v401_v37  ;;  %v3857_v47 = vadd.f32 %v446_v24, %v400_v22  ;;  %v3859_v31 = vadd.f32 %v448_v32, %v402_v52  ;;  %v3861_v58 = vadd.f32 %v449_v23, %v403_v61 }
  0xdc   :  { %v474_v19 = vadd.f32 %v450_v12, %v404_v40  ;;  %v475_v25 = vadd.f32 %v451_v9, %v405_v11  ;;  %v460_v44 = vmul.f32 %v432_v42, %v3339_v3  ;;  %v461_v53 = vmul.f32 %v432_v42, %v3352_v5 }
  0xdd   :  { %781 = vrot.lane.b32.xlu2 %v3336_v2, %s3271_s20  ;;  %779 = vrot.lane.b32.xlu1 %v3352_v5, %s3271_s20  ;;  %v462_v48 = vmul.f32 %v432_v42, %v3336_v2  ;;  %v463_v29 = vmul.f32 %v432_v42, %v3424_v15  ;;  %v513_v42 = vsel %vm5798_vm5, %v499_v0, 0.0 }
  0xde   :  { %v362_v24 = vpop.permute.xlu1 %361 }
  0xdf   :  { %v388_v51 = vmul.f32 %v3714_v14, %v362_v24  ;;  %v389_v32 = vmul.f32 %v3765_v50, %v362_v24  ;;  %v390_v23 = vmul.f32 %v3767_v36, %v362_v24  ;;  %v391_v12 = vmul.f32 %v3716_v56, %v362_v24  ;;  %v3877_v38 = vpop.permute.xlu2 %496 }
  0xe0   :  { %v392_v20 = vmul.f32 %v3799_v27, %v362_v24  ;;  %v393_v39 = vmul.f32 %v3801_v49, %v362_v24  ;;  %v505_v63 = vsel %vm500_vm4, %v3877_v38, %v499_v0  ;;  %v3890_v27 = vperm.slane %v502_v46, 0 }
  0xe1   :  { %v412_v9 = vadd.f32 %v388_v51, %v3739_v26  ;;  %v413_v14 = vadd.f32 %v389_v32, %v3742_v59  ;;  %v414_v50 = vadd.f32 %v390_v23, %v3745_v60  ;;  %v415_v36 = vadd.f32 %v391_v12, %v3748_v21  ;;  %v3900_v26 = vpop.permute.xlu0 %523  ;;  %v868_v12 = vld [vmem:[%s5785_s3 + $0x8] sm:$0xff] }
  0xe2   :  { %v416_v56 = vadd.f32 %v392_v20, %v3751_v30  ;;  %v417_v62 = vadd.f32 %v393_v39, %v3754_v55  ;;  %v3896_v22 = vperm.slane %v505_v63, 0  ;;  %v3898_v0 = vperm.slane %v513_v42, 0 }
  0xe3   :  { %v3892_v49 = vadd.f32 %v458_v1, %v412_v9  ;;  %v3894_v35 = vadd.f32 %v459_v16, %v413_v14  ;;  %v3902_v59 = vadd.f32 %v460_v44, %v414_v50  ;;  %v3904_v60 = vadd.f32 %v461_v53, %v415_v36 }
  0xe4   :  { %v3908_v21 = vadd.f32 %v462_v48, %v416_v56  ;;  %v3910_v30 = vadd.f32 %v463_v29, %v417_v62  ;;  %v549_v37 = vmul.f32 %v3890_v27, %v3900_v26  ;;  %v552_v52 = vmul.f32 %v3896_v22, %v3900_v26 }
  0xe5   :  { %803 = vperm.xlu2 %3232, %v3380_v10   ;;  %799 = vperm.xlu1 %3231, %v3357_v6   ;;  %v553_v61 = vmul.f32 %v3898_v0, %v3900_v26 }
  0xe7   :  { %v520_v55 = vpop.permute.xlu2 %519  ;;  %v428_v46 = vpop.permute.xlu1 %427 }
  0xe8   :  { %v543_v40 = vmul.f32 %v3890_v27, %v520_v55  ;;  %v546_v10 = vmul.f32 %v3896_v22, %v520_v55  ;;  %v547_v6 = vmul.f32 %v3898_v0, %v520_v55  ;;  %v452_v11 = vmul.f32 %v428_v46, %v3342_v4 }
  0xe9   :  { %v453_v1 = vmul.f32 %v428_v46, %v3360_v7  ;;  %v454_v16 = vmul.f32 %v428_v46, %v3339_v3  ;;  %v455_v44 = vmul.f32 %v428_v46, %v3352_v5  ;;  %v456_v53 = vmul.f32 %v428_v46, %v3336_v2  ;;  %v867_v2 = vld [vmem:[%s5785_s3] sm:$0xff] }
  0xea   :  { %v3926_v48 = vadd.f32 %v543_v40, %v471_v18  ;;  %v3928_v29 = vadd.f32 %v546_v10, %v474_v19  ;;  %v3930_v24 = vadd.f32 %v547_v6, %v475_v25  ;;  %v457_v51 = vmul.f32 %v428_v46, %v3424_v15  ;;  %v3954_v18 = vpop.permute.xlu0 %590 }
  0xeb   :  { %v476_v32 = vadd.f32 %v452_v11, %v3734_v57  ;;  %v477_v4 = vadd.f32 %v453_v1, %v3784_v17  ;;  %v478_v7 = vadd.f32 %v454_v16, %v3787_v43  ;;  %v479_v3 = vadd.f32 %v455_v44, %v3736_v34  ;;  %v5818_v44 = vld [vmem:[#allocation5_spill] sm:$0xff] }
  0xec   :  { %v480_v5 = vadd.f32 %v456_v53, %v3817_v45  ;;  %v481_v19 = vadd.f32 %v457_v51, %v3820_v54  ;;  %v5819_v51 = vld [vmem:[#allocation6_spill] sm:$0xff] }
  0xed   :  { %v3942_v25 = vadd.f32 %v549_v37, %v477_v4  ;;  %3234 = vset.pattern.permute.xlu2 %v5812_v13  ;;  %811 = vperm.xlu1 %3231, %v3370_v8   ;;  %v869_v8 = vld [vmem:[%s5785_s3 + $0x10] sm:$0xff] }
  0xee   :  { %v3946_v15 = vadd.f32 %v552_v52, %v480_v5  ;;  %v3948_v57 = vadd.f32 %v553_v61, %v481_v19  ;;  %873 = vperm.xlu2 %3234, %v867_v2   ;;  %v5820_v4 = vld [vmem:[#allocation4_spill] sm:$0xff] }
  0xef   :  { %v3950_v34 = vpop.permute.xlu2 %584  ;;  %v489_v17 = vpop.permute.xlu1 %488  ;;  %v5822_v5 = vld [vmem:[#allocation8_spill] sm:$0xff] }
  0xf0   :  { %v501_v43 = vsel %vm500_vm4, %v489_v17, %v3843_v33 }
  0xf1   :  { %v530_v45 = vperm.slane %v501_v43, 0  ;;  %v3273_v43 = vmov 0.0  }
  0xf2   :  { %v3979_v37 = vpop.permute.xlu0 %610 }
  0xf3   :  { %v542_v54 = vmul.f32 %v530_v45, %v520_v55  ;;  %v548_v23 = vmul.f32 %v530_v45, %v3900_v26 }
  0xf5   :  { %v3964_v20 = vadd.f32 %v542_v54, %v3857_v47  ;;  %v3966_v39 = vadd.f32 %v548_v23, %v476_v32  ;;  %3235 = vset.pattern.permute.xlu1 %v5812_v13  ;;  %v4006_v54 = vperm.slane %v3273_v43, 0 }
  0xf6   :  { %883 = vperm.xlu2 %3234, %v869_v8   ;;  %878 = vperm.xlu1 %3235, %v868_v12  }
  0xf7   :  { %v589_v33 = vpop.permute.xlu2 %588  ;;  %v495_v63 = vpop.permute.xlu1 %494 }
  0xf8   :  { %v503_v42 = vsel %vm500_vm4, %v3803_v28, %v495_v63  ;;  %v504_v9 = vsel %vm500_vm4, %v495_v63, %v3877_v38  ;;  %v599_v14 = vsel %vm596_vm6, %v589_v33, %v3954_v18 }
  0xf9   :  { %v532_v47 = vperm.slane %v503_v42, 0  ;;  %v533_v50 = vperm.slane %v504_v9, 0  ;;  %v3975_v36 = vperm.slane %v599_v14, 0 }
  0xfb   :  { %v544_v56 = vmul.f32 %v532_v47, %v520_v55  ;;  %v545_v13 = vmul.f32 %v533_v50, %v520_v55  ;;  %v550_v62 = vmul.f32 %v532_v47, %v3900_v26  ;;  %v551_v46 = vmul.f32 %v533_v50, %v3900_v26 }
  0xfc   :  { %v633_v55 = vmul.f32 %v3975_v36, %v3979_v37 }
  0xfd   :  { %v3982_v28 = vadd.f32 %v544_v56, %v3859_v31  ;;  %v3985_v38 = vadd.f32 %v545_v13, %v3861_v58  ;;  %v574_v52 = vadd.f32 %v550_v62, %v478_v7  ;;  %v3987_v61 = vadd.f32 %v551_v46, %v479_v3  ;;  %v5821_v3 = vld [vmem:[#allocation7_spill] sm:$0xff] }
  0xff   :  { %v595_v40 = vpop.permute.xlu2 %594  ;;  %v516_v10 = vpop.permute.xlu1 %515 }
 0x100   :  { %v536_v6 = vmul.f32 %v530_v45, %v516_v10  ;;  %v537_v11 = vmul.f32 %v3890_v27, %v516_v10  ;;  %v538_v26 = vmul.f32 %v532_v47, %v516_v10  ;;  %v539_v1 = vmul.f32 %v533_v50, %v516_v10 }
 0x101   :  { %v540_v16 = vmul.f32 %v3896_v22, %v516_v10  ;;  %v541_v31 = vmul.f32 %v3898_v0, %v516_v10 }
 0x102   :  { %v560_v58 = vadd.f32 %v536_v6, %v3779_v41  ;;  %v561_v53 = vadd.f32 %v537_v11, %v5818_v44  ;;  %v562_v32 = vadd.f32 %v538_v26, %v5819_v51  ;;  %v3998_v7 = vadd.f32 %v539_v1, %v5820_v4 }
 0x103   :  { %v564_v2 = vadd.f32 %v540_v16, %v5821_v3  ;;  %v4002_v19 = vadd.f32 %v541_v31, %v5822_v5 }
 0x104   :  { %v4004_v17 = vadd.f32 %v633_v55, %v562_v32 }
 0x107   :  { %v619_v23 = vpop.permute.xlu2 %618  ;;  %v528_v8 = vpop.permute.xlu1 %527 }
 0x108   :  { %v645_v41 = vmul.f32 %v3975_v36, %v619_v23  ;;  %v648_v12 = vmul.f32 %v4006_v54, %v619_v23  ;;  %v554_v63 = vmul.f32 %v530_v45, %v528_v8  ;;  %v555_v42 = vmul.f32 %v3890_v27, %v528_v8 }
 0x109   :  { %v556_v9 = vmul.f32 %v532_v47, %v528_v8  ;;  %v557_v14 = vmul.f32 %v533_v50, %v528_v8  ;;  %v558_v56 = vmul.f32 %v3896_v22, %v528_v8  ;;  %v559_v13 = vmul.f32 %v3898_v0, %v528_v8  ;;  %v4028_v0 = vpop.permute.xlu0 %681 }
 0x10a   :  { %v4013_v62 = vadd.f32 %v645_v41, %v574_v52  ;;  %v4016_v46 = vadd.f32 %v648_v12, %v3948_v57  ;;  %v578_v10 = vadd.f32 %v554_v63, %v3892_v49  ;;  %v579_v55 = vadd.f32 %v555_v42, %v3894_v35 }
 0x10b   :  { %v580_v6 = vadd.f32 %v556_v9, %v3902_v59  ;;  %v4022_v45 = vadd.f32 %v557_v14, %v3904_v60  ;;  %v582_v27 = vadd.f32 %v558_v56, %v3908_v21  ;;  %v4026_v22 = vadd.f32 %v559_v13, %v3910_v30 }
 0x10f   :  { %v680_v47 = vpop.permute.xlu2 %679  ;;  %v587_v50 = vpop.permute.xlu1 %586 }
 0x110   :  { %v597_v57 = vsel %vm596_vm6, %v3950_v34, %v587_v50  ;;  %v598_v49 = vsel %vm596_vm6, %v587_v50, %v589_v33 }
 0x111   :  { %v625_v35 = vperm.slane %v597_v57, 0  ;;  %v626_v52 = vperm.slane %v598_v49, 0  ;;  %v4048_v51 = vpop.permute.xlu0 %687 }
 0x113   :  { %v631_v59 = vmul.f32 %v625_v35, %v3979_v37  ;;  %v632_v60 = vmul.f32 %v626_v52, %v3979_v37  ;;  %v643_v11 = vmul.f32 %v625_v35, %v619_v23  ;;  %v644_v21 = vmul.f32 %v626_v52, %v619_v23 }
 0x115   :  { %v4035_v26 = vadd.f32 %v631_v59, %v560_v58  ;;  %v4037_v30 = vadd.f32 %v632_v60, %v561_v53  ;;  %v4040_v1 = vadd.f32 %v643_v11, %v3966_v39  ;;  %v4043_v16 = vadd.f32 %v644_v21, %v3942_v25 }
 0x117   :  { %v686_v34 = vpop.permute.xlu2 %685  ;;  %v593_v33 = vpop.permute.xlu1 %592 }
 0x118   :  { %v600_v31 = vsel %vm596_vm6, %v3954_v18, %v593_v33  ;;  %v601_v44 = vsel %vm596_vm6, %v593_v33, %v595_v40 }
 0x119   :  { %v608_v58 = vsel %vm5796_vm7, %v601_v44, 0.0  ;;  %v628_v53 = vperm.slane %v600_v31, 0 }
 0x11a   :  { %v629_v32 = vperm.slane %v608_v58, 0 }
 0x11b   :  { %v646_v4 = vmul.f32 %v628_v53, %v619_v23  ;;  %v634_v31 = vmul.f32 %v628_v53, %v3979_v37 }
 0x11c   :  { %v635_v39 = vmul.f32 %v629_v32, %v3979_v37  ;;  %v647_v3 = vmul.f32 %v629_v32, %v619_v23  ;;  %v4064_v23 = vpop.permute.xlu0 %709 }
 0x11d   :  { %v4053_v25 = vadd.f32 %v646_v4, %v3987_v61 }
 0x11e   :  { %v4055_v5 = vadd.f32 %v635_v39, %v564_v2  ;;  %v4058_v43 = vadd.f32 %v647_v3, %v3946_v15 }
 0x11f   :  { %v4060_v18 = vpop.permute.xlu2 %705  ;;  %v615_v40 = vpop.permute.xlu1 %614 }
 0x120   :  { %v637_v8 = vmul.f32 %v625_v35, %v615_v40  ;;  %v638_v41 = vmul.f32 %v626_v52, %v615_v40  ;;  %v639_v12 = vmul.f32 %v3975_v36, %v615_v40  ;;  %v640_v63 = vmul.f32 %v628_v53, %v615_v40 }
 0x121   :  { %v641_v42 = vmul.f32 %v629_v32, %v615_v40  ;;  %v642_v9 = vmul.f32 %v4006_v54, %v615_v40  ;;  %v658_v40 = vadd.f32 %v634_v31, %v3998_v7 }
 0x122   :  { %v661_v61 = vadd.f32 %v637_v8, %v3964_v20  ;;  %v4068_v2 = vadd.f32 %v638_v41, %v3926_v48  ;;  %v4071_v15 = vadd.f32 %v639_v12, %v3982_v28  ;;  %v664_v14 = vadd.f32 %v640_v63, %v3985_v38 }
 0x123   :  { %v4075_v56 = vadd.f32 %v641_v42, %v3928_v29  ;;  %v666_v13 = vadd.f32 %v642_v9, %v3930_v24  ;;  %v730_v8 = vmul.f32 %v4060_v18, %v4006_v54 }
 0x124   :  { %v4081_v11 = vpop.permute.xlu0 %777 }
 0x127   :  { %v4078_v50 = vpop.permute.xlu2 %717  ;;  %v623_v57 = vpop.permute.xlu1 %622 }
 0x128   :  { %v649_v49 = vmul.f32 %v625_v35, %v623_v57  ;;  %v650_v59 = vmul.f32 %v626_v52, %v623_v57  ;;  %v651_v20 = vmul.f32 %v3975_v36, %v623_v57  ;;  %v653_v60 = vmul.f32 %v629_v32, %v623_v57 }
 0x129   :  { %v692_v35 = vsel %vm691_vm8, %v680_v47, %v4028_v0  ;;  %v695_v36 = vsel %vm691_vm8, %v686_v34, %v4048_v51  ;;  %v736_v32 = vmul.f32 %v4064_v23, %v4006_v54 }
 0x12a   :  { %v673_v48 = vadd.f32 %v649_v49, %v578_v10  ;;  %v4083_v28 = vadd.f32 %v650_v59, %v579_v55  ;;  %v4085_v21 = vadd.f32 %v651_v20, %v580_v6  ;;  %v4087_v38 = vadd.f32 %v653_v60, %v582_v27 }
 0x12b   :  { %v636_v10 = vmul.f32 %v4006_v54, %v3979_v37  ;;  %v4097_v55 = vperm.slane %v692_v35, 0  ;;  %v4101_v33 = vperm.slane %v695_v36, 0  ;;  %v652_v37 = vmul.f32 %v628_v53, %v623_v57 }
 0x12c   :  { %v784_v52 = vpop.permute.xlu0 %783  ;;  %v748_v49 = vmul.f32 %v4078_v50, %v4006_v54  ;;  %v4165_v31 = vadd.f32 %v736_v32, %v666_v13 }
 0x12d   :  { %v660_v44 = vadd.f32 %v636_v10, %v4002_v19  ;;  %v725_v47 = vmul.f32 %v4097_v55, %v4060_v18  ;;  %v728_v58 = vmul.f32 %v4101_v33, %v4060_v18  ;;  %v731_v3 = vmul.f32 %v4097_v55, %v4064_v23 }
 0x12e   :  { %v654_v19 = vmul.f32 %v4006_v54, %v623_v57  ;;  %v734_v41 = vmul.f32 %v4101_v33, %v4064_v23  ;;  %v743_v9 = vmul.f32 %v4097_v55, %v4078_v50  ;;  %v746_v57 = vmul.f32 %v4101_v33, %v4078_v50 }
 0x12f   :  { %v4089_v29 = vpop.permute.xlu2 %775  ;;  %v684_v24 = vpop.permute.xlu1 %683  ;;  %v4133_v7 = vadd.f32 %v728_v58, %v658_v40  ;;  %v676_v59 = vadd.f32 %v652_v37, %v4022_v45  ;;  %v4154_v36 = vadd.f32 %v731_v3, %v661_v61 }
 0x130   :  { %v693_v4 = vsel %vm691_vm8, %v4028_v0, %v684_v24  ;;  %v694_v39 = vsel %vm691_vm8, %v684_v24, %v686_v34  ;;  %v4125_v0 = vadd.f32 %v725_v47, %v4035_v26  ;;  %v678_v20 = vadd.f32 %v654_v19, %v4026_v22 }
 0x131   :  { %v721_v34 = vperm.slane %v693_v4, 0  ;;  %v4127_v63 = vperm.slane %v694_v39, 0  ;;  %v787_v60 = vsel %vm785_vm9, %v4089_v29, %v4081_v11  ;;  %v4148_v24 = vadd.f32 %v730_v8, %v660_v44 }
 0x132   :  { %v4168_v47 = vperm.slane %v787_v60, 0  ;;  %v4177_v39 = vadd.f32 %v746_v57, %v676_v59  ;;  %v4179_v3 = vadd.f32 %v748_v49, %v678_v20 }
 0x133   :  { %v726_v10 = vmul.f32 %v721_v34, %v4060_v18  ;;  %v727_v45 = vmul.f32 %v4127_v63, %v4060_v18  ;;  %v732_v44 = vmul.f32 %v721_v34, %v4064_v23  ;;  %v733_v58 = vmul.f32 %v4127_v63, %v4064_v23 }
 0x134   :  { %v4122_v12 = vpop.permute.xlu0 %807  ;;  %v744_v4 = vmul.f32 %v721_v34, %v4078_v50  ;;  %v745_v13 = vmul.f32 %v4127_v63, %v4078_v50 }
 0x135   :  { %v4152_v35 = vmul.f32 %v4122_v12, %v4006_v54  ;;  %v832_v37 = vmul.f32 %v4168_v47, %v4122_v12 }
 0x136   :  { %v4209_v59 = vadd.f32 %v744_v4, %v4083_v28  ;;  %v4216_v20 = vadd.f32 %v745_v13, %v4085_v21 }
 0x137   :  { %v4099_v6 = vpop.permute.xlu2 %781  ;;  %v690_v27 = vpop.permute.xlu1 %689 }
 0x138   :  { %v696_v26 = vsel %vm691_vm8, %v4048_v51, %v690_v27  ;;  %v4156_v51 = vadd.f32 %v734_v41, %v664_v14  ;;  %v30_v27 = vld [vmem:[%s5791_s1] sm:$0x3f]  ;;  %v790_v61 = vsel %vm785_vm9, %v4099_v6, %v784_v52  ;;  %v4172_v14 = vadd.f32 %v743_v9, %v673_v48  ;;  %s4358_s1 = smov 0  }
 0x139   :  { %v703_v22 = vsel %vm5797_vm10, %v696_v26, 0.0  ;;  %v4185_v19 = vperm.slane %v30_v27, 0  ;;  %v4188_v48 = vadd.f32 %v726_v10, %v4037_v30  ;;  %v4191_v52 = vadd.f32 %v727_v45, %v4004_v17 }
 0x13a   :  { %v724_v32 = vperm.slane %v703_v22, 0  ;;  %v797_v40 = vsel %vm5795_vm11, %v790_v61, 0.0  ;;  %v4196_v9 = vadd.f32 %v732_v44, %v4068_v2  ;;  %v4206_v17 = vadd.f32 %v733_v58, %v4071_v15 }
 0x13b   :  { %v4220_v10 = vperm.slane %v797_v40, 0  ;;  %v4224_v45 = vperm.slane %v30_v27, 1  ;;  %v4226_v28 = vperm.slane %v30_v27, 2  ;;  %v4231_v21 = vperm.slane %v30_v27, 3 }
 0x13c   :  { %v729_v60 = vmul.f32 %v724_v32, %v4060_v18  ;;  %v4235_v44 = vperm.slane %v30_v27, 4  ;;  %v4237_v61 = vperm.slane %v30_v27, 5  ;;  %v735_v4 = vmul.f32 %v724_v32, %v4064_v23 }
 0x13d   :  { %v835_v22 = vmul.f32 %v4220_v10, %v4122_v12 }
 0x13f   :  { %v4129_v53 = vpop.permute.xlu2 %803  ;;  %v4131_v42 = vpop.permute.xlu1 %713 }
 0x140   :  { %v738_v8 = vmul.f32 %v721_v34, %v4131_v42  ;;  %v741_v57 = vmul.f32 %v724_v32, %v4131_v42  ;;  %v742_v26 = vmul.f32 %v4131_v42, %v4006_v54  ;;  %v737_v2 = vmul.f32 %v4097_v55, %v4131_v42 }
 0x142   :  { %v762_v55 = vadd.f32 %v738_v8, %v4043_v16  ;;  %v765_v18 = vadd.f32 %v741_v57, %v4058_v43  ;;  %v761_v58 = vadd.f32 %v737_v2, %v4040_v1  ;;  %v753_v16 = vadd.f32 %v729_v60, %v4055_v5 }
 0x143   :  { %v739_v43 = vmul.f32 %v4127_v63, %v4131_v42 }
 0x144   :  { %v856_v8 = vadd.f32 %v832_v37, %v762_v55 }
 0x147   :  { %v774_v41 = vpop.permute.xlu1 %773 }
 0x148   :  { %v786_v30 = vsel %vm785_vm9, %v774_v41, %v4089_v29  ;;  %v4203_v49 = vpop.permute.xlu2 %873  ;;  %v747_v29 = vmul.f32 %v724_v32, %v4078_v50  ;;  %v766_v50 = vadd.f32 %v742_v26, %v4016_v46  ;;  %v740_v46 = vmul.f32 %v4101_v33, %v4131_v42 }
 0x149   :  { %v4213_v34 = vperm.slane %v786_v30, 0  ;;  %v859_v32 = vadd.f32 %v835_v22, %v765_v18  ;;  %v826_v33 = vmul.f32 %v4168_v47, %v4129_v53  ;;  %v829_v42 = vmul.f32 %v4220_v10, %v4129_v53 }
 0x14a   :  { %v4243_v13 = vadd.f32 %v747_v29, %v4087_v38  ;;  %v860_v38 = vadd.f32 %v4152_v35, %v766_v50  ;;  %v763_v30 = vadd.f32 %v739_v43, %v4013_v62  ;;  %v764_v2 = vadd.f32 %v740_v46, %v4053_v25 }
 0x14b   :  { %v831_v15 = vmul.f32 %v4213_v34, %v4122_v12  ;;  %v4270_v22 = vmul.f32 %v4129_v53, %v4006_v54 }
 0x14d   :  { %v855_v27 = vadd.f32 %v831_v15, %v761_v58  ;;  %v759_v58 = vadd.f32 %v735_v4, %v4075_v56 }
 0x14f   :  { %v780_v40 = vpop.permute.xlu1 %779 }
 0x150   :  { %v788_v1 = vsel %vm785_vm9, %v4081_v11, %v780_v40  ;;  %v789_v23 = vsel %vm785_vm9, %v780_v40, %v4099_v6  ;;  %v884_v5 = vpop.permute.xlu2 %883 }
 0x151   :  { %v4254_v41 = vperm.slane %v788_v1, 0  ;;  %v4256_v57 = vperm.slane %v789_v23, 0  ;;  %v903_v63 = vadd.f32 %v884_v5, %v855_v27  ;;  %v904_v26 = vadd.f32 %v884_v5, %v856_v8 }
 0x152   :  { %v907_v11 = vadd.f32 %v884_v5, %v859_v32  ;;  %v908_v37 = vadd.f32 %v884_v5, %v860_v38  ;;  %v4278_v8 = vadd.f32 %v826_v33, %v4196_v9  ;;  %v4280_v1 = vadd.f32 %v829_v42, %v759_v58 }
 0x153   :  { %v833_v6 = vmul.f32 %v4254_v41, %v4122_v12  ;;  %v834_v35 = vmul.f32 %v4256_v57, %v4122_v12  ;;  %v927_v60 = vmax.f32 %v903_v63, 0.0  ;;  %v928_v29 = vmax.f32 %v904_v26, 0.0 }
 0x154   :  { %v931_v15 = vmax.f32 %v907_v11, 0.0  ;;  %v932_v55 = vmax.f32 %v908_v37, 0.0 }
 0x155   :  { %v857_v18 = vadd.f32 %v833_v6, %v763_v30  ;;  %v858_v50 = vadd.f32 %v834_v35, %v764_v2  ;;  %v964_v40 = vmul.f32 %v4185_v19, %v927_v60  ;;  %v965_v12 = vmul.f32 %v4224_v45, %v928_v29 }
 0x156   :  { %v968_v62 = vmul.f32 %v4235_v44, %v931_v15  ;;  %v969_v25 = vmul.f32 %v4237_v61, %v932_v55 }
 0x157   :  { %v905_v43 = vadd.f32 %v884_v5, %v857_v18  ;;  %v906_v46 = vadd.f32 %v884_v5, %v858_v50  ;;  %v800_v27 = vpop.permute.xlu1 %799  ;;  %v982_v4 = vpack.c.bf16 %v965_v12, %v964_v40  ;;  %v828_v40 = vmul.f32 %v4256_v57, %v4129_v53 }
 0x158   :  { %v984_v23 = vpack.c.bf16 %v969_v25, %v968_v62  ;;  %v819_v32 = vmul.f32 %v4213_v34, %v800_v27  ;;  %v820_v38 = vmul.f32 %v4168_v47, %v800_v27  ;;  %v821_v26 = vmul.f32 %v4254_v41, %v800_v27 }
 0x159   :  { %v929_v63 = vmax.f32 %v905_v43, 0.0  ;;  %v930_v5 = vmax.f32 %v906_v46, 0.0  ;;  %v822_v9 = vmul.f32 %v4256_v57, %v800_v27  ;;  %997 = vst [vmem:[#allocation2 + $0x30] sm:$0xff] %v982_v4  ;;  %v823_v33 = vmul.f32 %v4220_v10, %v800_v27 }
 0x15a   :  { %v824_v42 = vmul.f32 %v800_v27, %v4006_v54  ;;  %v843_v11 = vadd.f32 %v819_v32, %v4125_v0  ;;  %v844_v37 = vadd.f32 %v820_v38, %v4188_v48  ;;  %999 = vst.msk [vmem:[#allocation2 + $0x40] sm:$0xff] %vm4284_vm14, %v984_v23  ;;  %v845_v30 = vadd.f32 %v821_v26, %v4191_v52 }
 0x15b   :  { %v966_v6 = vmul.f32 %v4226_v28, %v929_v63  ;;  %v967_v35 = vmul.f32 %v4231_v21, %v930_v5  ;;  %v846_v2 = vadd.f32 %v822_v9, %v4133_v7  ;;  %v847_v60 = vadd.f32 %v823_v33, %v753_v16 }
 0x15c   :  { %v848_v29 = vadd.f32 %v824_v42, %v4148_v24  ;;  %v891_v15 = vadd.f32 %v4203_v49, %v843_v11  ;;  %v892_v0 = vadd.f32 %v4203_v49, %v844_v37  ;;  %v825_v48 = vmul.f32 %v4213_v34, %v4129_v53  ;;  %v889_v37 = vpop.permute.xlu0 %888 }
 0x15d   :  { %v983_v55 = vpack.c.bf16 %v967_v35, %v966_v6  ;;  %v893_v18 = vadd.f32 %v4203_v49, %v845_v30  ;;  %v894_v50 = vadd.f32 %v4203_v49, %v846_v2  ;;  %v895_v58 = vadd.f32 %v4203_v49, %v847_v60 }
 0x15e   :  { %v896_v52 = vadd.f32 %v4203_v49, %v848_v29  ;;  %v915_v7 = vmax.f32 %v891_v15, 0.0  ;;  %v916_v16 = vmax.f32 %v892_v0, 0.0  ;;  %v827_v24 = vmul.f32 %v4254_v41, %v4129_v53 }
 0x15f   :  { %998 = vst [vmem:[#allocation2 + $0x38] sm:$0xff] %v983_v55  ;;  %v917_v12 = vmax.f32 %v893_v18, 0.0  ;;  %v918_v62 = vmax.f32 %v894_v50, 0.0  ;;  %v812_v25 = vpop.permute.xlu1 %811  ;;  %v919_v43 = vmax.f32 %v895_v58, 0.0  ;;  %v852_v55 = vadd.f32 %v828_v40, %v4156_v51 }
 0x160   :  { %v920_v46 = vmax.f32 %v896_v52, 0.0  ;;  %v952_v27 = vmul.f32 %v4185_v19, %v915_v7  ;;  %v953_v4 = vmul.f32 %v4224_v45, %v916_v16  ;;  %v837_v32 = vmul.f32 %v4213_v34, %v812_v25 }
 0x161   :  { %v954_v49 = vmul.f32 %v4226_v28, %v917_v12  ;;  %v955_v23 = vmul.f32 %v4231_v21, %v918_v62  ;;  %v838_v38 = vmul.f32 %v4168_v47, %v812_v25  ;;  %v956_v53 = vmul.f32 %v4235_v44, %v919_v43 }
 0x162   :  { %v957_v63 = vmul.f32 %v4237_v61, %v920_v46  ;;  %v976_v5 = vpack.c.bf16 %v953_v4, %v952_v27  ;;  %v839_v26 = vmul.f32 %v4254_v41, %v812_v25  ;;  %v840_v33 = vmul.f32 %v4256_v57, %v812_v25 }
 0x163   :  { %v977_v9 = vpack.c.bf16 %v955_v23, %v954_v49  ;;  %v841_v42 = vmul.f32 %v4220_v10, %v812_v25  ;;  %v842_v11 = vmul.f32 %v812_v25, %v4006_v54  ;;  %v861_v34 = vadd.f32 %v837_v32, %v4172_v14 }
 0x164   :  { %v978_v6 = vpack.c.bf16 %v957_v63, %v956_v53  ;;  %988 = vst [vmem:[#allocation2] sm:$0xff] %v976_v5  ;;  %v862_v47 = vadd.f32 %v838_v38, %v4209_v59  ;;  %v863_v35 = vadd.f32 %v839_v26, %v4216_v20  ;;  %v864_v30 = vadd.f32 %v840_v33, %v4177_v39 }
 0x165   :  { %989 = vst [vmem:[#allocation2 + $0x8] sm:$0xff] %v977_v9  ;;  %v865_v41 = vadd.f32 %v841_v42, %v4243_v13  ;;  %v866_v57 = vadd.f32 %v842_v11, %v4179_v3  ;;  %v854_v10 = vadd.f32 %v4270_v22, %v4165_v31  ;;  %v909_v54 = vadd.f32 %v889_v37, %v861_v34 }
 0x166   :  { %993 = vst.msk [vmem:[#allocation2 + $0x10] sm:$0xff] %vm4284_vm14, %v978_v6  ;;  %v910_v2 = vadd.f32 %v889_v37, %v862_v47  ;;  %v911_v14 = vadd.f32 %v889_v37, %v863_v35  ;;  %v849_v59 = vadd.f32 %v825_v48, %v4154_v36  ;;  %v912_v60 = vadd.f32 %v889_v37, %v864_v30 }
 0x167   :  { %v913_v20 = vadd.f32 %v889_v37, %v865_v41  ;;  %v914_v29 = vadd.f32 %v889_v37, %v866_v57  ;;  %v851_v39 = vadd.f32 %v827_v24, %v4206_v17  ;;  %v933_v15 = vmax.f32 %v909_v54, 0.0 }
 0x168   :  { %v934_v13 = vmax.f32 %v910_v2, 0.0  ;;  %v935_v0 = vmax.f32 %v911_v14, 0.0  ;;  %v879_v3 = vpop.permute.xlu1 %878  ;;  %v936_v31 = vmax.f32 %v912_v60, 0.0 }
 0x169   :  { %v937_v22 = vmax.f32 %v913_v20, 0.0  ;;  %v938_v18 = vmax.f32 %v914_v29, 0.0  ;;  %v897_v50 = vadd.f32 %v879_v3, %v849_v59  ;;  %v970_v58 = vmul.f32 %v4185_v19, %v933_v15 }
 0x16a   :  { %v971_v52 = vmul.f32 %v4224_v45, %v934_v13  ;;  %v972_v36 = vmul.f32 %v4226_v28, %v935_v0  ;;  %v898_v48 = vadd.f32 %v879_v3, %v4278_v8  ;;  %v973_v17 = vmul.f32 %v4231_v21, %v936_v31 }
 0x16b   :  { %v974_v7 = vmul.f32 %v4235_v44, %v937_v22  ;;  %v975_v16 = vmul.f32 %v4237_v61, %v938_v18  ;;  %v899_v24 = vadd.f32 %v879_v3, %v851_v39  ;;  %v900_v40 = vadd.f32 %v879_v3, %v852_v55 }
 0x16c   :  { %v985_v51 = vpack.c.bf16 %v971_v52, %v970_v58  ;;  %v901_v12 = vadd.f32 %v879_v3, %v4280_v1  ;;  %v902_v62 = vadd.f32 %v879_v3, %v854_v10  ;;  %v986_v25 = vpack.c.bf16 %v973_v17, %v972_v36 }
 0x16d   :  { %v987_v43 = vpack.c.bf16 %v975_v16, %v974_v7  ;;  %v921_v46 = vmax.f32 %v897_v50, 0.0  ;;  %v922_v27 = vmax.f32 %v898_v48, 0.0  ;;  %v923_v4 = vmax.f32 %v899_v24, 0.0 }
 0x16e   :  { %1000 = vst [vmem:[#allocation2 + $0x48] sm:$0xff] %v985_v51  ;;  %v924_v49 = vmax.f32 %v900_v40, 0.0  ;;  %v925_v8 = vmax.f32 %v901_v12, 0.0  ;;  %v926_v23 = vmax.f32 %v902_v62, 0.0 }
 0x16f   :  { %1001 = vst [vmem:[#allocation2 + $0x50] sm:$0xff] %v986_v25  ;;  %v958_v32 = vmul.f32 %v4185_v19, %v921_v46  ;;  %v959_v38 = vmul.f32 %v4224_v45, %v922_v27  ;;  %v960_v1 = vmul.f32 %v4226_v28, %v923_v4 }
 0x170   :  { %1002 = vst.msk [vmem:[#allocation2 + $0x58] sm:$0xff] %vm4284_vm14, %v987_v43  ;;  %v961_v53 = vmul.f32 %v4231_v21, %v924_v49  ;;  %v962_v63 = vmul.f32 %v4235_v44, %v925_v8  ;;  %v963_v5 = vmul.f32 %v4237_v61, %v926_v23 }
 0x171   :  { %v979_v26 = vpack.c.bf16 %v959_v38, %v958_v32 }
 0x172   :  { %v980_v9 = vpack.c.bf16 %v961_v53, %v960_v1  ;;  %v981_v33 = vpack.c.bf16 %v963_v5, %v962_v63 }
 0x173   :  { %994 = vst [vmem:[#allocation2 + $0x18] sm:$0xff] %v979_v26 }
 0x174   :  { %995 = vst [vmem:[#allocation2 + $0x20] sm:$0xff] %v980_v9 }
 0x175   :  { %996 = vst.msk [vmem:[#allocation2 + $0x28] sm:$0xff] %vm4284_vm14, %v981_v33 }
 0x176 LB: > { %v2984_v42 = vld [vmem:[#allocation2 + $0x30] sm:$0xf]  ;;  %v3142_v11 = vld [vmem:[#allocation2 + $0x44] sm:$0xf0]  ;;  %s3274_s30 = smov 1   ;;  %s3275_s9 = smov 109   ;;  %vm4446_vm15 = vmneg %vm335_vm3  ;;  %s3254_s1 = sphi %s4358_s1, %s1008_s1  }
 0x177   : > { %v4363_v37 = vor.u32 %v3142_v11, %v2984_v42  ;;  %v3139_v6 = vld [vmem:[#allocation2 + $0x34] sm:$0xf]  ;;  %s3276_s10 = smov 110   ;;  %v2986_v34 = vld [vmem:[#allocation2 + $0x48] sm:$0xf0]  ;;  %s3277_s11 = smov 111  }
 0x178   : > { %v2964_v47 = vld [vmem:[#allocation2] sm:$0xf]  ;;  %v4371_v30 = vor.u32 %v3139_v6, %v2986_v34  ;;  %v3133_v57 = vld [vmem:[#allocation2 + $0x4] sm:$0xf]  ;;  %v2992_v2 = vld [vmem:[#allocation2 + $0x38] sm:$0xf] }
 0x179   : > { %1228 = vrot.lane.b32.xlu2 %v4363_v37, %s3274_s30  ;;  %1428 = vrot.lane.b32.xlu1 %v4363_v37, %s3275_s9  ;;  %v3143_v14 = vld [vmem:[#allocation2 + $0x4c] sm:$0xf0]  ;;  %s3278_s12 = smov 17   ;;  %v2972_v60 = vld [vmem:[#allocation2 + $0x8] sm:$0xf]  ;;  %s3279_s13 = smov 127  }
 0x17a   : > { %1379 = vrot.lane.b32.xlu0 %v4363_v37, %s3276_s10  ;;  %v3136_v35 = vld [vmem:[#allocation2 + $0x14] sm:$0xf0]  ;;  %v2966_v10 = vld [vmem:[#allocation2 + $0x18] sm:$0xf0]  ;;  %v4395_v59 = vor.u32 %v3143_v14, %v2992_v2  ;;  %s3280_s14 = smov 18   ;;  %s3281_s21 = smov 19  }
 0x17b   : > { %v4373_v41 = vor.u32 %v3136_v35, %v2964_v47  ;;  %v4381_v54 = vor.u32 %v3133_v57, %v2966_v10  ;;  %v3137_v20 = vld [vmem:[#allocation2 + $0x1c] sm:$0xf0]  ;;  %v5825_v39 = vmov 0  ;;  %v3140_v13 = vld [vmem:[#allocation2 + $0x3c] sm:$0xf]  ;;  %vm5828_vm2 = vcmask 138240  }
 0x17c   : > { %v4409_v29 = vor.u32 %v3137_v20, %v2972_v60  ;;  %v5826_v39 = vsel %vm4446_vm15, 4294967295, %v5825_v39  ;;  %v2994_v0 = vld [vmem:[#allocation2 + $0x50] sm:$0xf0]  ;;  %v3134_v31 = vld [vmem:[#allocation2 + $0xc] sm:$0xf]  ;;  %vm4520_vm12 = vmneg %vm5828_vm2  ;;  %v5829_v32 = vmov 0 }
 0x17d   : > { %5827 = vst [vmem:[#allocation5_spill] sm:$0xff] %v5826_v39  ;;  %v4463_v55 = vor.u32 %v3140_v13, %v2994_v0  ;;  %v2974_v22 = vld [vmem:[#allocation2 + $0x20] sm:$0xf0]  ;;  %v3000_v27 = vld [vmem:[#allocation2 + $0x40] sm:$0xf]  ;;  %v5830_v32 = vsel %vm4520_vm12, 4294967295, %v5829_v32 }
 0x17e   : > { %v4473_v50 = vor.u32 %v3134_v31, %v2974_v22  ;;  %v3144_v4 = vld [vmem:[#allocation2 + $0x54] sm:$0xf0]  ;;  %5831 = vst [vmem:[#allocation6_spill] sm:$0xff] %v5830_v32  ;;  %v2980_v53 = vld [vmem:[#allocation2 + $0x10] sm:$0xf]  ;;  %s3145_s22 = smul.u32 48, %s3254_s1 }
 0x17f   : > { %v4517_v23 = vor.u32 %v3144_v4, %v3000_v27  ;;  %v3138_v63 = vld [vmem:[#allocation2 + $0x24] sm:$0xf0]  ;;  %vm5807_vm13 = vcmask 261120   ;;  %vm5832_vm1 = vcmask 146432   ;;  %vm5836_vm0 = vcmask 154624   ;;  %s3062_s26 = sshll.u32 %s3254_s1, 5 }
 0x180   : > { %v4544_v33 = vor.u32 %v3138_v63, %v2980_v53  ;;  %s4565_s25 = scalar_lea.vmem %s5786_s4, %s3145_s22  ;;  %vm4607_vm11 = vmneg %vm5832_vm1  ;;  %v3006_v53 = vld [vmem:[#allocation2 + $0x58] sm:$0xf0]  ;;  %vm5840_vm10 = vcmask 965632   ;;  %vm5841_vm5 = vcmask 56320   ;;  %s5179_s3 = scalar_lea.vmem %s5787_s5, %s3062_s26 }
 0x181   : > { %1430 = vrot.lane.b32.xlu1 %v4371_v30, %s3275_s9  ;;  %1367 = vrot.lane.b32.xlu2 %v4373_v41, %s3276_s10  ;;  %v3020_v2 = vld [vmem:[%s4565_s25 + $0x8] sm:$0xf]  ;;  %v3148_v14 = vld [vmem:[%s4565_s25 + $0x10] sm:$0xf0]  ;;  %vm4638_vm7 = vmneg %vm5836_vm0  ;;  %s1008_s1 = sadd.s32 1, %s3254_s1  }
 0x182   : > { %1381 = vrot.lane.b32.xlu0 %v4371_v30, %s3276_s10  ;;  %v4579_v20 = vor.u32 %v3148_v14, %v3020_v2  ;;  %v3147_v4 = vld [vmem:[%s4565_s25 + $0x8] sm:$0xf0]  ;;  %v3135_v2 = vld [vmem:[#allocation2 + $0x14] sm:$0xf]  ;;  %v3002_v14 = vld [vmem:[#allocation2 + $0x28] sm:$0xf0] }
 0x183   : > { %p1005_p0 = scmp.ge.s32.totalorder %s1008_s1, 3  }
 0x189   : > { %1416 = vrot.lane.b32.xlu1 %v4373_v41, %s3275_s9  ;;  %1418 = vrot.lane.b32.xlu2 %v4381_v54, %s3275_s9 }
 0x18a   : > { %1369 = vrot.lane.b32.xlu0 %v4381_v54, %s3276_s10 }
 0x191   : > { %1330 = vrot.lane.b32.xlu1 %v4363_v37, %s3277_s11  ;;  %1332 = vrot.lane.b32.xlu2 %v4371_v30, %s3277_s11 }
 0x192   : > { %1216 = vrot.lane.b32.xlu0 %v4373_v41, %s3274_s30 }
 0x199   : > { %1383 = vrot.lane.b32.xlu1 %v4395_v59, %s3276_s10  ;;  %1175 = vrot.lane.b32.xlu2 %v4363_v37, %s3278_s12 }
 0x19a   : > { %1230 = vrot.lane.b32.xlu0 %v4371_v30, %s3274_s30 }
 0x1a1   : > { %1320 = vrot.lane.b32.xlu1 %v4381_v54, %s3277_s11  ;;  %1218 = vrot.lane.b32.xlu2 %v4381_v54, %s3274_s30 }
 0x1a2   : > { %1318 = vrot.lane.b32.xlu0 %v4373_v41, %s3277_s11 }
 0x1a9   : > { %1165 = vrot.lane.b32.xlu1 %v4373_v41, %s3278_s12  ;;  %1279 = vrot.lane.b32.xlu2 %v4363_v37, %s3279_s13 }
 0x1aa   : > { %1371 = vrot.lane.b32.xlu0 %v4409_v29, %s3276_s10 }
 0x1b1   : > { %1177 = vrot.lane.b32.xlu1 %v4371_v30, %s3278_s12  ;;  %1334 = vrot.lane.b32.xlu2 %v4395_v59, %s3277_s11 }
 0x1b2   : > { %1281 = vrot.lane.b32.xlu0 %v4371_v30, %s3279_s13 }
 0x1b9   : > { %1267 = vrot.lane.b32.xlu1 %v4373_v41, %s3279_s13  ;;  %1269 = vrot.lane.b32.xlu2 %v4381_v54, %s3279_s13 }
 0x1ba   : > { %1130 = vrot.lane.b32.xlu0 %v4363_v37, %s3280_s14 }
 0x1c1   : > { %1322 = vrot.lane.b32.xlu1 %v4409_v29, %s3277_s11  ;;  %1120 = vrot.lane.b32.xlu2 %v4373_v41, %s3280_s14 }
 0x1c2   : > { %1167 = vrot.lane.b32.xlu0 %v4381_v54, %s3278_s12 }
 0x1c9   : > { %1283 = vrot.lane.b32.xlu1 %v4395_v59, %s3279_s13  ;;  %1084 = vrot.lane.b32.xlu2 %v4363_v37, %s3281_s21 }
 0x1ca   : > { %1132 = vrot.lane.b32.xlu0 %v4371_v30, %s3280_s14 }
 0x1d1   : > { %1271 = vrot.lane.b32.xlu1 %v4409_v29, %s3279_s13  ;;  %1074 = vrot.lane.b32.xlu2 %v4373_v41, %s3281_s21 }
 0x1d2   : > { %1122 = vrot.lane.b32.xlu0 %v4381_v54, %s3280_s14 }
 0x1d3   : > { %v4452_v15 = vpop.permute.xlu2 %1228 }
 0x1d4   : > { %3035 = vmatpush.bf16.msk.msra.mxu0 %vm4446_vm15, %v4452_v15 }
 0x1d9   : > { %1086 = vrot.lane.b32.xlu1 %v4371_v30, %s3281_s21  ;;  %1220 = vrot.lane.b32.xlu2 %v4409_v29, %s3274_s30 }
 0x1da   : > { %1232 = vrot.lane.b32.xlu0 %v4395_v59, %s3274_s30 }
 0x1db   : > { %v1368_v3 = vpop.permute.xlu2 %1367 }
 0x1e1   : > { %1179 = vrot.lane.b32.xlu1 %v4395_v59, %s3278_s12  ;;  %1385 = vrot.lane.b32.xlu2 %v4463_v55, %s3276_s10 }
 0x1e2   : > { %1076 = vrot.lane.b32.xlu0 %v4381_v54, %s3281_s21 }
 0x1e3   : > { %v4471_v18 = vpop.permute.xlu2 %1418 }
 0x1e9   : > { %1373 = vrot.lane.b32.xlu1 %v4473_v50, %s3276_s10  ;;  %1134 = vrot.lane.b32.xlu2 %v4395_v59, %s3280_s14 }
 0x1ea   : > { %1169 = vrot.lane.b32.xlu0 %v4409_v29, %s3278_s12 }
 0x1eb   : > { %v1429_v58 = vpop.permute.xlu1 %1428  ;;  %v4481_v52 = vpop.permute.xlu2 %1332 }
 0x1ec   : > { %v1380_v36 = vpop.permute.xlu0 %1379 }
 0x1f1   : > { %1124 = vrot.lane.b32.xlu1 %v4409_v29, %s3280_s14  ;;  %1324 = vrot.lane.b32.xlu2 %v4473_v50, %s3277_s11 }
 0x1f2   : > { %1336 = vrot.lane.b32.xlu0 %v4463_v55, %s3277_s11 }
 0x1f3   : > { %v4489_v48 = vpop.permute.xlu1 %1430  ;;  %v4491_v17 = vpop.permute.xlu2 %1175 }
 0x1f4   : > { %v1382_v7 = vpop.permute.xlu0 %1381  ;;  %v1446_v16 = vsel %vm785_vm9, %v1429_v58, %v4489_v48  ;;  %v5833_v58 = vmov 0 }
 0x1f5   : > { %v1397_v24 = vsel %vm691_vm8, %v1380_v36, %v1382_v7  ;;  %1558 = vmatpush.bf16.msra.mxu2 %v1446_v16  ;;  %v5834_v58 = vsel %vm4607_vm11, 4294967295, %v5833_v58  ;;  %v3032_v16 = vld [vmem:[%s4565_s25 + $0x20] sm:$0xf] }
 0x1f6   : > { %1533 = vmatpush.bf16.msra.mxu1 %v1397_v24  ;;  %5835 = vst [vmem:[#allocation4_spill] sm:$0xff] %v5834_v58  ;;  %v3151_v24 = vld [vmem:[%s4565_s25 + $0x28] sm:$0xf0] }
 0x1f9   : > { %1285 = vrot.lane.b32.xlu1 %v4463_v55, %s3279_s13  ;;  %1432 = vrot.lane.b32.xlu2 %v4395_v59, %s3275_s9 }
 0x1fa   : > { %1088 = vrot.lane.b32.xlu0 %v4395_v59, %s3281_s21 }
 0x1fb   : > { %v1417_v51 = vpop.permute.xlu1 %1416  ;;  %v4502_v40 = vpop.permute.xlu2 %1218 }
 0x1fc   : > { %v1370_v12 = vpop.permute.xlu0 %1369  ;;  %v1441_v62 = vsel %vm785_vm9, %v1417_v51, %v4471_v18  ;;  %v4619_v51 = vor.u32 %v3151_v24, %v3032_v16 }
 0x1fd   : > { %v1392_v25 = vsel %vm691_vm8, %v1368_v3, %v1370_v12  ;;  %1559 = vmatpush.bf16.msra.mxu2 %v1441_v62 }
 0x1fe   : > { %1534 = vmatpush.bf16.msra.mxu1 %v1392_v25  ;;  %v5837_v25 = vmov 0 }
 0x1ff   : > { %v5838_v25 = vsel %vm4638_vm7, 4294967295, %v5837_v25 }
 0x200   : > { %3050 = vmatmul.msk.bf16.vlgmr.msra.gmra.mxu2 %vm5807_vm13, %v4579_v20  ;;  %5839 = vst [vmem:[#allocation7_spill] sm:$0xff] %v5838_v25 }
 0x201   : > { %1273 = vrot.lane.b32.xlu1 %v4473_v50, %s3279_s13  ;;  %1420 = vrot.lane.b32.xlu2 %v4409_v29, %s3275_s9 }
 0x202   : > { %1078 = vrot.lane.b32.xlu0 %v4409_v29, %s3281_s21 }
 0x203   : > { %v1331_v43 = vpop.permute.xlu1 %1330  ;;  %v1280_v46 = vpop.permute.xlu2 %1279 }
 0x204   : > { %v1217_v49 = vpop.permute.xlu0 %1216  ;;  %v1348_v8 = vsel %vm596_vm6, %v1331_v43, %v4481_v52 }
 0x205   : > { %3037 = vmatpush.bf16.msk.msra.mxu0 %vm4446_vm15, %v1217_v49  ;;  %1535 = vmatpush.bf16.msra.mxu1 %v1348_v8  ;;  %v1241_v42 = vsel %vm335_vm3, %v1217_v49, %v4502_v40  ;;  %v3141_v8 = vld [vmem:[#allocation2 + $0x44] sm:$0xf] }
 0x209   : > { %1234 = vrot.lane.b32.xlu1 %v4463_v55, %s3274_s30  ;;  %1434 = vrot.lane.b32.xlu2 %v4463_v55, %s3275_s9 }
 0x20a   : > { %1387 = vrot.lane.b32.xlu0 %v4517_v23, %s3276_s10  ;;  %3039 = vmatpush.bf16.msk.msra.mxu0 %vm4520_vm12, %v4491_v17 }
 0x20b   : > { %v4533_v38 = vpop.permute.xlu1 %1383  ;;  %v4535_v1 = vpop.permute.xlu2 %1334 }
 0x20c   : > { %v4537_v5 = vpop.permute.xlu0 %1230  ;;  %v1398_v26 = vsel %vm691_vm8, %v1382_v7, %v4533_v38 }
 0x20d   : > { %v1246_v9 = vsel %vm335_vm3, %v4452_v15, %v4537_v5  ;;  %1590 = vmatpush.bf16.msrb.mxu2 %v1398_v26  ;;  %v1349_v15 = vsel %vm596_vm6, %v4481_v52, %v4535_v1 }
 0x20e   : > { %1571 = vmatpush.bf16.msra.mxu3 %v1246_v9 }
 0x210   : > { %3051 = vmatmul.msk.bf16.gmra.mxu2 %vm5807_vm13, %v4619_v51 }
 0x211   : > { %1222 = vrot.lane.b32.xlu1 %v4473_v50, %s3274_s30  ;;  %1422 = vrot.lane.b32.xlu2 %v4473_v50, %s3275_s9 }
 0x212   : > { %1375 = vrot.lane.b32.xlu0 %v4544_v33, %s3276_s10  ;;  %1572 = vmatpush.bf16.msra.mxu3 %v1241_v42  ;;  %v3146_v42 = vld [vmem:[%s4565_s25 + $0x4] sm:$0xf] }
 0x213   : > { %v1321_v11 = vpop.permute.xlu1 %1320  ;;  %v4554_v6 = vpop.permute.xlu2 %1269 }
 0x214   : > { %v1319_v34 = vpop.permute.xlu0 %1318 }
 0x215   : > { %v1343_v47 = vsel %vm596_vm6, %v1319_v34, %v1321_v11 }
 0x216   : > { %1536 = vmatpush.bf16.msra.mxu1 %v1343_v47  ;;  %v4677_v47 = vor.u32 %v3141_v8, %v3006_v53 }
 0x219   : > { %1181 = vrot.lane.b32.xlu1 %v4463_v55, %s3278_s12  ;;  %1236 = vrot.lane.b32.xlu2 %v4517_v23, %s3274_s30 }
 0x21a   : > { %1338 = vrot.lane.b32.xlu0 %v4517_v23, %s3277_s11 }
 0x21b   : > { %v1166_v35 = vpop.permute.xlu1 %1165  ;;  %v4569_v57 = vpop.permute.xlu2 %1120 }
 0x21c   : > { %v4571_v10 = vpop.permute.xlu0 %1371  ;;  %3041 = vmatpush.bf16.msk.msra.mxu0 %vm4520_vm12, %v1166_v35 }
 0x21d   : > { %v1393_v60 = vsel %vm691_vm8, %v1370_v12, %v4571_v10 }
 0x21e   : > { %1591 = vmatpush.bf16.msrb.mxu2 %v1393_v60 }
 0x221   : > { %1171 = vrot.lane.b32.xlu1 %v4473_v50, %s3278_s12  ;;  %1224 = vrot.lane.b32.xlu2 %v4544_v33, %s3274_s30 }
 0x222   : > { %1326 = vrot.lane.b32.xlu0 %v4544_v33, %s3277_s11  ;;  %1592 = vmatpush.bf16.msrb.mxu2 %v1349_v15 }
 0x223   : > { %v4592_v13 = vpop.permute.xlu1 %1177  ;;  %v4594_v0 = vpop.permute.xlu2 %1084 }
 0x224   : > { %v1282_v3 = vpop.permute.xlu0 %1281  ;;  %v1190_v31 = vsel %vm5828_vm2, %v4491_v17, %v4592_v13 }
 0x225   : > { %v1297_v22 = vsel %vm500_vm4, %v1280_v46, %v1282_v3  ;;  %1573 = vmatpush.bf16.msra.mxu3 %v1190_v31 }
 0x226   : > { %1537 = vmatpush.bf16.msra.mxu1 %v1297_v22 }
 0x229   : > { %1136 = vrot.lane.b32.xlu1 %v4463_v55, %s3280_s14  ;;  %1183 = vrot.lane.b32.xlu2 %v4517_v23, %s3278_s12 }
 0x22a   : > { %1287 = vrot.lane.b32.xlu0 %v4517_v23, %s3279_s13 }
 0x22b   : > { %v1268_v52 = vpop.permute.xlu1 %1267  ;;  %v4611_v36 = vpop.permute.xlu2 %1074 }
 0x22c   : > { %v1131_v17 = vpop.permute.xlu0 %1130  ;;  %v1292_v7 = vsel %vm500_vm4, %v1268_v52, %v4554_v6  ;;  %v4701_v52 = vor.u32 %v3135_v2, %v3002_v14 }
 0x22d   : > { %3043 = vmatpush.bf16.msk.msra.mxu0 %vm4607_vm11, %v1131_v17  ;;  %1538 = vmatpush.bf16.msra.mxu1 %v1292_v7  ;;  %v3150_v7 = vld [vmem:[%s4565_s25 + $0x20] sm:$0xf0] }
 0x231   : > { %1126 = vrot.lane.b32.xlu1 %v4473_v50, %s3280_s14  ;;  %1173 = vrot.lane.b32.xlu2 %v4544_v33, %s3278_s12 }
 0x232   : > { %1275 = vrot.lane.b32.xlu0 %v4544_v33, %s3279_s13  ;;  %3045 = vmatpush.bf16.msk.msra.mxu0 %vm4607_vm11, %v4569_v57 }
 0x233   : > { %v4632_v12 = vpop.permute.xlu1 %1322  ;;  %v4634_v62 = vpop.permute.xlu2 %1220  ;;  %1539 = vmatpush.bf16.msra.mxu1 %v4363_v37  ;;  %v3012_v37 = vld [vmem:[%s4565_s25] sm:$0xf] }
 0x234   : > { %v4642_v43 = vpop.permute.xlu0 %1167  ;;  %v1344_v46 = vsel %vm596_vm6, %v1321_v11, %v4632_v12  ;;  %v4658_v49 = vor.u32 %v3147_v4, %v3012_v37  ;;  %v3014_v11 = vld [vmem:[%s4565_s25 + $0xc] sm:$0xf0]  ;;  %v3026_v37 = vld [vmem:[%s4565_s25 + $0x24] sm:$0xf0] }
 0x235   : > { %v1186_v27 = vsel %vm5828_vm2, %v1166_v35, %v4642_v43  ;;  %1593 = vmatpush.bf16.msrb.mxu2 %v1344_v46  ;;  %v4680_v35 = vor.u32 %v3146_v42, %v3014_v11 }
 0x236   : > { %1574 = vmatpush.bf16.msra.mxu3 %v1186_v27  ;;  %3047 = vmatpush.bf16.msk.msra.mxu0 %vm4638_vm7, %v4594_v0  ;;  %v3149_v27 = vld [vmem:[%s4565_s25 + $0x1c] sm:$0xf] }
 0x237   : > { %1540 = vmatpush.bf16.msra.mxu1 %v4373_v41 }
 0x239   : > { %1138 = vrot.lane.b32.xlu1 %v4517_v23, %s3280_s14  ;;  %1080 = vrot.lane.b32.xlu2 %v4473_v50, %s3281_s21 }
 0x23a   : > { %1090 = vrot.lane.b32.xlu0 %v4463_v55, %s3281_s21  ;;  %3049 = vmatpush.bf16.msk.msra.mxu0 %vm4638_vm7, %v4611_v36 }
 0x23b   : > { %v4665_v63 = vpop.permute.xlu1 %1283  ;;  %v4667_v41 = vpop.permute.xlu2 %1385  ;;  %1541 = vmatmul.bf16.vlgmr.msra.gmra.mxu1 %v4680_v35 }
 0x23c   : > { %v4669_v26 = vpop.permute.xlu0 %1132  ;;  %v1298_v9 = vsel %vm500_vm4, %v1282_v3, %v4665_v63  ;;  %v1399_v42 = vsel %vm691_vm8, %v4533_v38, %v4667_v41 }
 0x23d   : > { %v1145_v34 = vsel %vm5832_vm1, %v1131_v17, %v4669_v26  ;;  %1594 = vmatpush.bf16.msrb.mxu2 %v1298_v9  ;;  %1522 = vmatmul.bf16.vlgmr.msra.gmra.mxu0 %v4658_v49  ;;  %v3024_v17 = vld [vmem:[%s4565_s25 + $0x18] sm:$0xf] }
 0x23e   : > { %1575 = vmatpush.bf16.msra.mxu3 %v1145_v34  ;;  %v4709_v16 = vor.u32 %v3150_v7, %v3024_v17 }
 0x241   : > { %1389 = vrot.lane.b32.xlu1 %v4677_v47, %s3276_s10  ;;  %1092 = vrot.lane.b32.xlu2 %v4517_v23, %s3281_s21 }
 0x242   : > { %1128 = vrot.lane.b32.xlu0 %v4544_v33, %s3280_s14 }
 0x243   : > { %v4689_v60 = vpop.permute.xlu1 %1271  ;;  %v4691_v15 = vpop.permute.xlu2 %1134 }
 0x244   : > { %v4693_v3 = vpop.permute.xlu0 %1122  ;;  %v1293_v31 = vsel %vm500_vm4, %v4554_v6, %v4689_v60 }
 0x245   : > { %v1141_v22 = vsel %vm5832_vm1, %v4569_v57, %v4693_v3  ;;  %1595 = vmatpush.bf16.msrb.mxu2 %v1293_v31 }
 0x246   : > { %1576 = vmatpush.bf16.msra.mxu3 %v1141_v22 }
 0x249   : > { %1377 = vrot.lane.b32.xlu1 %v4701_v52, %s3276_s10  ;;  %1082 = vrot.lane.b32.xlu2 %v4544_v33, %s3281_s21 }
 0x24a   : > { %1436 = vrot.lane.b32.xlu0 %v4517_v23, %s3275_s9  ;;  %1596 = vmatpush.bf16.msrb.mxu2 %v4371_v30  ;;  %v4729_v30 = vor.u32 %v3149_v27, %v3026_v37 }
 0x24b   : > { %v4714_v6 = vpop.permute.xlu1 %1086  ;;  %v4716_v57 = vpop.permute.xlu2 %1324 }
 0x24c   : > { %v4718_v24 = vpop.permute.xlu0 %1232  ;;  %v1099_v46 = vsel %vm5836_vm0, %v4594_v0, %v4714_v6  ;;  %1546 = vmatmul.bf16.gmra.mxu1 %v4729_v30  ;;  %v1242_v0 = vsel %vm335_vm3, %v4502_v40, %v4634_v62  ;;  %v1345_v22 = vsel %vm596_vm6, %v4632_v12, %v4716_v57 }
 0x24d   : > { %1577 = vmatpush.bf16.msra.mxu3 %v1099_v46  ;;  %v1247_v4 = vsel %vm335_vm3, %v4537_v5, %v4718_v24  ;;  %1527 = vmatmul.bf16.gmra.mxu0 %v4709_v16 }
 0x24e   : > { %1628 = vmatpush.bf16.msrb.mxu1 %v1247_v4  ;;  %1597 = vmatpush.bf16.msrb.mxu2 %v4381_v54 }
 0x251   : > { %1340 = vrot.lane.b32.xlu1 %v4677_v47, %s3277_s11  ;;  %1238 = vrot.lane.b32.xlu2 %v4677_v47, %s3274_s30 }
 0x252   : > { %1424 = vrot.lane.b32.xlu0 %v4544_v33, %s3275_s9  ;;  %1629 = vmatpush.bf16.msrb.mxu1 %v1242_v0 }
 0x253   : > { %v4742_v5 = vpop.permute.xlu1 %1179  ;;  %v1433_v8 = vpop.permute.xlu2 %1432  ;;  %1598 = vmatmul.bf16.vlgmr.msrb.gmra.mxu2 %v4680_v35 }
 0x254   : > { %v1077_v54 = vpop.permute.xlu0 %1076  ;;  %v1447_v53 = vsel %vm785_vm9, %v4489_v48, %v1433_v8  ;;  %v1191_v9 = vsel %vm5828_vm2, %v4592_v13, %v4742_v5 }
 0x255   : > { %v1095_v40 = vsel %vm5836_vm0, %v4611_v36, %v1077_v54  ;;  %1615 = vmatpush.bf16.msrb.mxu0 %v1447_v53 }
 0x256   : > { %1578 = vmatpush.bf16.msra.mxu3 %v1095_v40  ;;  %1630 = vmatpush.bf16.msrb.mxu1 %v1191_v9 }
 0x259   : > { %1226 = vrot.lane.b32.xlu1 %v4701_v52, %s3274_s30  ;;  %1289 = vrot.lane.b32.xlu2 %v4677_v47, %s3279_s13 }
 0x25a   : > { %1647 = vmatpush.bf16.msrb.mxu3 %v1399_v42  ;;  %1328 = vrot.lane.b32.xlu0 %v4701_v52, %s3277_s11 }
 0x25b   : > { %1579 = vmatmul.bf16.vlgmr.msra.gmra.mxu3 %v4658_v49  ;;  %v4762_v48 = vpop.permute.xlu1 %1373  ;;  %v1421_v13 = vpop.permute.xlu2 %1420 }
 0x25c   : > { %v4764_v36 = vpop.permute.xlu0 %1169  ;;  %v1442_v38 = vsel %vm785_vm9, %v4471_v18, %v1421_v13  ;;  %v1394_v11 = vsel %vm691_vm8, %v4571_v10, %v4762_v48  ;;  %v1146_v18 = vsel %vm5832_vm1, %v4669_v26, %v4691_v15 }
 0x25d   : > { %1616 = vmatpush.bf16.msrb.mxu0 %v1442_v38  ;;  %v1187_v34 = vsel %vm5828_vm2, %v4642_v43, %v4764_v36 }
 0x25e   : > { %1648 = vmatpush.bf16.msrb.mxu3 %v1394_v11  ;;  %1631 = vmatpush.bf16.msrb.mxu1 %v1187_v34 }
 0x260   : > { %3052 = vmatmul.msk.bf16.vlgmr.msrb.gmra.mxu0 %vm5807_vm13, %v4579_v20 }
 0x261   : > { %1438 = vrot.lane.b32.xlu1 %v4677_v47, %s3275_s9  ;;  %1426 = vrot.lane.b32.xlu2 %v4701_v52, %s3275_s9  ;;  %s5190_s9 = scalar_lea.vmem %s5788_s6, %s3062_s26 }
 0x262   : > { %1277 = vrot.lane.b32.xlu0 %v4701_v52, %s3279_s13  ;;  %1632 = vmatpush.bf16.msrb.mxu1 %v1146_v18 }
 0x263   : > { %v4785_v10 = vpop.permute.xlu1 %1124  ;;  %v4787_v43 = vpop.permute.xlu2 %1434  ;;  %1603 = vmatmul.bf16.gmra.mxu2 %v4729_v30 }
 0x264   : > { %v1448_v2 = vsel %vm785_vm9, %v1433_v8, %v4787_v43  ;;  %v1337_v14 = vpop.permute.xlu0 %1336  ;;  %v1142_v26 = vsel %vm5832_vm1, %v4693_v3, %v4785_v10 }
 0x265   : > { %v1350_v31 = vsel %vm596_vm6, %v4535_v1, %v1337_v14  ;;  %1672 = vmatpush.bf16.msra.mxu2 %v1448_v2 }
 0x266   : > { %1633 = vmatpush.bf16.msrb.mxu1 %v1142_v26  ;;  %1649 = vmatpush.bf16.msrb.mxu3 %v1350_v31 }
 0x26a   : > { %1650 = vmatpush.bf16.msrb.mxu3 %v1345_v22 }
 0x26b   : > { %v4800_v17 = vpop.permute.xlu1 %1285  ;;  %v4802_v7 = vpop.permute.xlu2 %1422  ;;  %1584 = vmatmul.bf16.gmra.mxu3 %v4709_v16 }
 0x26c   : > { %v4805_v46 = vpop.permute.xlu0 %1088  ;;  %v1299_v1 = vsel %vm500_vm4, %v4665_v63, %v4800_v17  ;;  %v1443_v3 = vsel %vm785_vm9, %v1421_v13, %v4802_v7 }
 0x26d   : > { %v1100_v12 = vsel %vm5836_vm0, %v4714_v6, %v4805_v46  ;;  %1673 = vmatpush.bf16.msra.mxu2 %v1443_v3 }
 0x26e   : > { %1634 = vmatpush.bf16.msrb.mxu1 %v1100_v12  ;;  %1651 = vmatpush.bf16.msrb.mxu3 %v1299_v1 }
 0x270   : > { %3053 = vmatmul.msk.bf16.gmra.mxu0 %vm5807_vm13, %v4619_v51 }
 0x273   : > { %v4817_v27 = vpop.permute.xlu1 %1273  ;;  %v4819_v37 = vpop.permute.xlu2 %1236  ;;  %3054 = vmatmul.msk.bf16.vlgmr.msra.gmra.mxu2 %vm5807_vm13, %v4579_v20 }
 0x274   : > { %v4823_v63 = vpop.permute.xlu0 %1078  ;;  %v1294_v4 = vsel %vm500_vm4, %v4689_v60, %v4817_v27 }
 0x275   : > { %v1096_v6 = vsel %vm5836_vm0, %v1077_v54, %v4823_v63  ;;  %1652 = vmatpush.bf16.msrb.mxu3 %v1294_v4 }
 0x276   : > { %1635 = vmatpush.bf16.msrb.mxu1 %v1096_v6 }
 0x279   : > { %1653 = vmatpush.bf16.msrb.mxu3 %v4395_v59  ;;  %1636 = vmatmul.bf16.vlgmr.msrb.gmra.mxu1 %v4658_v49 }
 0x27b   : > { %v1235_v0 = vpop.permute.xlu1 %1234  ;;  %v4832_v8 = vpop.permute.xlu2 %1224 }
 0x27c   : > { %v1248_v53 = vsel %vm335_vm3, %v4718_v24, %v1235_v0  ;;  %v1249_v9 = vsel %vm335_vm3, %v1235_v0, %v4819_v37  ;;  %v4838_v40 = vpop.permute.xlu0 %1387 }
 0x27d   : > { %v1400_v60 = vsel %vm691_vm8, %v4667_v41, %v4838_v40  ;;  %1654 = vmatpush.bf16.msrb.mxu3 %v4409_v29  ;;  %1685 = vmatpush.bf16.msra.mxu0 %v1248_v53 }
 0x27e   : > { %1704 = vmatpush.bf16.msra.mxu1 %v1400_v60  ;;  %1742 = vmatpush.bf16.msrb.mxu2 %v1249_v9 }
 0x280   : > { %1655 = vmatmul.bf16.vlgmr.msrb.gmra.mxu3 %v4680_v35 }
 0x283   : > { %v1223_v59 = vpop.permute.xlu1 %1222  ;;  %v4845_v54 = vpop.permute.xlu2 %1183  ;;  %3055 = vmatmul.msk.bf16.gmra.mxu2 %vm5807_vm13, %v4619_v51 }
 0x284   : > { %v4849_v24 = vpop.permute.xlu0 %1375  ;;  %v1243_v42 = vsel %vm335_vm3, %v4634_v62, %v1223_v59  ;;  %v1244_v41 = vsel %vm335_vm3, %v1223_v59, %v4832_v8 }
 0x285   : > { %1686 = vmatpush.bf16.msra.mxu0 %v1243_v42  ;;  %v1395_v29 = vsel %vm691_vm8, %v4762_v48, %v4849_v24  ;;  %1743 = vmatpush.bf16.msrb.mxu2 %v1244_v41 }
 0x286   : > { %1705 = vmatpush.bf16.msra.mxu1 %v1395_v29 }
 0x289   : > { %1641 = vmatmul.bf16.gmra.mxu1 %v4709_v16 }
 0x28b   : > { %v1182_v13 = vpop.permute.xlu1 %1181  ;;  %v4859_v38 = vpop.permute.xlu2 %1173 }
 0x28c   : > { %v4861_v11 = vpop.permute.xlu0 %1338  ;;  %v1192_v62 = vsel %vm5828_vm2, %v4742_v5, %v1182_v13  ;;  %v1193_v34 = vsel %vm5828_vm2, %v1182_v13, %v4845_v54 }
 0x28d   : > { %1687 = vmatpush.bf16.msra.mxu0 %v1192_v62  ;;  %v1351_v18 = vsel %vm596_vm6, %v1337_v14, %v4861_v11  ;;  %1744 = vmatpush.bf16.msrb.mxu2 %v1193_v34 }
 0x28e   : > { %1706 = vmatpush.bf16.msra.mxu1 %v1351_v18 }
 0x290   : > { %1660 = vmatmul.bf16.gmra.mxu3 %v4729_v30 }
 0x293   : > { %v1172_v48 = vpop.permute.xlu1 %1171  ;;  %v1081_v2 = vpop.permute.xlu2 %1080 }
 0x294   : > { %v4870_v26 = vpop.permute.xlu0 %1326  ;;  %v1188_v31 = vsel %vm5828_vm2, %v4764_v36, %v1172_v48  ;;  %v1189_v5 = vsel %vm5828_vm2, %v1172_v48, %v4859_v38 }
 0x295   : > { %1688 = vmatpush.bf16.msra.mxu0 %v1188_v31  ;;  %v1346_v22 = vsel %vm596_vm6, %v4716_v57, %v4870_v26  ;;  %1745 = vmatpush.bf16.msrb.mxu2 %v1189_v5 }
 0x296   : > { %1707 = vmatpush.bf16.msra.mxu1 %v1346_v22 }
 0x29b   : > { %v1137_v14 = vpop.permute.xlu1 %1136  ;;  %v4886_v12 = vpop.permute.xlu2 %1092 }
 0x29c   : > { %v4879_v1 = vpop.permute.xlu0 %1287  ;;  %v1147_v3 = vsel %vm5832_vm1, %v4691_v15, %v1137_v14 }
 0x29d   : > { %1689 = vmatpush.bf16.msra.mxu0 %v1147_v3  ;;  %v1300_v36 = vsel %vm500_vm4, %v4800_v17, %v4879_v1 }
 0x29e   : > { %1708 = vmatpush.bf16.msra.mxu1 %v1300_v36 }
 0x2a3   : > { %v1127_v4 = vpop.permute.xlu1 %1126  ;;  %v4895_v15 = vpop.permute.xlu2 %1082 }
 0x2a4   : > { %v4888_v6 = vpop.permute.xlu0 %1275  ;;  %v1143_v57 = vsel %vm5832_vm1, %v4785_v10, %v1127_v4  ;;  %v1561_v10 = vpop.f32.mrf.mxu2  ;;  %v1098_v22 = vsel %vm5836_vm0, %v1081_v2, %v4895_v15 }
 0x2a5   : > { %1690 = vmatpush.bf16.msra.mxu0 %v1143_v57  ;;  %v1295_v0 = vsel %vm500_vm4, %v4817_v27, %v4888_v6  ;;  %v1097_v27 = vsel %vm5836_vm0, %v4823_v63, %v1081_v2 }
 0x2a6   : > { %1709 = vmatpush.bf16.msra.mxu1 %v1295_v0 }
 0x2aa   : > { %1710 = vmatpush.bf16.msra.mxu1 %v4463_v55 }
 0x2ab   : > { %v4898_v17 = vpop.permute.xlu1 %1138  ;;  %v1239_v55 = vpop.permute.xlu2 %1238 }
 0x2ac   : > { %v1091_v53 = vpop.permute.xlu0 %1090  ;;  %v1148_v9 = vsel %vm5832_vm1, %v1137_v14, %v4898_v17 }
 0x2ad   : > { %v1101_v60 = vsel %vm5836_vm0, %v4805_v46, %v1091_v53  ;;  %1746 = vmatpush.bf16.msrb.mxu2 %v1148_v9  ;;  %v1102_v63 = vsel %vm5836_vm0, %v1091_v53, %v4886_v12  ;;  %v1250_v53 = vsel %vm335_vm3, %v4819_v37, %v1239_v55 }
 0x2ae   : > { %1691 = vmatpush.bf16.msra.mxu0 %v1101_v60  ;;  %1711 = vmatpush.bf16.msra.mxu1 %v4473_v50  ;;  %v1563_v50 = vpop.f32.mrf.mxu2 }
 0x2b1   : > { %1712 = vmatmul.bf16.vlgmr.msra.gmra.mxu1 %v4680_v35 }
 0x2b2   : > { %1692 = vmatpush.bf16.msra.mxu0 %v1097_v27 }
 0x2b3   : > { %v1390_v59 = vpop.permute.xlu1 %1389 }
 0x2b4   : > { %v1401_v42 = vsel %vm691_vm8, %v4838_v40, %v1390_v59  ;;  %v4910_v41 = vpop.permute.xlu0 %1128  ;;  %v1290_v40 = vpop.permute.xlu2 %1289  ;;  %v3282_v59 = vmov 0  }
 0x2b5   : > { %v1414_v46 = vsel %vm5840_vm10, %v1401_v42, 0  ;;  %v1144_v29 = vsel %vm5832_vm1, %v1127_v4, %v4910_v41  ;;  %1693 = vmatmul.bf16.vlgmr.msra.gmra.mxu0 %v4658_v49  ;;  %v1316_v48 = vsel %vm5841_vm5, %v1290_v40, 0  ;;  %3237 = vset.pattern.permute.xlu1 %v3282_v59 }
 0x2b6   : > { %1747 = vmatpush.bf16.msrb.mxu2 %v1144_v29  ;;  %1761 = vmatpush.bf16.msrb.mxu0 %v1414_v46 }
 0x2b7   : > { %3164 = vmatpush.bf16.msrb.mxu1 %v1414_v46  ;;  %3238 = vset.pattern.permute.xlu2 %v3282_v59 }
 0x2b8   : > { %v1542_v36 = vpop.f32.mrf.mxu1  ;;  %3239 = vset.pattern.permute.xlu0 %v3282_v59 }
 0x2ba   : > { %1748 = vmatpush.bf16.msrb.mxu2 %v1102_v63  ;;  %v1523_v13 = vpop.f32.mrf.mxu0 }
 0x2bb   : > { %v1378_v62 = vpop.permute.xlu1 %1377  ;;  %v1543_v57 = vadd.f32 %v1542_v36, %v1523_v13 }
 0x2bc   : > { %v1396_v34 = vsel %vm691_vm8, %v4849_v24, %v1378_v62  ;;  %v4920_v18 = vpop.permute.xlu0 %1436  ;;  %v1566_v24 = vpop.f32.mrf.mxu2 }
 0x2bd   : > { %v1411_v31 = vsel %vm5840_vm10, %v1396_v34, 0  ;;  %v1449_v5 = vsel %vm785_vm9, %v4787_v43, %v4920_v18  ;;  %vm5842_vm10 = vcmask 973824   ;;  %v4942_v9 = vadd.f32 %v1561_v10, %v1543_v57 }
 0x2be   : > { %1729 = vmatpush.bf16.msra.mxu3 %v1449_v5  ;;  %1749 = vmatpush.bf16.msrb.mxu2 %v1098_v22 }
 0x2bf   : > { %1762 = vmatpush.bf16.msrb.mxu0 %v1411_v31  ;;  %3165 = vmatpush.bf16.msrb.mxu1 %v1411_v31 }
 0x2c0   : > { %v1544_v27 = vpop.f32.mrf.mxu1 }
 0x2c1   : > { %1750 = vmatmul.bf16.vlgmr.msrb.gmra.mxu2 %v4658_v49  ;;  %1717 = vmatmul.bf16.gmra.mxu1 %v4729_v30 }
 0x2c2   : > { %1822 = vmatpush.bf16.msra.mxu2 %v1316_v48  ;;  %v1525_v14 = vpop.f32.mrf.mxu0 }
 0x2c3   : > { %v1341_v3 = vpop.permute.xlu1 %1340  ;;  %v1545_v55 = vadd.f32 %v1544_v27, %v1525_v14 }
 0x2c4   : > { %v1352_v4 = vsel %vm596_vm6, %v4861_v11, %v1341_v3  ;;  %v4933_v43 = vpop.permute.xlu0 %1424  ;;  %v1568_v37 = vpop.f32.mrf.mxu2 }
 0x2c5   : > { %v1365_v2 = vsel %vm5842_vm10, %v1352_v4, 0  ;;  %v1444_v0 = vsel %vm785_vm9, %v4802_v7, %v4933_v43  ;;  %1698 = vmatmul.bf16.gmra.mxu0 %v4709_v16  ;;  %v4951_v29 = vadd.f32 %v1563_v50, %v1545_v55 }
 0x2c6   : > { %1730 = vmatpush.bf16.msra.mxu3 %v1444_v0  ;;  %1763 = vmatpush.bf16.msrb.mxu0 %v1365_v2 }
 0x2c7   : > { %3166 = vmatpush.bf16.msrb.mxu1 %v1365_v2 }
 0x2c9   : > { %3056 = vmatmul.msk.bf16.vlgmr.msra.gmra.mxu3 %vm5807_vm13, %v4579_v20  ;;  %v1547_v13 = vpop.f32.mrf.mxu1 }
 0x2ca   : > { %1799 = vmatpush.bf16.msrb.mxu3 %v1250_v53  ;;  %v1528_v11 = vpop.f32.mrf.mxu0 }
 0x2cb   : > { %v1227_v60 = vpop.permute.xlu1 %1226 }
 0x2cc   : > { %v1245_v7 = vsel %vm335_vm3, %v4832_v8, %v1227_v60  ;;  %v1329_v42 = vpop.permute.xlu0 %1328  ;;  %v1301_v8 = vsel %vm500_vm4, %v4879_v1, %v1290_v40 }
 0x2cd   : > { %v1347_v10 = vsel %vm596_vm6, %v4870_v26, %v1329_v42  ;;  %v1548_v26 = vadd.f32 %v1547_v13, %v1528_v11 }
 0x2ce   : > { %1800 = vmatpush.bf16.msrb.mxu3 %v1245_v7  ;;  %v1362_v46 = vsel %vm5842_vm10, %v1347_v10, 0  ;;  %vm5843_vm10 = vcmask 957440  }
 0x2cf   : > { %1764 = vmatpush.bf16.msrb.mxu0 %v1362_v46  ;;  %3167 = vmatpush.bf16.msrb.mxu1 %v1362_v46  ;;  %v4961_v48 = vadd.f32 %v1566_v24, %v1548_v26 }
 0x2d1   : > { %1755 = vmatmul.bf16.gmra.mxu2 %v4709_v16 }
 0x2d2   : > { %1801 = vmatpush.bf16.msrb.mxu3 %v4845_v54  ;;  %v1530_v63 = vpop.f32.mrf.mxu0 }
 0x2d3   : > { %1765 = vmatpush.bf16.msrb.mxu0 %v1301_v8  ;;  %3168 = vmatpush.bf16.msrb.mxu1 %v1301_v8  ;;  %v1439_v1 = vpop.permute.xlu1 %1438 }
 0x2d4   : > { %v1278_v62 = vpop.permute.xlu0 %1277  ;;  %v1450_v40 = vsel %vm785_vm9, %v4920_v18, %v1439_v1 }
 0x2d5   : > { %v1296_v50 = vsel %vm500_vm4, %v4888_v6, %v1278_v62  ;;  %v1313_v34 = vsel %vm5841_vm5, %v1278_v62, 0  ;;  %v1427_v6 = vpop.permute.xlu2 %1426  ;;  %vm5844_vm5 = vmmov %vm5843_vm10 }
 0x2d6   : > { %1802 = vmatpush.bf16.msrb.mxu3 %v4859_v38  ;;  %1823 = vmatpush.bf16.msra.mxu2 %v1313_v34  ;;  %v1599_v54 = vpop.f32.mrf.mxu2  ;;  %v1549_v38 = vpop.f32.mrf.mxu1 }
 0x2d7   : > { %1766 = vmatpush.bf16.msrb.mxu0 %v1296_v50  ;;  %3169 = vmatpush.bf16.msrb.mxu1 %v1296_v50  ;;  %v1550_v31 = vadd.f32 %v1549_v38, %v1530_v63 }
 0x2d9   : > { %3057 = vmatmul.msk.bf16.gmra.mxu3 %vm5807_vm13, %v4619_v51 }
 0x2da   : > { %1803 = vmatpush.bf16.msrb.mxu3 %v4898_v17  ;;  %1824 = vmatpush.bf16.msra.mxu2 %v4677_v47  ;;  %v4973_v17 = vadd.f32 %v1568_v37, %v1550_v31  ;;  %v1463_v47 = vsel %vm5843_vm10, %v1450_v40, 0 }
 0x2db   : > { %1767 = vmatpush.bf16.msrb.mxu0 %v4517_v23  ;;  %3170 = vmatpush.bf16.msrb.mxu1 %v4517_v23  ;;  %v1445_v23 = vsel %vm785_vm9, %v4933_v43, %v1427_v6 }
 0x2dd   : > { %v1618_v22 = vpop.f32.mrf.mxu0 }
 0x2de   : > { %v1580_v5 = vpop.f32.mrf.mxu3  ;;  %1804 = vmatpush.bf16.msrb.mxu3 %v4910_v41  ;;  %1825 = vmatpush.bf16.msra.mxu2 %v4701_v52  ;;  %v1601_v18 = vpop.f32.mrf.mxu2  ;;  %v1460_v52 = vsel %vm5844_vm5, %v1445_v23, 0  ;;  %vm1884_vm5 = vcmask 64512  }
 0x2df   : > { %v1600_v24 = vadd.f32 %v1599_v54, %v1580_v5  ;;  %1768 = vmatpush.bf16.msrb.mxu0 %v4544_v33  ;;  %3171 = vmatpush.bf16.msrb.mxu1 %v4544_v33 }
 0x2e1   : > { %v4980_v14 = vadd.f32 %v1618_v22, %v1600_v24  ;;  %1826 = vmatmul.bf16.vlgmr.msra.gmra.mxu2 %v4680_v35 }
 0x2e2   : > { %1769 = vmatmul.bf16.vlgmr.msrb.gmra.mxu0 %v4680_v35  ;;  %1774 = vmatmul.bf16.vlgmr.msrb.gmra.mxu1 %v4729_v30 }
 0x2e3   : > { %1786 = vmatpush.bf16.msra.mxu1 %v1463_v47  ;;  %1844 = vmatpush.bf16.msra.mxu0 %v3282_v59 }
 0x2e4   : > { %1805 = vmatpush.bf16.msrb.mxu3 %v4886_v12 }
 0x2e5   : > { %v1620_v41 = vpop.f32.mrf.mxu0 }
 0x2e6   : > { %v1582_v33 = vpop.f32.mrf.mxu3  ;;  %v1604_v4 = vpop.f32.mrf.mxu2 }
 0x2e7   : > { %1787 = vmatpush.bf16.msra.mxu1 %v1460_v52  ;;  %v1602_v3 = vadd.f32 %v1601_v18, %v1582_v33 }
 0x2e8   : > { %1806 = vmatpush.bf16.msrb.mxu3 %v4895_v15 }
 0x2e9   : > { %v4988_v36 = vadd.f32 %v1620_v41, %v1602_v3  ;;  %v1856_v41 = vmul.f32 %v4942_v9, %v4185_v19 }
 0x2eb   : > { %1807 = vmatmul.bf16.vlgmr.msrb.gmra.mxu3 %v4658_v49 }
 0x2ed   : > { %v1623_v43 = vpop.f32.mrf.mxu0 }
 0x2ee   : > { %v1585_v57 = vpop.f32.mrf.mxu3  ;;  %v1606_v12 = vpop.f32.mrf.mxu2 }
 0x2ef   : > { %v1605_v35 = vadd.f32 %v1604_v4, %v1585_v57 }
 0x2f1   : > { %1831 = vmatmul.bf16.gmra.mxu2 %v4729_v30  ;;  %v4992_v2 = vadd.f32 %v1623_v43, %v1605_v35  ;;  %v1857_v43 = vmul.f32 %v4980_v14, %v4224_v45 }
 0x2f2   : > { %3058 = vmatmul.msk.bf16.vlgmr.msra.gmra.mxu1 %vm5807_vm13, %v4579_v20  ;;  %3060 = vmatmul.msk.bf16.vlgmr.msra.gmra.mxu0 %vm5807_vm13, %v4579_v20 }
 0x2f5   : > { %v1625_v0 = vpop.f32.mrf.mxu0 }
 0x2f6   : > { %v1587_v15 = vpop.f32.mrf.mxu3  ;;  %v1637_v49 = vpop.f32.mrf.mxu1 }
 0x2f7   : > { %v1607_v53 = vadd.f32 %v1606_v12, %v1587_v15  ;;  %v1675_v60 = vpop.f32.mrf.mxu2  ;;  %v1917_v12 = vmul.f32 %v1856_v41, %v4942_v9 }
 0x2f9   : > { %v4998_v11 = vadd.f32 %v1625_v0, %v1607_v53  ;;  %v1880_v0 = vadd.f32 %v1857_v43, %v1856_v41  ;;  %v1863_v41 = vmul.f32 %v4988_v36, %v4224_v45 }
 0x2fb   : > { %1812 = vmatmul.bf16.gmra.mxu3 %v4709_v16 }
 0x2fe   : > { %v1639_v30 = vpop.f32.mrf.mxu1 }
 0x2ff   : > { %v1677_v20 = vpop.f32.mrf.mxu2 }
 0x302   : > { %3059 = vmatmul.msk.bf16.gmra.mxu1 %vm5807_vm13, %v4619_v51  ;;  %3061 = vmatmul.msk.bf16.gmra.mxu0 %vm5807_vm13, %v4619_v51 }
 0x303   : > { %v1656_v27 = vpop.f32.mrf.mxu3 }
 0x304   : > { %v1657_v24 = vadd.f32 %v1656_v27, %v1637_v49  ;;  %v1862_v27 = vmul.f32 %v4951_v29, %v4185_v19 }
 0x306   : > { %v1642_v59 = vpop.f32.mrf.mxu1  ;;  %v5033_v52 = vadd.f32 %v1675_v60, %v1657_v24 }
 0x307   : > { %v5007_v37 = vpop.f32.mrf.mxu2 }
 0x308   : > { %v1858_v35 = vmul.f32 %v5033_v52, %v4226_v28 }
 0x30a   : > { %v1881_v24 = vadd.f32 %v1880_v0, %v1858_v35 }
 0x30b   : > { %v1658_v7 = vpop.f32.mrf.mxu3 }
 0x30c   : > { %v1659_v57 = vadd.f32 %v1658_v7, %v1639_v30 }
 0x30e   : > { %v5005_v42 = vpop.f32.mrf.mxu1 }
 0x30f   : > { %v5009_v46 = vpop.f32.mrf.mxu2 }
 0x313   : > { %v1661_v16 = vpop.f32.mrf.mxu3 }
 0x31b   : > { %v5011_v13 = vpop.f32.mrf.mxu3 }
 0x32e   : > { %v1713_v10 = vpop.f32.mrf.mxu1 }
 0x332   : > { %v1694_v55 = vpop.f32.mrf.mxu0 }
 0x333   : > { %v1714_v33 = vadd.f32 %v1713_v10, %v1694_v55  ;;  %v1918_v55 = vmul.f32 %v1857_v43, %v4980_v14  ;;  %v5049_v10 = vadd.f32 %v1677_v20, %v1659_v57 }
 0x335   : > { %v1941_v43 = vadd.f32 %v1918_v55, %v1917_v12  ;;  %v1864_v57 = vmul.f32 %v5049_v10, %v4226_v28 }
 0x336   : > { %v1715_v63 = vpop.f32.mrf.mxu1 }
 0x33a   : > { %v1696_v8 = vpop.f32.mrf.mxu0 }
 0x33b   : > { %v1716_v30 = vadd.f32 %v1715_v63, %v1696_v8 }
 0x33e   : > { %v5015_v34 = vpop.f32.mrf.mxu1 }
 0x342   : > { %v5013_v50 = vpop.f32.mrf.mxu0 }
 0x344   : > { %v1751_v51 = vpop.f32.mrf.mxu2 }
 0x346   : > { %v5021_v6 = vpop.f32.mrf.mxu1 }
 0x34a   : > { %v5019_v38 = vpop.f32.mrf.mxu0 }
 0x34c   : > { %v1732_v62 = vpop.f32.mrf.mxu3  ;;  %v1753_v26 = vpop.f32.mrf.mxu2 }
 0x34d   : > { %v5037_v4 = vadd.f32 %v1732_v62, %v1714_v33 }
 0x34f   : > { %v1859_v53 = vmul.f32 %v5037_v4, %v4231_v21 }
 0x351   : > { %v1882_v63 = vadd.f32 %v1881_v24, %v1859_v53 }
 0x354   : > { %v1734_v54 = vpop.f32.mrf.mxu3  ;;  %v5017_v1 = vpop.f32.mrf.mxu2 }
 0x35c   : > { %v5023_v40 = vpop.f32.mrf.mxu3  ;;  %v5025_v31 = vpop.f32.mrf.mxu2 }
 0x35f   : > { %v1770_v5 = vpop.f32.mrf.mxu0  ;;  %v5027_v22 = vpop.f32.mrf.mxu1 }
 0x360   : > { %v1771_v49 = vadd.f32 %v1770_v5, %v1751_v51  ;;  %v1919_v51 = vmul.f32 %v1858_v35, %v5033_v52  ;;  %v5058_v5 = vadd.f32 %v1734_v54, %v1716_v30  ;;  %v5069_v54 = vmul.f32 %v4961_v48, %v4185_v19 }
 0x361   : > { %v1920_v35 = vmul.f32 %v1859_v53, %v5037_v4  ;;  %v1889_v30 = vadd.f32 %v1863_v41, %v1862_v27  ;;  %v1719_v53 = vadd.f32 %v5015_v34, %v5013_v50 }
 0x362   : > { %v1865_v12 = vmul.f32 %v5058_v5, %v4231_v21 }
 0x363   : > { %v1890_v32 = vadd.f32 %v1889_v30, %v1864_v57  ;;  %v5093_v50 = vadd.f32 %v5023_v40, %v1719_v53 }
 0x364   : > { %v5029_v47 = vpop.f32.mrf.mxu3  ;;  %v1827_v3 = vpop.f32.mrf.mxu2 }
 0x367   : > { %v1772_v23 = vpop.f32.mrf.mxu0  ;;  %v5031_v18 = vpop.f32.mrf.mxu1 }
 0x368   : > { %v1773_v24 = vadd.f32 %v1772_v23, %v1753_v26 }
 0x36c   : > { %v1829_v0 = vpop.f32.mrf.mxu2 }
 0x36e   : > { %v1808_v15 = vpop.f32.mrf.mxu3 }
 0x36f   : > { %v1828_v60 = vadd.f32 %v1827_v3, %v1808_v15  ;;  %v1789_v7 = vpop.f32.mrf.mxu1  ;;  %v1846_v62 = vpop.f32.mrf.mxu0  ;;  %v1923_v3 = vmul.f32 %v1862_v27, %v4951_v29  ;;  %v1662_v15 = vadd.f32 %v1661_v16, %v1642_v59 }
 0x370   : > { %v5051_v33 = vadd.f32 %v1789_v7, %v1771_v49  ;;  %v1924_v7 = vmul.f32 %v1863_v41, %v4988_v36 }
 0x371   : > { %v5053_v25 = vadd.f32 %v1846_v62, %v1828_v60  ;;  %v1942_v62 = vadd.f32 %v1941_v43, %v1919_v51  ;;  %v5078_v39 = vadd.f32 %v5007_v37, %v1662_v15  ;;  %v1925_v51 = vmul.f32 %v1864_v57, %v5049_v10 }
 0x372   : > { %v1860_v20 = vmul.f32 %v5051_v33, %v4235_v44  ;;  %v1869_v37 = vmul.f32 %v4992_v2, %v4224_v45  ;;  %v1664_v15 = vadd.f32 %v5011_v13, %v5005_v42  ;;  %v1891_v57 = vadd.f32 %v1890_v32, %v1865_v12 }
 0x373   : > { %v1861_v8 = vmul.f32 %v5053_v25, %v4237_v61  ;;  %v1943_v23 = vadd.f32 %v1942_v62, %v1920_v35  ;;  %v1870_v35 = vmul.f32 %v5078_v39, %v4226_v28  ;;  %v1871_v62 = vmul.f32 %v5093_v50, %v4231_v21 }
 0x374   : > { %v1883_v49 = vadd.f32 %v1882_v63, %v1860_v20  ;;  %v1921_v59 = vmul.f32 %v1860_v20, %v5051_v33  ;;  %v1949_v20 = vadd.f32 %v1924_v7, %v1923_v3  ;;  %v1897_v3 = vadd.f32 %v1869_v37, %v5069_v54  ;;  %v1832_v42 = vpop.f32.mrf.mxu2 }
 0x375   : > { %v1885_v60 = vsel %vm1884_vm5, %v1861_v8, 0.0  ;;  %v1922_v41 = vmul.f32 %v1861_v8, %v5053_v25  ;;  %v5108_v32 = vadd.f32 %v5009_v46, %v1664_v15  ;;  %v1721_v7 = vadd.f32 %v5021_v6, %v5019_v38 }
 0x376   : > { %v1810_v55 = vpop.f32.mrf.mxu3  ;;  %v1886_v58 = vadd.f32 %v1885_v60, %v1883_v49  ;;  %v1950_v40 = vadd.f32 %v1949_v20, %v1925_v51  ;;  %v1926_v49 = vmul.f32 %v1865_v12, %v5058_v5  ;;  %v1898_v46 = vadd.f32 %v1897_v3, %v1870_v35 }
 0x377   : > { %v1830_v16 = vadd.f32 %v1829_v0, %v1810_v55  ;;  %v1791_v27 = vpop.f32.mrf.mxu1  ;;  %v1848_v63 = vpop.f32.mrf.mxu0  ;;  %v1944_v0 = vadd.f32 %v1943_v23, %v1921_v59  ;;  %v1945_v13 = vsel %vm1884_vm5, %v1922_v41, 0.0  ;;  %v1776_v55 = vadd.f32 %v5027_v22, %v5017_v1 }
 0x378   : > { %v5084_v43 = vadd.f32 %v1791_v27, %v1773_v24  ;;  %1887 = vadd.xlane.f32.xlu0 %v1886_v58  ;;  %v1874_v58 = vmul.f32 %v4973_v17, %v4185_v19  ;;  %v1875_v27 = vmul.f32 %v4998_v11, %v4224_v45  ;;  %v1951_v22 = vadd.f32 %v1950_v40, %v1926_v49 }
 0x379   : > { %v5086_v26 = vadd.f32 %v1848_v63, %v1830_v16  ;;  %v1946_v53 = vadd.f32 %v1945_v13, %v1944_v0  ;;  %v5120_v63 = vadd.f32 %v5029_v47, %v1721_v7  ;;  %v1876_v23 = vmul.f32 %v5108_v32, %v4226_v28 }
 0x37a   : > { %v1866_v34 = vmul.f32 %v5084_v43, %v4235_v44  ;;  %v1899_v15 = vadd.f32 %v1898_v46, %v1871_v62  ;;  %v1905_v40 = vadd.f32 %v1875_v27, %v1874_v58  ;;  %v1778_v7 = vadd.f32 %v5031_v18, %v5025_v31 }
 0x37b   : > { %v1867_v8 = vmul.f32 %v5086_v26, %v4237_v61  ;;  %v1877_v0 = vmul.f32 %v5120_v63, %v4231_v21  ;;  %v1937_v49 = vmul.f32 %v1876_v23, %v5108_v32  ;;  %v1931_v31 = vmul.f32 %v1870_v35, %v5078_v39 }
 0x37c   : > { %v1892_v60 = vadd.f32 %v1891_v57, %v1866_v34  ;;  %v1927_v59 = vmul.f32 %v1866_v34, %v5084_v43  ;;  %v1936_v57 = vmul.f32 %v1875_v27, %v4998_v11  ;;  %v1906_v27 = vadd.f32 %v1905_v40, %v1876_v23 }
 0x37d   : > { %v1893_v30 = vsel %vm1884_vm5, %v1867_v8, 0.0  ;;  %v1928_v41 = vmul.f32 %v1867_v8, %v5086_v26  ;;  %v1935_v8 = vmul.f32 %v1874_v58, %v4973_v17  ;;  %v1938_v46 = vmul.f32 %v1877_v0, %v5120_v63 }
 0x37e   : > { %v1813_v24 = vpop.f32.mrf.mxu3  ;;  %v1894_v12 = vadd.f32 %v1893_v30, %v1892_v60  ;;  %v1952_v34 = vadd.f32 %v1951_v22, %v1927_v59  ;;  %v1834_v30 = vpop.f32.mrf.mxu2  ;;  %v1907_v22 = vadd.f32 %v1906_v27, %v1877_v0 }
 0x37f   : > { %v1833_v16 = vadd.f32 %v1832_v42, %v1813_v24  ;;  %v1794_v38 = vpop.f32.mrf.mxu1  ;;  %v1851_v6 = vpop.f32.mrf.mxu0  ;;  %v1953_v3 = vsel %vm1884_vm5, %v1928_v41, 0.0 }
 0x380   : > { %v5123_v51 = vadd.f32 %v1794_v38, %v1776_v55  ;;  %1895 = vadd.xlane.f32.xlu1 %v1894_v12  ;;  %1947 = vadd.xlane.f32.xlu0 %v1946_v53  ;;  %v1954_v59 = vadd.f32 %v1953_v3, %v1952_v34  ;;  %v1930_v12 = vmul.f32 %v1869_v37, %v4992_v2 }
 0x381   : > { %v5125_v1 = vadd.f32 %v1851_v6, %v1833_v16  ;;  %v1929_v16 = vmul.f32 %v5069_v54, %v4961_v48  ;;  %v1965_v53 = vadd.f32 %v1936_v57, %v1935_v8  ;;  %v1932_v34 = vmul.f32 %v1871_v62, %v5093_v50 }
 0x382   : > { %v1872_v20 = vmul.f32 %v5123_v51, %v4235_v44 }
 0x383   : > { %v1873_v47 = vmul.f32 %v5125_v1, %v4237_v61  ;;  %v1966_v18 = vadd.f32 %v1965_v53, %v1937_v49 }
 0x384   : > { %v1900_v42 = vadd.f32 %v1899_v15, %v1872_v20  ;;  %v1957_v15 = vadd.f32 %v1930_v12, %v1929_v16 }
 0x385   : > { %v1901_v13 = vsel %vm1884_vm5, %v1873_v47, 0.0  ;;  %v1967_v23 = vadd.f32 %v1966_v18, %v1938_v46  ;;  %v1934_v0 = vmul.f32 %v1873_v47, %v5125_v1 }
 0x386   : > { %v1815_v60 = vpop.f32.mrf.mxu3  ;;  %v1902_v24 = vadd.f32 %v1901_v13, %v1900_v42  ;;  %v1958_v35 = vadd.f32 %v1957_v15, %v1931_v31  ;;  %v1933_v13 = vmul.f32 %v1872_v20, %v5123_v51 }
 0x387   : > { %v1835_v55 = vadd.f32 %v1834_v30, %v1815_v60  ;;  %v1796_v38 = vpop.f32.mrf.mxu1  ;;  %v1853_v58 = vpop.f32.mrf.mxu0 }
 0x388   : > { %v5146_v6 = vadd.f32 %v1796_v38, %v1778_v7  ;;  %1903 = vadd.xlane.f32.xlu2 %v1902_v24  ;;  %1955 = vadd.xlane.f32.xlu1 %v1954_v59  ;;  %v1959_v62 = vadd.f32 %v1958_v35, %v1932_v34 }
 0x389   : > { %v5148_v41 = vadd.f32 %v1853_v58, %v1835_v55  ;;  %v1961_v55 = vsel %vm1884_vm5, %v1934_v0, 0.0 }
 0x38a   : > { %v1878_v54 = vmul.f32 %v5146_v6, %v4235_v44  ;;  %v1960_v7 = vadd.f32 %v1959_v62, %v1933_v13 }
 0x38b   : > { %v1879_v37 = vmul.f32 %v5148_v41, %v4237_v61 }
 0x38c   : > { %v1939_v8 = vmul.f32 %v1878_v54, %v5146_v6  ;;  %v1908_v57 = vadd.f32 %v1907_v22, %v1878_v54  ;;  %v1962_v24 = vadd.f32 %v1961_v55, %v1960_v7 }
 0x38d   : > { %v1909_v3 = vsel %vm1884_vm5, %v1879_v37, 0.0  ;;  %v1940_v42 = vmul.f32 %v1879_v37, %v5148_v41 }
 0x38e   : > { %v1910_v40 = vadd.f32 %v1909_v3, %v1908_v57  ;;  %v1968_v49 = vadd.f32 %v1967_v23, %v1939_v8 }
 0x38f   : > { %v1969_v60 = vsel %vm1884_vm5, %v1940_v42, 0.0 }
 0x390   : > { %1911 = vadd.xlane.f32.xlu2 %v1910_v40  ;;  %v1970_v30 = vadd.f32 %v1969_v60, %v1968_v49 }
 0x392   : > { %1971 = vadd.xlane.f32.xlu0 %v1970_v30 }
 0x398   : > { %1963 = vadd.xlane.f32.xlu2 %v1962_v24 }
 0x3eb   : > { %v1888_v59 = vpop.xlane.xlu0 %1887 }
 0x3ec   : > { %v5163_v16 = vmul.f32 0.001953125, %v1888_v59 }
 0x3ee   : > { %v1977_v53 = vmul.f32 %v5163_v16, %v5163_v16 }
 0x3f3   : > { %v1896_v12 = vpop.xlane.xlu1 %1895  ;;  %v1948_v20 = vpop.xlane.xlu0 %1947 }
 0x3f4   : > { %v1973_v46 = vmul.f32 0.001953125, %v1948_v20  ;;  %v1914_v47 = vmul.f32 0.001953125, %v1896_v12  ;;  %v2035_v12 = vld [vmem:[%s5179_s3] sm:$0xff] }
 0x3f6   : > { %v1981_v38 = vsub.f32 %v1973_v46, %v1977_v53  ;;  %v1978_v54 = vmul.f32 %v1914_v47, %v1914_v47 }
 0x3f8   : > { %v1985_v58 = vmax.f32 %v1981_v38, 0.0 }
 0x3fa   : > { %v1989_v27 = vadd.f32 0.0001, %v1985_v58 }
 0x3fb   : > { %v1904_v31 = vpop.xlane.xlu2 %1903  ;;  %v1956_v18 = vpop.xlane.xlu1 %1955 }
 0x3fc   : > { %3240 = vrsqrt.f32 %v1989_v27  ;;  %v1974_v37 = vmul.f32 0.001953125, %v1956_v18  ;;  %v5172_v60 = vmul.f32 0.001953125, %v1904_v31  ;;  %vm1999_vm5 = vweird.f32 %v1989_v27 }
 0x3fe   : > { %v1982_v22 = vsub.f32 %v1974_v37, %v1978_v54  ;;  %v1979_v20 = vmul.f32 %v5172_v60, %v5172_v60 }
 0x400   : > { %v1986_v15 = vmax.f32 %v1982_v22, 0.0 }
 0x402   : > { %v3241_v34 = vpop.eup %3240  ;;  %v1990_v23 = vadd.f32 0.0001, %v1986_v15 }
 0x403   : > { %v1994_v8 = vmul.f32 %v3241_v34, %v1989_v27  ;;  %v1912_v57 = vpop.xlane.xlu2 %1911  ;;  %vm2000_vm10 = vweird.f32 %v3241_v34 }
 0x404   : > { %3242 = vrsqrt.f32 %v1990_v23  ;;  %v5167_v3 = vmul.f32 0.001953125, %v1912_v57  ;;  %vm2001_vm13 = vmor %vm1999_vm5, %vm2000_vm10  ;;  %vm2009_vm1 = vweird.f32 %v1990_v23 }
 0x405   : > { %v1995_v42 = vmul.f32 %v3241_v34, %v1994_v8  ;;  %v1972_v35 = vpop.xlane.xlu0 %1971  ;;  %v2036_v8 = vld [vmem:[%s5179_s3 + $0x8] sm:$0xff] }
 0x406   : > { %v1980_v13 = vmul.f32 %v5167_v3, %v5167_v3  ;;  %v1976_v40 = vmul.f32 0.001953125, %v1972_v35 }
 0x407   : > { %v1996_v49 = vmul.f32 0.5, %v1995_v42 }
 0x408   : > { %v1984_v0 = vsub.f32 %v1976_v40, %v1980_v13  ;;  %v2045_v40 = vld [vmem:[%s5190_s9 + $0x8] sm:$0xff] }
 0x409   : > { %v1997_v30 = vsub.f32 1.5, %v1996_v49 }
 0x40a   : > { %v3243_v62 = vpop.eup %3242  ;;  %v1988_v7 = vmax.f32 %v1984_v0, 0.0 }
 0x40b   : > { %v2004_v55 = vmul.f32 %v3243_v62, %v1990_v23  ;;  %v1964_v24 = vpop.xlane.xlu2 %1963  ;;  %v1998_v59 = vmul.f32 %v3241_v34, %v1997_v30  ;;  %vm2010_vm0 = vweird.f32 %v3243_v62 }
 0x40c   : > { %v1992_v53 = vadd.f32 0.0001, %v1988_v7  ;;  %v1975_v46 = vmul.f32 0.001953125, %v1964_v24  ;;  %vm2011_vm2 = vmor %vm2009_vm1, %vm2010_vm0  ;;  %v2044_v24 = vld [vmem:[%s5190_s9] sm:$0xff] }
 0x40d   : > { %v2005_v38 = vmul.f32 %v3243_v62, %v2004_v55  ;;  %v2002_v58 = vsel %vm2001_vm13, %v3241_v34, %v1998_v59 }
 0x40e   : > { %3244 = vrsqrt.f32 %v1992_v53  ;;  %v1983_v31 = vsub.f32 %v1975_v46, %v1979_v20  ;;  %v2039_v18 = vmul.f32 %v2035_v12, %v2002_v58  ;;  %vm2029_vm1 = vweird.f32 %v1992_v53 }
 0x40f   : > { %v2006_v54 = vmul.f32 0.5, %v2005_v38  ;;  %v2038_v38 = vld [vmem:[%s5179_s3 + $0x18] sm:$0xff] }
 0x410   : > { %v1987_v37 = vmax.f32 %v1983_v31, 0.0  ;;  %2058 = vperm.xlu1 %3237, %v2039_v18   ;;  %v2048_v7 = vmul.f32 %v2039_v18, %v5163_v16  ;;  %v2037_v18 = vld [vmem:[%s5179_s3 + $0x10] sm:$0xff] }
 0x411   : > { %v2007_v27 = vsub.f32 1.5, %v2006_v54 }
 0x412   : > { %v1991_v22 = vadd.f32 0.0001, %v1987_v37  ;;  %v2052_v20 = vsub.f32 %v2044_v24, %v2048_v7 }
 0x413   : > { %v2008_v15 = vmul.f32 %v3243_v62, %v2007_v27  ;;  %v2046_v27 = vld [vmem:[%s5190_s9 + $0x10] sm:$0xff] }
 0x414   : > { %v3245_v57 = vpop.eup %3244  ;;  %3246 = vrsqrt.f32 %v1991_v22  ;;  %vm2019_vm10 = vweird.f32 %v1991_v22 }
 0x415   : > { %v2024_v42 = vmul.f32 %v3245_v57, %v1992_v53  ;;  %v2012_v35 = vsel %vm2011_vm2, %v3243_v62, %v2008_v15  ;;  %vm2030_vm0 = vweird.f32 %v3245_v57  ;;  %v2047_v15 = vld [vmem:[%s5190_s9 + $0x18] sm:$0xff] }
 0x416   : > { %v2040_v13 = vmul.f32 %v2036_v8, %v2012_v35  ;;  %vm2031_vm2 = vmor %vm2029_vm1, %vm2030_vm0  ;;  %vm5851_vm0 = vcmask (%p1005_p0), 146432  }
 0x417   : > { %v2025_v34 = vmul.f32 %v3245_v57, %v2024_v42 }
 0x418   : > { %2063 = vperm.xlu2 %3238, %v2040_v13   ;;  %v2049_v23 = vmul.f32 %v2040_v13, %v1914_v47 }
 0x419   : > { %v2026_v49 = vmul.f32 0.5, %v2025_v34 }
 0x41a   : > { %v3247_v0 = vpop.eup %3246  ;;  %v2053_v30 = vsub.f32 %v2045_v40, %v2049_v23 }
 0x41b   : > { %v2027_v62 = vsub.f32 1.5, %v2026_v49  ;;  %v2014_v55 = vmul.f32 %v3247_v0, %v1991_v22  ;;  %vm2020_vm13 = vweird.f32 %v3247_v0 }
 0x41c   : > { %2107 = vperm.xlu1 %3237, %v2053_v30   ;;  %vm2021_vm5 = vmor %vm2019_vm10, %vm2020_vm13  ;;  %vm5856_vm13 = vcmask (%p1005_p0), 154624   ;;  %vm5857_vm10 = vcmask (%p1005_p0), 261120  }
 0x41d   : > { %v2015_v59 = vmul.f32 %v3247_v0, %v2014_v55  ;;  %v2028_v12 = vmul.f32 %v3245_v57, %v2027_v62 }
 0x41f   : > { %v2016_v46 = vmul.f32 0.5, %v2015_v59  ;;  %v2032_v47 = vsel %vm2031_vm2, %v3245_v57, %v2028_v12  ;;  %vm5853_vm2 = vmmov (%p1005_p0), %vm5851_vm0 }
 0x420   : > { %2102 = vperm.xlu2 %3238, %v2052_v20   ;;  %v2042_v16 = vmul.f32 %v2038_v38, %v2032_v47 }
 0x421   : > { %v2017_v58 = vsub.f32 1.5, %v2016_v46 }
 0x422   : > { %v2051_v37 = vmul.f32 %v2042_v16, %v5167_v3 }
 0x423   : > { %v2018_v31 = vmul.f32 %v3247_v0, %v2017_v58 }
 0x424   : > { %2073 = vperm.xlu1 %3237, %v2042_v16   ;;  %v2055_v42 = vsub.f32 %v2047_v15, %v2051_v37 }
 0x425   : > { %v2022_v54 = vsel %vm2021_vm5, %v3247_v0, %v2018_v31  ;;  %vm5858_vm5 = vmmov (%p1005_p0), %vm5851_vm0 }
 0x426   : > { %v2041_v53 = vmul.f32 %v2037_v18, %v2022_v54 }
 0x428   : > { %2068 = vperm.xlu0 %3239, %v2041_v53   ;;  %v2050_v8 = vmul.f32 %v2041_v53, %v5172_v60 }
 0x42a   : > { %v2054_v57 = vsub.f32 %v2046_v27, %v2050_v8 }
 0x42c   : > { %2112 = vperm.xlu2 %3238, %v2054_v57   ;;  %2117 = vperm.xlu1 %3237, %v2055_v42  }
 0x472   : > { %v2064_v35 = vpop.permute.xlu2 %2063 }
 0x473   : > { %v2082_v18 = vmul.f32 %v2064_v35, %v4951_v29  ;;  %v2083_v54 = vmul.f32 %v2064_v35, %v4988_v36  ;;  %v2084_v53 = vmul.f32 %v2064_v35, %v5049_v10  ;;  %v2085_v37 = vmul.f32 %v2064_v35, %v5058_v5 }
 0x474   : > { %v2086_v27 = vmul.f32 %v2064_v35, %v5084_v43  ;;  %v2087_v15 = vmul.f32 %v2064_v35, %v5086_v26 }
 0x47a   : > { %v2103_v3 = vpop.permute.xlu2 %2102 }
 0x482   : > { %v2059_v13 = vpop.permute.xlu1 %2058 }
 0x483   : > { %v2076_v22 = vmul.f32 %v2059_v13, %v4942_v9  ;;  %v2077_v34 = vmul.f32 %v2059_v13, %v4980_v14  ;;  %v2078_v40 = vmul.f32 %v2059_v13, %v5033_v52  ;;  %v2079_v23 = vmul.f32 %v2059_v13, %v5037_v4 }
 0x484   : > { %v2080_v49 = vmul.f32 %v2059_v13, %v5051_v33  ;;  %v2081_v0 = vmul.f32 %v2059_v13, %v5053_v25 }
 0x485   : > { %v2120_v60 = vadd.f32 %v2103_v3, %v2076_v22  ;;  %v2121_v30 = vadd.f32 %v2103_v3, %v2077_v34  ;;  %v2122_v7 = vadd.f32 %v2103_v3, %v2078_v40  ;;  %v2123_v62 = vadd.f32 %v2103_v3, %v2079_v23 }
 0x486   : > { %v2124_v55 = vadd.f32 %v2103_v3, %v2080_v49  ;;  %v2125_v24 = vadd.f32 %v2103_v3, %v2081_v0 }
 0x487   : > { %v2144_v59 = vmax.f32 %v2120_v60, 0.0  ;;  %v2145_v12 = vmax.f32 %v2121_v30, 0.0  ;;  %v2146_v9 = vmax.f32 %v2122_v7, 0.0  ;;  %v2147_v20 = vmax.f32 %v2123_v62, 0.0 }
 0x488   : > { %v2148_v14 = vmax.f32 %v2124_v55, 0.0  ;;  %v2149_v46 = vmax.f32 %v2125_v24, 0.0 }
 0x489   : > { %v2168_v52 = vmul.f32 %v2144_v59, %v4185_v19  ;;  %v2169_v4 = vmul.f32 %v2145_v12, %v4224_v45  ;;  %v2170_v33 = vmul.f32 %v2146_v9, %v4226_v28  ;;  %v2171_v25 = vmul.f32 %v2147_v20, %v4231_v21 }
 0x48a   : > { %v2172_v47 = vmul.f32 %v2148_v14, %v4235_v44  ;;  %v2173_v38 = vmul.f32 %v2149_v46, %v4237_v61 }
 0x48b   : > { %v2192_v58 = vpack.c.bf16 %v2169_v4, %v2168_v52  ;;  %v2193_v16 = vpack.c.bf16 %v2171_v25, %v2170_v33  ;;  %v2113_v52 = vpop.permute.xlu2 %2112 }
 0x48c   : > { %v2194_v31 = vpack.c.bf16 %v2173_v38, %v2172_v47 }
 0x48d   : > { %2204 = vst [vmem:[#allocation2] sm:$0xff] %v2192_v58 }
 0x48e   : > { %2205 = vst [vmem:[#allocation2 + $0x8] sm:$0xff] %v2193_v16  ;;  %v2108_v8 = vpop.permute.xlu1 %2107 }
 0x48f   : > { %2206 = vst.msk [vmem:[#allocation2 + $0x10] sm:$0xff] %vm4284_vm14, %v2194_v31  ;;  %v2126_v57 = vadd.f32 %v2108_v8, %v2082_v18  ;;  %v2127_v42 = vadd.f32 %v2108_v8, %v2083_v54  ;;  %v2128_v13 = vadd.f32 %v2108_v8, %v2084_v53  ;;  %v2129_v29 = vadd.f32 %v2108_v8, %v2085_v37 }
 0x490   : > { %v2130_v22 = vadd.f32 %v2108_v8, %v2086_v27  ;;  %v2131_v36 = vadd.f32 %v2108_v8, %v2087_v15 }
 0x491   : > { %v2150_v34 = vmax.f32 %v2126_v57, 0.0  ;;  %v2151_v10 = vmax.f32 %v2127_v42, 0.0  ;;  %v2152_v40 = vmax.f32 %v2128_v13, 0.0  ;;  %v2153_v5 = vmax.f32 %v2129_v29, 0.0 }
 0x492   : > { %v2154_v23 = vmax.f32 %v2130_v22, 0.0  ;;  %v2155_v3 = vmax.f32 %v2131_v36, 0.0 }
 0x493   : > { %v2174_v43 = vmul.f32 %v2150_v34, %v4185_v19  ;;  %v2175_v26 = vmul.f32 %v2151_v10, %v4224_v45  ;;  %v2176_v35 = vmul.f32 %v2152_v40, %v4226_v28  ;;  %v2177_v49 = vmul.f32 %v2153_v5, %v4231_v21 }
 0x494   : > { %v2178_v0 = vmul.f32 %v2154_v23, %v4235_v44  ;;  %v2179_v60 = vmul.f32 %v2155_v3, %v4237_v61 }
 0x495   : > { %v2195_v30 = vpack.c.bf16 %v2175_v26, %v2174_v43  ;;  %v2196_v7 = vpack.c.bf16 %v2177_v49, %v2176_v35  ;;  %v3073_v56 = vld [vmem:[#allocation2 + $0x8] sm:$0xf] (%p1005_p0) }
 0x496   : > { %v2197_v62 = vpack.c.bf16 %v2179_v60, %v2178_v0  ;;  %v2074_v55 = vpop.permute.xlu1 %2073 }
 0x497   : > { %2207 = vst [vmem:[#allocation2 + $0x18] sm:$0xff] %v2195_v30  ;;  %v2094_v59 = vmul.f32 %v2074_v55, %v4973_v17  ;;  %v2095_v12 = vmul.f32 %v2074_v55, %v4998_v11  ;;  %v2096_v25 = vmul.f32 %v2074_v55, %v5108_v32  ;;  %v2097_v47 = vmul.f32 %v2074_v55, %v5120_v63 }
 0x498   : > { %2208 = vst [vmem:[#allocation2 + $0x20] sm:$0xff] %v2196_v7 }
 0x499   : > { %2209 = vst.msk [vmem:[#allocation2 + $0x28] sm:$0xff] %vm4284_vm14, %v2197_v62 }
 0x49a   : > { %v2069_v24 = vpop.permute.xlu0 %2068 }
 0x49b   : > { %v2088_v9 = vmul.f32 %v2069_v24, %v4961_v48  ;;  %v2089_v20 = vmul.f32 %v2069_v24, %v4992_v2  ;;  %v2090_v14 = vmul.f32 %v2069_v24, %v5078_v39  ;;  %v2091_v46 = vmul.f32 %v2069_v24, %v5093_v50 }
 0x49c   : > { %v2092_v4 = vmul.f32 %v2069_v24, %v5123_v51  ;;  %v2093_v33 = vmul.f32 %v2069_v24, %v5125_v1  ;;  %v2098_v2 = vmul.f32 %v2074_v55, %v5146_v6  ;;  %v2099_v39 = vmul.f32 %v2074_v55, %v5148_v41 }
 0x49d   : > { %v2132_v17 = vadd.f32 %v2113_v52, %v2088_v9  ;;  %v2133_v38 = vadd.f32 %v2113_v52, %v2089_v20  ;;  %v2134_v11 = vadd.f32 %v2113_v52, %v2090_v14  ;;  %v2135_v58 = vadd.f32 %v2113_v52, %v2091_v46 }
 0x49e   : > { %v2136_v48 = vadd.f32 %v2113_v52, %v2092_v4  ;;  %v2137_v16 = vadd.f32 %v2113_v52, %v2093_v33  ;;  %v2118_v50 = vpop.permute.xlu1 %2117  ;;  %v3155_v20 = vld [vmem:[#allocation2 + $0x14] sm:$0xf0] (%p1005_p0)  ;;  %v3152_v4 = vld [vmem:[#allocation2 + $0x4] sm:$0xf] (%p1005_p0) }
 0x49f   : > { %v2156_v31 = vmax.f32 %v2132_v17, 0.0  ;;  %v2157_v18 = vmax.f32 %v2133_v38, 0.0  ;;  %v2158_v51 = vmax.f32 %v2134_v11, 0.0  ;;  %v2159_v54 = vmax.f32 %v2135_v58, 0.0  ;;  %v3156_v33 = vld [vmem:[#allocation2 + $0x1c] sm:$0xf0] (%p1005_p0) }
 0x4a0   : > { %v2160_v1 = vmax.f32 %v2136_v48, 0.0  ;;  %v2161_v53 = vmax.f32 %v2137_v16, 0.0  ;;  %v2138_v32 = vadd.f32 %v2118_v50, %v2094_v59  ;;  %v2139_v37 = vadd.f32 %v2118_v50, %v2095_v12  ;;  %v3065_v12 = vld [vmem:[#allocation2] sm:$0xf] (%p1005_p0)  ;;  %v3153_v48 = vld [vmem:[#allocation2 + $0xc] sm:$0xf] (%p1005_p0) }
 0x4a1   : > { %v2180_v63 = vmul.f32 %v2156_v31, %v4185_v19  ;;  %v2181_v27 = vmul.f32 %v2157_v18, %v4224_v45  ;;  %v2182_v15 = vmul.f32 %v2158_v51, %v4226_v28  ;;  %v2183_v8 = vmul.f32 %v2159_v54, %v4231_v21  ;;  %v3075_v16 = vld [vmem:[#allocation2 + $0x20] sm:$0xf0] (%p1005_p0) }
 0x4a2   : > { %v2184_v6 = vmul.f32 %v2160_v1, %v4235_v44  ;;  %v2185_v41 = vmul.f32 %v2161_v53, %v4237_v61  ;;  %v2140_v57 = vadd.f32 %v2118_v50, %v2096_v25  ;;  %v2141_v42 = vadd.f32 %v2118_v50, %v2097_v47 }
 0x4a3   : > { %v2198_v13 = vpack.c.bf16 %v2181_v27, %v2180_v63  ;;  %v2199_v29 = vpack.c.bf16 %v2183_v8, %v2182_v15  ;;  %v2142_v22 = vadd.f32 %v2118_v50, %v2098_v2  ;;  %v2143_v36 = vadd.f32 %v2118_v50, %v2099_v39 }
 0x4a4   : > { %v2200_v34 = vpack.c.bf16 %v2185_v41, %v2184_v6  ;;  %v2162_v10 = vmax.f32 %v2138_v32, 0.0  ;;  %v2163_v40 = vmax.f32 %v2139_v37, 0.0  ;;  %v2164_v5 = vmax.f32 %v2140_v57, 0.0 }
 0x4a5   : > { %2210 = vst [vmem:[#allocation2 + $0x30] sm:$0xff] %v2198_v13  ;;  %v2165_v23 = vmax.f32 %v2141_v42, 0.0  ;;  %v2166_v3 = vmax.f32 %v2142_v22, 0.0  ;;  %v2167_v43 = vmax.f32 %v2143_v36, 0.0  ;;  %v5262_v14 = vor.u32 (%p1005_p0), %v3155_v20, %v3065_v12  ;;  %v3081_v13 = vld [vmem:[#allocation2 + $0x10] sm:$0xf] (%p1005_p0) }
 0x4a6   : > { %2211 = vst [vmem:[#allocation2 + $0x38] sm:$0xff] %v2199_v29  ;;  %v2186_v26 = vmul.f32 %v2162_v10, %v4185_v19  ;;  %v2187_v35 = vmul.f32 %v2163_v40, %v4224_v45  ;;  %v2188_v49 = vmul.f32 %v2164_v5, %v4226_v28  ;;  %v3067_v19 = vld [vmem:[#allocation2 + $0x18] sm:$0xf0] (%p1005_p0)  ;;  %v5288_v25 = vor.u32 (%p1005_p0), %v3156_v33, %v3073_v56  ;;  %v3157_v29 = vld [vmem:[#allocation2 + $0x24] sm:$0xf0] (%p1005_p0) }
 0x4a7   : > { %2212 = vst.msk [vmem:[#allocation2 + $0x40] sm:$0xff] %vm4284_vm14, %v2200_v34  ;;  %v2189_v0 = vmul.f32 %v2165_v23, %v4231_v21  ;;  %v2190_v60 = vmul.f32 %v2166_v3, %v4235_v44  ;;  %v2191_v30 = vmul.f32 %v2167_v43, %v4237_v61  ;;  %2564 = vrot.lane.b32.xlu1 (%p1005_p0), %v5262_v14, %s3269_s19  ;;  %v3154_v33 = vld [vmem:[#allocation2 + $0x14] sm:$0xf] (%p1005_p0) }
 0x4a8   : > { %v2201_v7 = vpack.c.bf16 %v2187_v35, %v2186_v26  ;;  %v5272_v28 = vor.u32 (%p1005_p0), %v3152_v4, %v3067_v19  ;;  %v5354_v2 = vor.u32 (%p1005_p0), %v3153_v48, %v3075_v16  ;;  %v5416_v40 = vor.u32 (%p1005_p0), %v3157_v29, %v3081_v13 }
 0x4a9   : > { %v2202_v62 = vpack.c.bf16 %v2189_v0, %v2188_v49  ;;  %v2203_v55 = vpack.c.bf16 %v2191_v30, %v2190_v60 }
 0x4aa   : > { %2213 = vst [vmem:[#allocation2 + $0x48] sm:$0xff] %v2201_v7  ;;  %1007 = sbr.rel (!%p1005_p0) target bundleno = 374 (0x176), region = 62 }
 0x4ab   : > { %2214 = vst [vmem:[#allocation2 + $0x50] sm:$0xff] %v2202_v62 }
 0x4ac   : > { %2215 = vst.msk [vmem:[#allocation2 + $0x58] sm:$0xff] %vm4284_vm14, %v2203_v55  ;;  %v3085_v24 = vld [vmem:[#allocation2 + $0x30] sm:$0xf] (%p1005_p0)  ;;  %v3158_v46 = vld [vmem:[#allocation2 + $0x34] sm:$0xf] (%p1005_p0)  ;;  %vm5847_vm14 = vcmask (%p1005_p0), 138240  }
 0x4ad   :  { %v3093_v21 = vld [vmem:[#allocation2 + $0x38] sm:$0xf] (%p1005_p0)  ;;  %v3159_v47 = vld [vmem:[#allocation2 + $0x3c] sm:$0xf] (%p1005_p0) }
 0x4ae   :  { %v3101_v1 = vld [vmem:[#allocation2 + $0x40] sm:$0xf] (%p1005_p0) }
 0x4af   :  { %2566 = vrot.lane.b32.xlu1 %v5272_v28, %s3269_s19 }
 0x4b1   :  { %v3161_v59 = vld [vmem:[#allocation2 + $0x44] sm:$0xf0]  ;;  %v3087_v52 = vld [vmem:[#allocation2 + $0x48] sm:$0xf0] }
 0x4b2   :  { %v5260_v9 = vor.u32 %v3161_v59, %v3085_v24  ;;  %v5270_v45 = vor.u32 %v3158_v46, %v3087_v52  ;;  %v3162_v44 = vld [vmem:[#allocation2 + $0x4c] sm:$0xf0]  ;;  %v3095_v17 = vld [vmem:[#allocation2 + $0x50] sm:$0xf0]  ;;  %v3160_v46 = vld [vmem:[#allocation2 + $0x44] sm:$0xf] }
 0x4b3   :  { %v5280_v61 = vor.u32 %v3162_v44, %v3093_v21  ;;  %v5338_v38 = vor.u32 %v3159_v47, %v3095_v17  ;;  %v3163_v53 = vld [vmem:[#allocation2 + $0x54] sm:$0xf0]  ;;  %v3107_v52 = vld [vmem:[#allocation2 + $0x58] sm:$0xf0]  ;;  %v3103_v47 = vld [vmem:[#allocation2 + $0x28] sm:$0xf0] }
 0x4b4   :  { %2527 = vrot.lane.b32.xlu2 %v5260_v9, %s3267_s18  ;;  %2576 = vrot.lane.b32.xlu0 %v5260_v9, %s3269_s19  ;;  %v5386_v63 = vor.u32 %v3163_v53, %v3101_v1  ;;  %v5474_v56 = vor.u32 %v3160_v46, %v3107_v52 }
 0x4b7   :  { %2425 = vrot.lane.b32.xlu1 %v5260_v9, %s3262_s16 }
 0x4bc   :  { %2529 = vrot.lane.b32.xlu2 %v5270_v45, %s3267_s18  ;;  %2578 = vrot.lane.b32.xlu0 %v5270_v45, %s3269_s19 }
 0x4bf   :  { %2517 = vrot.lane.b32.xlu1 %v5272_v28, %s3267_s18 }
 0x4c4   :  { %2427 = vrot.lane.b32.xlu2 %v5270_v45, %s3262_s16  ;;  %2580 = vrot.lane.b32.xlu0 %v5280_v61, %s3269_s19 }
 0x4c7   :  { %2415 = vrot.lane.b32.xlu1 %v5272_v28, %s3262_s16 }
 0x4cc   :  { %2568 = vrot.lane.b32.xlu2 %v5288_v25, %s3269_s19  ;;  %2515 = vrot.lane.b32.xlu0 %v5262_v14, %s3267_s18 }
 0x4cf   :  { %2478 = vrot.lane.b32.xlu1 %v5270_v45, %s3265_s17 }
 0x4d4   :  { %2429 = vrot.lane.b32.xlu2 %v5280_v61, %s3262_s16  ;;  %2413 = vrot.lane.b32.xlu0 %v5262_v14, %s3262_s16 }
 0x4d7   :  { %2627 = vrot.lane.b32.xlu1 %v5270_v45, %s3271_s20 }
 0x4dc   :  { %2531 = vrot.lane.b32.xlu2 %v5280_v61, %s3267_s18  ;;  %2476 = vrot.lane.b32.xlu0 %v5260_v9, %s3265_s17 }
 0x4df   :  { %2417 = vrot.lane.b32.xlu1 %v5288_v25, %s3262_s16 }
 0x4e4   :  { %2372 = vrot.lane.b32.xlu2 %v5260_v9, %s3260_s2  ;;  %2625 = vrot.lane.b32.xlu0 %v5260_v9, %s3271_s20 }
 0x4e7   :  { %2519 = vrot.lane.b32.xlu1 %v5288_v25, %s3267_s18 }
 0x4ec   :  { %2464 = vrot.lane.b32.xlu2 %v5262_v14, %s3265_s17  ;;  %2374 = vrot.lane.b32.xlu0 %v5270_v45, %s3260_s2 }
 0x4ef   :  { %2362 = vrot.lane.b32.xlu1 %v5262_v14, %s3260_s2 }
 0x4f4   :  { %2613 = vrot.lane.b32.xlu2 %v5262_v14, %s3271_s20  ;;  %2466 = vrot.lane.b32.xlu0 %v5272_v28, %s3265_s17 }
 0x4f7   :  { %2480 = vrot.lane.b32.xlu1 %v5280_v61, %s3265_s17 }
 0x4fc   :  { %2364 = vrot.lane.b32.xlu2 %v5272_v28, %s3260_s2  ;;  %2615 = vrot.lane.b32.xlu0 %v5272_v28, %s3271_s20 }
 0x4ff   :  { %2366 = vrot.lane.b32.xlu1 %v5288_v25, %s3260_s2 }
 0x504   :  { %2327 = vrot.lane.b32.xlu2 %v5260_v9, %s3258_s15  ;;  %2376 = vrot.lane.b32.xlu0 %v5280_v61, %s3260_s2 }
 0x507   :  { %2317 = vrot.lane.b32.xlu1 %v5262_v14, %s3258_s15 }
 0x50c   :  { %2582 = vrot.lane.b32.xlu2 %v5338_v38, %s3269_s19  ;;  %2329 = vrot.lane.b32.xlu0 %v5270_v45, %s3258_s15 }
 0x50e   :  { %v2528_v11 = vpop.permute.xlu2 %2527 }
 0x50f   :  { %2570 = vrot.lane.b32.xlu1 %v5354_v2, %s3269_s19 }
 0x514   :  { %2319 = vrot.lane.b32.xlu2 %v5272_v28, %s3258_s15  ;;  %2468 = vrot.lane.b32.xlu0 %v5288_v25, %s3265_s17 }
 0x516   :  { %v5352_v58 = vpop.permute.xlu2 %2529 }
 0x517   :  { %2321 = vrot.lane.b32.xlu1 %v5288_v25, %s3258_s15  ;;  %v2545_v41 = vsel %vm596_vm6, %v2528_v11, %v5352_v58 }
 0x519   :  { %v2565_v18 = vpop.permute.xlu1 %2564 }
 0x51c   :  { %2281 = vrot.lane.b32.xlu2 %v5260_v9, %s3257_s29  ;;  %2331 = vrot.lane.b32.xlu0 %v5280_v61, %s3258_s15 }
 0x51e   :  { %v5362_v39 = vpop.permute.xlu2 %2427 }
 0x51f   :  { %2273 = vrot.lane.b32.xlu1 %v5272_v28, %s3257_s29 }
 0x521   :  { %v5382_v32 = vpop.permute.xlu1 %2566 }
 0x522   :  { %v2589_v27 = vsel %vm691_vm8, %v2565_v18, %v5382_v32  ;;  %v5492_v18 = vor.u32 %v3154_v33, %v3103_v47 }
 0x524   :  { %2533 = vrot.lane.b32.xlu2 %v5338_v38, %s3267_s18  ;;  %2283 = vrot.lane.b32.xlu0 %v5270_v45, %s3257_s29 }
 0x526   :  { %v2577_v50 = vpop.permute.xlu0 %2576  ;;  %v5370_v31 = vpop.permute.xlu2 %2568 }
 0x527   :  { %2584 = vrot.lane.b32.xlu1 %v5386_v63, %s3269_s19 }
 0x529   :  { %v2426_v6 = vpop.permute.xlu1 %2425 }
 0x52a   :  { %3112 = vmatpush.bf16.msk.msra.mxu0 %vm4446_vm15, %v2426_v6  ;;  %v2443_v42 = vsel %vm335_vm3, %v2426_v6, %v5362_v39 }
 0x52b   :  { %2723 = vmatpush.bf16.msra.mxu3 %v2443_v42 }
 0x52c   :  { %2285 = vrot.lane.b32.xlu2 %v5280_v61, %s3257_s29  ;;  %2271 = vrot.lane.b32.xlu0 %v5262_v14, %s3257_s29 }
 0x52e   :  { %v5378_v51 = vpop.permute.xlu0 %2578  ;;  %v5380_v54 = vpop.permute.xlu2 %2429 }
 0x52f   :  { %v2594_v37 = vsel %vm691_vm8, %v2577_v50, %v5378_v51  ;;  %2433 = vrot.lane.b32.xlu1 %v5386_v63, %s3262_s16  ;;  %v2444_v1 = vsel %vm335_vm3, %v5362_v39, %v5380_v54 }
 0x530   :  { %2697 = vmatpush.bf16.msra.mxu1 %v2594_v37 }
 0x531   :  { %v5412_v34 = vpop.permute.xlu1 %2517 }
 0x534   :  { %2275 = vrot.lane.b32.xlu2 %v5288_v25, %s3257_s29  ;;  %2521 = vrot.lane.b32.xlu0 %v5354_v2, %s3267_s18 }
 0x535   :  { %2698 = vmatpush.bf16.msra.mxu1 %v2589_v27 }
 0x536   :  { %v5396_v15 = vpop.permute.xlu0 %2580  ;;  %v5398_v8 = vpop.permute.xlu2 %2531 }
 0x537   :  { %2419 = vrot.lane.b32.xlu1 %v5354_v2, %s3262_s16  ;;  %v2595_v50 = vsel %vm691_vm8, %v5378_v51, %v5396_v15  ;;  %v2590_v51 = vsel %vm691_vm8, %v5382_v32, %v5370_v31  ;;  %v2546_v6 = vsel %vm596_vm6, %v5352_v58, %v5398_v8 }
 0x539   :  { %2699 = vmatpush.bf16.msra.mxu1 %v2545_v41  ;;  %v5424_v3 = vpop.permute.xlu1 %2415 }
 0x53c   :  { %2482 = vrot.lane.b32.xlu2 %v5338_v38, %s3265_s17  ;;  %2431 = vrot.lane.b32.xlu0 %v5338_v38, %s3262_s16 }
 0x53e   :  { %v2373_v22 = vpop.permute.xlu2 %2372  ;;  %v2516_v36 = vpop.permute.xlu0 %2515 }
 0x53f   :  { %v2540_v10 = vsel %vm596_vm6, %v2516_v36, %v5412_v34  ;;  %2535 = vrot.lane.b32.xlu1 %v5386_v63, %s3267_s18 }
 0x540   :  { %2700 = vmatpush.bf16.msra.mxu1 %v2540_v10 }
 0x541   :  { %v5438_v0 = vpop.permute.xlu1 %2478 }
 0x544   :  { %2421 = vrot.lane.b32.xlu2 %v5416_v40, %s3262_s16  ;;  %2572 = vrot.lane.b32.xlu0 %v5416_v40, %s3269_s19 }
 0x546   :  { %v2465_v5 = vpop.permute.xlu2 %2464  ;;  %v2414_v23 = vpop.permute.xlu0 %2413 }
 0x547   :  { %3114 = vmatpush.bf16.msk.msra.mxu0 %vm4446_vm15, %v2414_v23  ;;  %v2438_v43 = vsel %vm335_vm3, %v2414_v23, %v5424_v3  ;;  %2378 = vrot.lane.b32.xlu1 %v5338_v38, %s3260_s2  ;;  %vm5848_vm15 = vmmov %vm5847_vm14 }
 0x548   :  { %2724 = vmatpush.bf16.msra.mxu3 %v2438_v43 }
 0x549   :  { %v5450_v62 = vpop.permute.xlu1 %2627 }
 0x54b   :  { %3116 = vmatpush.bf16.msk.msra.mxu0 %vm4520_vm12, %v2373_v22 }
 0x54c   :  { %2629 = vrot.lane.b32.xlu2 %v5280_v61, %s3271_s20  ;;  %2470 = vrot.lane.b32.xlu0 %v5354_v2, %s3265_s17 }
 0x54e   :  { %v2614_v35 = vpop.permute.xlu2 %2613  ;;  %v2477_v49 = vpop.permute.xlu0 %2476 }
 0x54f   :  { %v2494_v60 = vsel %vm500_vm4, %v2477_v49, %v5438_v0  ;;  %2617 = vrot.lane.b32.xlu1 %v5288_v25, %s3271_s20 }
 0x550   :  { %2701 = vmatpush.bf16.msra.mxu1 %v2494_v60 }
 0x551   :  { %v5460_v12 = vpop.permute.xlu1 %2417 }
 0x554   :  { %2380 = vrot.lane.b32.xlu2 %v5386_v63, %s3260_s2  ;;  %2631 = vrot.lane.b32.xlu0 %v5338_v38, %s3271_s20 }
 0x556   :  { %v2626_v30 = vpop.permute.xlu0 %2625  ;;  %v5448_v7 = vpop.permute.xlu2 %2364 }
 0x557   :  { %v2643_v55 = vsel %vm785_vm9, %v2626_v30, %v5450_v62  ;;  %2370 = vrot.lane.b32.xlu1 %v5416_v40, %s3260_s2 }
 0x558   :  { %2716 = vmatpush.bf16.msra.mxu2 %v2643_v55 }
 0x559   :  { %v5471_v21 = vpop.permute.xlu1 %2519 }
 0x55a   :  { %v2541_v41 = vsel %vm596_vm6, %v5412_v34, %v5471_v21 }
 0x55c   :  { %2619 = vrot.lane.b32.xlu2 %v5354_v2, %s3271_s20  ;;  %2523 = vrot.lane.b32.xlu0 %v5416_v40, %s3267_s18 }
 0x55e   :  { %v2375_v24 = vpop.permute.xlu0 %2374  ;;  %v2328_v59 = vpop.permute.xlu2 %2327 }
 0x55f   :  { %v2387_v20 = vsel %vm5847_vm14, %v2373_v22, %v2375_v24  ;;  %2484 = vrot.lane.b32.xlu1 %v5386_v63, %s3265_s17 }
 0x560   :  { %2725 = vmatpush.bf16.msra.mxu3 %v2387_v20 }
 0x561   :  { %v2363_v48 = vpop.permute.xlu1 %2362 }
 0x562   :  { %3118 = vmatpush.bf16.msk.msra.mxu0 %vm4520_vm12, %v2363_v48  ;;  %vm5850_vm12 = vmmov %vm5847_vm14 }
 0x563   :  { %vm5852_vm1 = vmmov %vm5850_vm12 }
 0x564   :  { %2633 = vrot.lane.b32.xlu2 %v5386_v63, %s3271_s20  ;;  %2368 = vrot.lane.b32.xlu0 %v5354_v2, %s3260_s2  ;;  %vm5859_vm14 = vmmov %vm5856_vm13 }
 0x566   :  { %v5469_v4 = vpop.permute.xlu2 %2582  ;;  %v2467_v19 = vpop.permute.xlu0 %2466  ;;  %3120 = vmatpush.bf16.msk.msra.mxu0 %vm4607_vm11, %v2328_v59 }
 0x567   :  { %v2489_v44 = vsel %vm500_vm4, %v2465_v5, %v2467_v19  ;;  %2621 = vrot.lane.b32.xlu1 %v5416_v40, %s3271_s20 }
 0x568   :  { %2702 = vmatpush.bf16.msra.mxu1 %v2489_v44  ;;  %v2596_v44 = vsel %vm691_vm8, %v5396_v15, %v5469_v4 }
 0x569   :  { %v5518_v27 = vpop.permute.xlu1 %2480 }
 0x56a   :  { %v2495_v22 = vsel %vm500_vm4, %v5438_v0, %v5518_v27 }
 0x56c   :  { %2333 = vrot.lane.b32.xlu2 %v5338_v38, %s3258_s15  ;;  %2435 = vrot.lane.b32.xlu0 %v5474_v56, %s3262_s16 }
 0x56d   :  { %2703 = vmatpush.bf16.msra.mxu1 %v5260_v9  ;;  %v2383_v9 = vsel %vm5848_vm15, %v2363_v48, %v5448_v7  ;;  %vm5860_vm15 = vmmov %vm5856_vm13 }
 0x56e   :  { %v5483_v17 = vpop.permute.xlu2 %2319  ;;  %v5485_v11 = vpop.permute.xlu0 %2615  ;;  %2726 = vmatpush.bf16.msra.mxu3 %v2383_v9 }
 0x56f   :  { %v2638_v16 = vsel %vm785_vm9, %v2614_v35, %v5485_v11  ;;  %2586 = vrot.lane.b32.xlu1 %v5474_v56, %s3269_s19  ;;  %v2228_v35 = vld [vmem:[%s5789_s7] sm:$0x7] }
 0x570   :  { %2717 = vmatpush.bf16.msra.mxu2 %v2638_v16  ;;  %2675 = vst [vmem:[#allocation1] ss:$9 sm:$0xff] %v2228_v35 }
 0x571   :  { %2704 = vmatpush.bf16.msra.mxu1 %v5262_v14  ;;  %v2439_v14 = vsel %vm335_vm3, %v5424_v3, %v5460_v12  ;;  %v5536_v58 = vpop.permute.xlu1 %2366 }
 0x572   :  { %v2384_v29 = vsel %vm5852_vm1, %v5448_v7, %v5536_v58 }
 0x574   :  { %2736 = vmatpush.bf16.msrb.mxu2 %v2595_v50  ;;  %2423 = vrot.lane.b32.xlu2 %v5492_v18, %s3262_s16 }
 0x575   :  { %2762 = vmatpush.bf16.msrb.mxu1 %v2444_v1  ;;  %2335 = vrot.lane.b32.xlu0 %v5386_v63, %s3258_s15 }
 0x576   :  { %v2282_v39 = vpop.permute.xlu2 %2281  ;;  %v5514_v53 = vpop.permute.xlu0 %2376 }
 0x577   :  { %v2388_v32 = vsel %vm5850_vm12, %v2375_v24, %v5514_v53  ;;  %2574 = vrot.lane.b32.xlu1 %v5492_v18, %s3269_s19  ;;  %v5590_v30 = vld [vmem:[#allocation1 + $0x12] sm:$0xff]  ;;  %vm5861_vm12 = vmmov %vm5856_vm13  ;;  %v5618_v33 = vld [vmem:[#allocation1] sm:$0xff] }
 0x578   :  { %2737 = vmatpush.bf16.msrb.mxu2 %v2590_v51  ;;  %v5627_v16 = vld [vmem:[#allocation1 + $0x9] sm:$0xff] }
 0x579   :  { %2763 = vmatpush.bf16.msrb.mxu1 %v2439_v14  ;;  %v2318_v10 = vpop.permute.xlu1 %2317  ;;  %3127 = vmatmul.msk.bf16.vlgmr.msra.gmra.mxu2 %vm5857_vm10, %v5590_v30 }
 0x57a   :  { %3122 = vmatpush.bf16.msk.msra.mxu0 %vm4607_vm11, %v2318_v10  ;;  %v2338_v23 = vsel %vm5853_vm2, %v2318_v10, %v5483_v17  ;;  %vm5855_vm11 = vmmov %vm5851_vm0  ;;  %2705 = vmatmul.bf16.vlgmr.msra.gmra.mxu1 %v5627_v16 }
 0x57c   :  { %2738 = vmatpush.bf16.msrb.mxu2 %v2546_v6  ;;  %2323 = vrot.lane.b32.xlu2 %v5354_v2, %s3258_s15 }
 0x57d   :  { %2764 = vmatpush.bf16.msrb.mxu1 %v2388_v32  ;;  %2472 = vrot.lane.b32.xlu0 %v5416_v40, %s3265_s17 }
 0x57e   :  { %v5534_v57 = vpop.permute.xlu2 %2533  ;;  %v2330_v42 = vpop.permute.xlu0 %2329  ;;  %3124 = vmatpush.bf16.msk.msra.mxu0 %vm4638_vm7, %v2282_v39 }
 0x57f   :  { %v2342_v13 = vsel %vm5851_vm0, %v2328_v59, %v2330_v42  ;;  %2537 = vrot.lane.b32.xlu1 %v5474_v56, %s3267_s18  ;;  %vm5863_vm0 = vmmov %vm5857_vm10 }
 0x580   :  { %2739 = vmatpush.bf16.msrb.mxu2 %v2541_v41  ;;  %2727 = vmatpush.bf16.msra.mxu3 %v2342_v13  ;;  %vm5868_vm10 = vmmov %vm5858_vm5 }
 0x581   :  { %2765 = vmatpush.bf16.msrb.mxu1 %v2384_v29  ;;  %v5577_v49 = vpop.permute.xlu1 %2570 }
 0x582   :  { %v2591_v47 = vsel %vm691_vm8, %v5370_v31, %v5577_v49  ;;  %v2547_v31 = vsel %vm596_vm6, %v5398_v8, %v5534_v57 }
 0x584   :  { %2740 = vmatpush.bf16.msrb.mxu2 %v2495_v22  ;;  %2287 = vrot.lane.b32.xlu2 %v5338_v38, %s3257_s29 }
 0x585   :  { %2325 = vrot.lane.b32.xlu0 %v5416_v40, %s3258_s15  ;;  %2728 = vmatpush.bf16.msra.mxu3 %v2338_v23 }
 0x586   :  { %v5551_v36 = vpop.permute.xlu2 %2285  ;;  %v5553_v34 = vpop.permute.xlu0 %2468 }
 0x587   :  { %v2490_v5 = vsel %vm500_vm4, %v2467_v19, %v5553_v34  ;;  %2279 = vrot.lane.b32.xlu1 %v5416_v40, %s3257_s29 }
 0x588   :  { %2741 = vmatpush.bf16.msrb.mxu2 %v2490_v5 }
 0x589   :  { %v5592_v7 = vpop.permute.xlu1 %2321 }
 0x58c   :  { %2635 = vrot.lane.b32.xlu2 %v5474_v56, %s3271_s20  ;;  %2742 = vmatpush.bf16.msrb.mxu2 %v5270_v45 }
 0x58d   :  { %2289 = vrot.lane.b32.xlu0 %v5386_v63, %s3257_s29 }
 0x58e   :  { %v5569_v43 = vpop.permute.xlu2 %2275  ;;  %v5571_v26 = vpop.permute.xlu0 %2331 }
 0x58f   :  { %v2343_v0 = vsel %vm5855_vm11, %v2330_v42, %v5571_v26  ;;  %2486 = vrot.lane.b32.xlu1 %v5474_v56, %s3265_s17 }
 0x590   :  { %2766 = vmatpush.bf16.msrb.mxu1 %v2343_v0  ;;  %2743 = vmatpush.bf16.msrb.mxu2 %v5272_v28  ;;  %v2339_v28 = vsel %vm5858_vm5, %v5483_v17, %v5592_v7 }
 0x591   :  { %v2274_v46 = vpop.permute.xlu1 %2273 }
 0x592   :  { %v2293_v19 = vsel %vm5861_vm12, %v2274_v46, %v5569_v43 }
 0x593   :  { %2744 = vmatmul.bf16.vlgmr.msrb.gmra.mxu2 %v5627_v16 }
 0x594   :  { %2525 = vrot.lane.b32.xlu2 %v5492_v18, %s3267_s18  ;;  %2767 = vmatpush.bf16.msrb.mxu1 %v2339_v28 }
 0x595   :  { %2277 = vrot.lane.b32.xlu0 %v5354_v2, %s3257_s29 }
 0x596   :  { %v5588_v60 = vpop.permute.xlu2 %2482  ;;  %v2284_v45 = vpop.permute.xlu0 %2283 }
 0x597   :  { %v2296_v55 = vsel %vm5856_vm13, %v2282_v39, %v2284_v45  ;;  %v2297_v24 = vsel %vm5859_vm14, %v2284_v45, %v5551_v36  ;;  %vm5869_vm14 = vmmov %vm5858_vm5 }
 0x598   :  { %2729 = vmatpush.bf16.msra.mxu3 %v2296_v55  ;;  %2768 = vmatpush.bf16.msrb.mxu1 %v2297_v24 }
 0x599   :  { %v5629_v50 = vpop.permute.xlu1 %2584 }
 0x59a   :  { %v2597_v0 = vsel %vm691_vm8, %v5469_v4, %v5629_v50 }
 0x59c   :  { %2474 = vrot.lane.b32.xlu2 %v5492_v18, %s3265_s17  ;;  %2769 = vmatpush.bf16.msrb.mxu1 %v2293_v19 }
 0x59d   :  { %2623 = vrot.lane.b32.xlu0 %v5492_v18, %s3271_s20 }
 0x59e   :  { %v5608_v59 = vpop.permute.xlu2 %2421  ;;  %v2272_v20 = vpop.permute.xlu0 %2271 }
 0x59f   :  { %3126 = vmatpush.bf16.msk.msra.mxu0 %vm4638_vm7, %v2272_v20  ;;  %v2292_v52 = vsel %vm5860_vm15, %v2272_v20, %v2274_v46  ;;  %2770 = vmatmul.bf16.vlgmr.msrb.gmra.mxu1 %v5618_v33  ;;  %vm5862_vm7 = vmmov %vm5852_vm1  ;;  %vm5870_vm15 = vcmask 957440  }
 0x5a0   :  { %2730 = vmatpush.bf16.msra.mxu3 %v2292_v52  ;;  %vm5864_vm1 = vmmov %vm5863_vm0 }
 0x5a1   :  { %v5643_v14 = vpop.permute.xlu1 %2433  ;;  %vm5865_vm2 = vmmov %vm5862_vm7 }
 0x5a2   :  { %2692 = vmatmul.bf16.vlgmr.msra.gmra.mxu0 %v5618_v33  ;;  %vm5866_vm11 = vmmov %vm5865_vm2 }
 0x5a3   :  { %2731 = vmatmul.bf16.vlgmr.msra.gmra.mxu3 %v5618_v33  ;;  %vm5867_vm13 = vmmov %vm5865_vm2 }
 0x5a4   :  { %2775 = vmatpush.bf16.msrb.mxu3 %v2596_v44 }
 0x5a6   :  { %v2630_v17 = vpop.permute.xlu2 %2629  ;;  %v5625_v48 = vpop.permute.xlu0 %2521 }
 0x5a7   :  { %v2644_v15 = vsel %vm785_vm9, %v5450_v62, %v2630_v17  ;;  %v2542_v9 = vsel %vm596_vm6, %v5471_v21, %v5625_v48  ;;  %v2496_v62 = vsel %vm500_vm4, %v5518_v27, %v5588_v60 }
 0x5a8   :  { %2776 = vmatpush.bf16.msrb.mxu3 %v2591_v47  ;;  %2755 = vmatpush.bf16.msrb.mxu0 %v2644_v15 }
 0x5a9   :  { %v2420_v8 = vpop.permute.xlu1 %2419 }
 0x5ac   :  { %2777 = vmatpush.bf16.msrb.mxu3 %v2547_v31 }
 0x5ae   :  { %v5641_v1 = vpop.permute.xlu2 %2380  ;;  %v2432_v51 = vpop.permute.xlu0 %2431 }
 0x5af   :  { %v2446_v10 = vsel %vm335_vm3, %v2432_v51, %v5643_v14  ;;  %v2445_v45 = vsel %vm335_vm3, %v5380_v54, %v2432_v51 }
 0x5b0   :  { %2778 = vmatpush.bf16.msrb.mxu3 %v2542_v9 }
 0x5b1   :  { %v5657_v6 = vpop.permute.xlu1 %2535 }
 0x5b2   :  { %v2548_v46 = vsel %vm596_vm6, %v5534_v57, %v5657_v6 }
 0x5b4   :  { %2779 = vmatpush.bf16.msrb.mxu3 %v2496_v62 }
 0x5b6   :  { %v5648_v39 = vpop.permute.xlu2 %2619  ;;  %v5650_v37 = vpop.permute.xlu0 %2572 }
 0x5b7   :  { %v2592_v4 = vsel %vm691_vm8, %v5577_v49, %v5650_v37 }
 0x5b9   :  { %v2379_v22 = vpop.permute.xlu1 %2378 }
 0x5ba   :  { %v2390_v35 = vsel %vm5862_vm7, %v2379_v22, %v5641_v1  ;;  %v2389_v20 = vsel %vm5866_vm11, %v5514_v53, %v2379_v22  ;;  %vm5871_vm7 = vmmov %vm5863_vm0  ;;  %vm5875_vm11 = vcmask 965632  }
 0x5be   :  { %v5653_v32 = vpop.permute.xlu2 %2633  ;;  %v5655_v21 = vpop.permute.xlu0 %2470 }
 0x5bf   :  { %v2491_v41 = vsel %vm500_vm4, %v5553_v34, %v5655_v21 }
 0x5c0   :  { %2780 = vmatpush.bf16.msrb.mxu3 %v2491_v41 }
 0x5c1   :  { %v2618_v23 = vpop.permute.xlu1 %2617 }
 0x5c2   :  { %v2639_v3 = vsel %vm785_vm9, %v5485_v11, %v2618_v23  ;;  %v2440_v11 = vsel %vm335_vm3, %v5460_v12, %v2420_v8 }
 0x5c3   :  { %2756 = vmatpush.bf16.msrb.mxu0 %v2639_v3 }
 0x5c4   :  { %2781 = vmatpush.bf16.msrb.mxu3 %v5280_v61  ;;  %v2441_v61 = vsel %vm335_vm3, %v2420_v8, %v5608_v59 }
 0x5c6   :  { %v2334_v27 = vpop.permute.xlu2 %2333  ;;  %v2632_v42 = vpop.permute.xlu0 %2631  ;;  %3128 = vmatmul.msk.bf16.vlgmr.msrb.gmra.mxu0 %vm5864_vm1, %v5590_v30  ;;  %vm5873_vm1 = vmmov %vm5861_vm12 }
 0x5c7   :  { %v2645_v13 = vsel %vm785_vm9, %v2630_v17, %v2632_v42  ;;  %v2646_v29 = vsel %vm785_vm9, %v2632_v42, %v5653_v32  ;;  %2801 = vmatpush.bf16.msra.mxu0 %v2445_v45  ;;  %v2344_v57 = vsel %vm5868_vm10, %v5571_v26, %v2334_v27  ;;  %vm5880_vm10 = vmmov %vm5870_vm15 }
 0x5c8   :  { %2782 = vmatpush.bf16.msrb.mxu3 %v5288_v25  ;;  %2794 = vmatpush.bf16.msra.mxu2 %v2645_v13  ;;  %v2640_v25 = vsel %vm785_vm9, %v2618_v23, %v5648_v39 }
 0x5c9   :  { %2833 = vmatpush.bf16.msra.mxu1 %v2646_v29  ;;  %v2371_v28 = vpop.permute.xlu1 %2370 }
 0x5cb   :  { %2783 = vmatmul.bf16.vlgmr.msrb.gmra.mxu3 %v5627_v16  ;;  %2802 = vmatpush.bf16.msra.mxu0 %v2440_v11 }
 0x5cc   :  { %2840 = vmatpush.bf16.msra.mxu3 %v2446_v10  ;;  %2795 = vmatpush.bf16.msra.mxu2 %v2640_v25 }
 0x5ce   :  { %v5672_v34 = vpop.permute.xlu2 %2423  ;;  %v5674_v5 = vpop.permute.xlu0 %2523 }
 0x5cf   :  { %3129 = vmatmul.msk.bf16.vlgmr.msra.gmra.mxu2 %vm5863_vm0, %v5590_v30  ;;  %2803 = vmatpush.bf16.msra.mxu0 %v2389_v20  ;;  %v2543_v49 = vsel %vm596_vm6, %v5625_v48, %v5674_v5  ;;  %vm5872_vm0 = vmmov %vm5858_vm5 }
 0x5d0   :  { %2841 = vmatpush.bf16.msra.mxu3 %v2441_v61  ;;  %2814 = vmatpush.bf16.msrb.mxu2 %v2597_v0 }
 0x5d1   :  { %v5707_v44 = vpop.permute.xlu1 %2484 }
 0x5d2   :  { %v2497_v53 = vsel %vm500_vm4, %v5588_v60, %v5707_v44 }
 0x5d4   :  { %2842 = vmatpush.bf16.msra.mxu3 %v2390_v35  ;;  %2815 = vmatpush.bf16.msrb.mxu2 %v2592_v4 }
 0x5d6   :  { %v2324_v54 = vpop.permute.xlu2 %2323  ;;  %v2369_v55 = vpop.permute.xlu0 %2368 }
 0x5d7   :  { %v2386_v24 = vsel %vm5865_vm2, %v2369_v55, %v2371_v28  ;;  %v2385_v12 = vsel %vm5867_vm13, %v5536_v58, %v2369_v55  ;;  %v2340_v58 = vsel %vm5858_vm5, %v5592_v7, %v2324_v54  ;;  %vm5874_vm2 = vmmov %vm5873_vm1  ;;  %vm5881_vm5 = vcmask 56320  }
 0x5d8   :  { %2843 = vmatpush.bf16.msra.mxu3 %v2386_v24  ;;  %2816 = vmatpush.bf16.msrb.mxu2 %v2548_v46  ;;  %vm5878_vm13 = vmmov %vm5875_vm11 }
 0x5d9   :  { %2804 = vmatpush.bf16.msra.mxu0 %v2385_v12  ;;  %v2622_v15 = vpop.permute.xlu1 %2621 }
 0x5da   :  { %v2641_v60 = vsel %vm785_vm9, %v5648_v39, %v2622_v15 }
 0x5db   :  { %2834 = vmatpush.bf16.msra.mxu1 %v2641_v60 }
 0x5dc   :  { %2817 = vmatpush.bf16.msrb.mxu2 %v2543_v49 }
 0x5dd   :  { %2805 = vmatpush.bf16.msra.mxu0 %v2344_v57 }
 0x5de   :  { %v2288_v52 = vpop.permute.xlu2 %2287  ;;  %v2436_v19 = vpop.permute.xlu0 %2435  ;;  %3130 = vmatmul.msk.bf16.vlgmr.msra.gmra.mxu1 %vm5871_vm7, %v5590_v30 }
 0x5df   :  { %v2298_v26 = vsel %vm5861_vm12, %v5551_v36, %v2288_v52  ;;  %v2447_v36 = vsel %vm335_vm3, %v5643_v14, %v2436_v19  ;;  %vm2931_vm12 = vcmask 1041408  }
 0x5e0   :  { %2818 = vmatpush.bf16.msrb.mxu2 %v2497_v53 }
 0x5e1   :  { %2806 = vmatpush.bf16.msra.mxu0 %v2340_v58  ;;  %v2587_v51 = vpop.permute.xlu1 %2586 }
 0x5e2   :  { %v2598_v14 = vsel %vm691_vm8, %v5629_v50, %v2587_v51 }
 0x5e5   :  { %2807 = vmatpush.bf16.msra.mxu0 %v2298_v26 }
 0x5e6   :  { %v2636_v47 = vpop.permute.xlu2 %2635 }
 0x5e7   :  { %v2336_v17 = vpop.permute.xlu0 %2335  ;;  %v2647_v48 = vsel %vm785_vm9, %v5653_v32, %v2636_v47 }
 0x5e8   :  { %v2345_v31 = vsel %vm5869_vm14, %v2334_v27, %v2336_v17  ;;  %v2660_v9 = vsel %vm5870_vm15, %v2647_v48, 0  ;;  %vm5882_vm14 = vmmov %vm5881_vm5 }
 0x5e9   :  { %2844 = vmatpush.bf16.msra.mxu3 %v2345_v31  ;;  %2872 = vmatpush.bf16.msrb.mxu1 %v2660_v9  ;;  %v2575_v8 = vpop.permute.xlu1 %2574 }
 0x5ea   :  { %v2593_v10 = vsel %vm691_vm8, %v5650_v37, %v2575_v8  ;;  %vm5879_vm8 = vcmask 973824  }
 0x5eb   :  { %v2608_v50 = vsel %vm5878_vm13, %v2593_v10, 0  ;;  %vm5883_vm15 = vmmov %vm5879_vm8 }
 0x5ee   :  { %v2526_v29 = vpop.permute.xlu2 %2525 }
 0x5ef   :  { %v5726_v7 = vpop.permute.xlu0 %2472  ;;  %v2544_v35 = vsel %vm596_vm6, %v5674_v5, %v2526_v29 }
 0x5f0   :  { %v2492_v62 = vsel %vm500_vm4, %v5655_v21, %v5726_v7  ;;  %v2442_v21 = vsel %vm335_vm3, %v5608_v59, %v5672_v34  ;;  %v2611_v59 = vsel %vm5875_vm11, %v2598_v14, 0  ;;  %vm5876_vm3 = vmmov %vm5873_vm1  ;;  %v2559_v45 = vsel %vm5883_vm15, %v2544_v35, 0 }
 0x5f1   :  { %2819 = vmatpush.bf16.msrb.mxu2 %v2492_v62 }
 0x5f5   :  { %2820 = vmatpush.bf16.msrb.mxu2 %v5338_v38  ;;  %v2538_v38 = vpop.permute.xlu1 %2537 }
 0x5f6   :  { %v2475_v0 = vpop.permute.xlu2 %2474 }
 0x5f7   :  { %v2326_v39 = vpop.permute.xlu0 %2325  ;;  %v2493_v4 = vsel %vm500_vm4, %v5726_v7, %v2475_v0 }
 0x5f8   :  { %v2341_v32 = vsel %vm5872_vm0, %v2324_v54, %v2326_v39  ;;  %vm2935_vm0 = vcmask 1044483  }
 0x5f9   :  { %2821 = vmatpush.bf16.msrb.mxu2 %v5354_v2  ;;  %2845 = vmatpush.bf16.msra.mxu3 %v2341_v32 }
 0x5fc   :  { %2822 = vmatmul.bf16.vlgmr.msrb.gmra.mxu2 %v5627_v16  ;;  %v2719_v5 = vpop.f32.mrf.mxu2 }
 0x5fd   :  { %2879 = vmatpush.bf16.msra.mxu2 %v2447_v36  ;;  %v2280_v42 = vpop.permute.xlu1 %2279 }
 0x5ff   :  { %v2290_v41 = vpop.permute.xlu0 %2289 }
 0x600   :  { %v2299_v27 = vsel %vm5873_vm1, %v2288_v52, %v2290_v41  ;;  %vm2937_vm1 = vcmask 1042432  }
 0x601   :  { %2880 = vmatpush.bf16.msra.mxu2 %v2442_v21  ;;  %2846 = vmatpush.bf16.msra.mxu3 %v2299_v27 }
 0x604   :  { %v2721_v55 = vpop.f32.mrf.mxu2 }
 0x605   :  { %2881 = vmatpush.bf16.msra.mxu2 %v5641_v1  ;;  %v5877_v1 = vmov 0   ;;  %v2487_v37 = vpop.permute.xlu1 %2486 }
 0x606   :  { %v2513_v25 = vsel %vm5881_vm5, %v2487_v37, 0  ;;  %v2498_v11 = vsel %vm500_vm4, %v5707_v44, %v2487_v37  ;;  %vm2929_vm4 = vcmask 1040384   ;;  %v2941_v37 = vlaneseq }
 0x607   :  { %v2278_v2 = vpop.permute.xlu0 %2277 }
 0x608   :  { %v2294_v13 = vsel %vm5874_vm2, %v5569_v43, %v2278_v2  ;;  %v2295_v22 = vsel %vm5876_vm3, %v2278_v2, %v2280_v42  ;;  %v2549_v43 = vsel %vm596_vm6, %v5657_v6, %v2538_v38  ;;  %v2510_v6 = vsel %vm5882_vm14, %v2475_v0, 0  ;;  %vm5885_vm6 = vmmov %vm5871_vm7  ;;  %v5886_v0 = vld [vmem:[#allocation3_spill] sm:$0xff] }
 0x609   :  { %2882 = vmatpush.bf16.msra.mxu2 %v2371_v28  ;;  %2808 = vmatpush.bf16.msra.mxu0 %v2294_v13  ;;  %v2562_v23 = vsel %vm5879_vm8, %v2549_v43, 0  ;;  %v2706_v28 = vpop.f32.mrf.mxu1  ;;  %vm2943_vm2 = vcmp.lt.s32.totalorder %v2941_v37, 648 }
 0x60a   :  { %2847 = vmatpush.bf16.msra.mxu3 %v2295_v22 }
 0x60c   :  { %2809 = vmatmul.bf16.vlgmr.msra.gmra.mxu0 %v5618_v33 }
 0x60d   :  { %2853 = vmatpush.bf16.msrb.mxu0 %v2611_v59  ;;  %2883 = vmatpush.bf16.msra.mxu2 %v2336_v17 }
 0x60e   :  { %2912 = vmatpush.bf16.msrb.mxu3 %v5877_v1 }
 0x60f   :  { %2848 = vmatmul.bf16.vlgmr.msra.gmra.mxu3 %v5618_v33  ;;  %v2624_v61 = vpop.permute.xlu0 %2623 }
 0x610   :  { %v2642_v34 = vsel %vm785_vm9, %v2622_v15, %v2624_v61  ;;  %vm5884_vm9 = vmmov %vm5871_vm7  ;;  %vm2933_vm7 = vcmask 1043459  }
 0x611   :  { %2854 = vmatpush.bf16.msrb.mxu0 %v2608_v50  ;;  %2884 = vmatpush.bf16.msra.mxu2 %v2326_v39  ;;  %v2657_v3 = vsel %vm5880_vm10, %v2642_v34, 0  ;;  %v2708_v12 = vpop.f32.mrf.mxu1 }
 0x612   :  { %2873 = vmatpush.bf16.msrb.mxu1 %v2657_v3 }
 0x615   :  { %2855 = vmatpush.bf16.msrb.mxu0 %v2562_v23  ;;  %2885 = vmatpush.bf16.msra.mxu2 %v2290_v41 }
 0x616   :  { %2896 = vmatpush.bf16.msra.mxu1 %v2513_v25  ;;  %v2745_v46 = vpop.f32.mrf.mxu2 }
 0x617   :  { %3131 = vmatmul.msk.bf16.vlgmr.msrb.gmra.mxu1 %vm5884_vm9, %v5590_v30 }
 0x619   :  { %2856 = vmatpush.bf16.msrb.mxu0 %v2559_v45  ;;  %2886 = vmatpush.bf16.msra.mxu2 %v2280_v42 }
 0x61a   :  { %2897 = vmatpush.bf16.msra.mxu1 %v2510_v6 }
 0x61c   :  { %2887 = vmatmul.bf16.vlgmr.msra.gmra.mxu2 %v5618_v33  ;;  %v2771_v52 = vpop.f32.mrf.mxu1 }
 0x61d   :  { %2857 = vmatpush.bf16.msrb.mxu0 %v2498_v11 }
 0x61e   :  { %2898 = vmatpush.bf16.msra.mxu1 %v5474_v56 }
 0x61f   :  { %3132 = vmatmul.msk.bf16.vlgmr.msrb.gmra.mxu3 %vm5885_vm6, %v5590_v30  ;;  %v2693_v54 = vpop.f32.mrf.mxu0 }
 0x620   :  { %v2707_v56 = vadd.f32 %v2706_v28, %v2693_v54 }
 0x621   :  { %2858 = vmatpush.bf16.msrb.mxu0 %v2493_v4 }
 0x622   :  { %2899 = vmatpush.bf16.msra.mxu1 %v5492_v18  ;;  %v2720_v24 = vadd.f32 %v2719_v5, %v2707_v56  ;;  %v2747_v18 = vpop.f32.mrf.mxu2 }
 0x624   :  { %v2773_v19 = vpop.f32.mrf.mxu1 }
 0x625   :  { %2859 = vmatpush.bf16.msrb.mxu0 %v5386_v63 }
 0x626   :  { %v2732_v33 = vpop.f32.mrf.mxu3 }
 0x627   :  { %2900 = vmatmul.bf16.vlgmr.msra.gmra.mxu1 %v5627_v16  ;;  %v2695_v20 = vpop.f32.mrf.mxu0  ;;  %v2746_v30 = vadd.f32 %v2745_v46, %v2732_v33 }
 0x629   :  { %2860 = vmatpush.bf16.msrb.mxu0 %v5416_v40 }
 0x62c   :  { %2861 = vmatmul.bf16.vlgmr.msrb.gmra.mxu0 %v5627_v16 }
 0x62e   :  { %v2734_v49 = vpop.f32.mrf.mxu3 }
 0x643   :  { %v2758_v53 = vpop.f32.mrf.mxu0 }
 0x644   :  { %v2759_v57 = vadd.f32 %v2758_v53, %v2746_v30 }
 0x646   :  { %v2924_v58 = vrot.slane %v2759_v57, 7 }
 0x648   :  { %v2930_v40 = vsel %vm2929_vm4, %v2720_v24, %v2924_v58 }
 0x64b   :  { %v2760_v15 = vpop.f32.mrf.mxu0 }
 0x64e   :  { %v2784_v63 = vpop.f32.mrf.mxu3 }
 0x64f   :  { %v2785_v44 = vadd.f32 %v2784_v63, %v2771_v52 }
 0x652   :  { %v2797_v17 = vpop.f32.mrf.mxu2 }
 0x653   :  { %v2798_v48 = vadd.f32 %v2797_v17, %v2785_v44 }
 0x655   :  { %v2925_v16 = vrot.slane %v2798_v48, 6 }
 0x656   :  { %v2786_v47 = vpop.f32.mrf.mxu3 }
 0x657   :  { %v2932_v31 = vsel %vm2931_vm12, %v2930_v40, %v2925_v16 }
 0x65a   :  { %v2799_v9 = vpop.f32.mrf.mxu2 }
 0x65b   :  { %v2836_v60 = vpop.f32.mrf.mxu1 }
 0x663   :  { %v2838_v26 = vpop.f32.mrf.mxu1 }
 0x67f   :  { %v2823_v7 = vpop.f32.mrf.mxu2 }
 0x687   :  { %v2825_v51 = vpop.f32.mrf.mxu2 }
 0x689   :  { %v2810_v62 = vpop.f32.mrf.mxu0 }
 0x68a   :  { %v2824_v14 = vadd.f32 %v2823_v7, %v2810_v62 }
 0x68c   :  { %v2837_v59 = vadd.f32 %v2836_v60, %v2824_v14 }
 0x68e   :  { %v2926_v61 = vrot.slane %v2837_v59, 5 }
 0x691   :  { %v2812_v8 = vpop.f32.mrf.mxu0 }
 0x692   :  { %v2849_v39 = vpop.f32.mrf.mxu3 }
 0x694   :  { %v2875_v32 = vpop.f32.mrf.mxu1 }
 0x69a   :  { %v2851_v36 = vpop.f32.mrf.mxu3 }
 0x69c   :  { %v2877_v21 = vpop.f32.mrf.mxu1 }
 0x69f   :  { %v2888_v41 = vpop.f32.mrf.mxu2 }
 0x6a2   :  { %v2914_v38 = vpop.f32.mrf.mxu3 }
 0x6a4   :  { %v2901_v27 = vpop.f32.mrf.mxu1 }
 0x6a5   :  { %v2902_v2 = vadd.f32 %v2901_v27, %v2888_v41 }
 0x6a7   :  { %v2890_v42 = vpop.f32.mrf.mxu2  ;;  %v2915_v13 = vadd.f32 %v2914_v38, %v2902_v2 }
 0x6a9   :  { %v2862_v29 = vpop.f32.mrf.mxu0  ;;  %v2928_v50 = vrot.slane %v2915_v13, 3 }
 0x6aa   :  { %v2863_v22 = vadd.f32 %v2862_v29, %v2849_v39  ;;  %v2916_v10 = vpop.f32.mrf.mxu3 }
 0x6ac   :  { %v2876_v1 = vadd.f32 %v2875_v32, %v2863_v22  ;;  %v2903_v43 = vpop.f32.mrf.mxu1 }
 0x6ae   :  { %v2927_v34 = vrot.slane %v2876_v1, 4 }
 0x6b0   :  { %v2934_v23 = vsel %vm2933_vm7, %v2926_v61, %v2927_v34 }
 0x6b1   :  { %v2936_v3 = vsel %vm2935_vm0, %v2934_v23, %v2928_v50  ;;  %v2864_v25 = vpop.f32.mrf.mxu0 }
 0x6b2   :  { %v2938_v35 = vsel %vm2937_vm1, %v2932_v31, %v2936_v3 }
 0x6b3   :  { %v2940_v6 = vsub.f32 %v5886_v0, %v2938_v35 }
 0x6b5   :  { %2945 = vst.msk [vmem:[%s5790_s8] sm:$0x3f] %vm2943_vm2, %v2940_v6 }

</bundles_post_ra>
